<compile_context>
chip_gen: v7x
topology: tpu7x:2x2x1
jax: 0.10.0
libtpu: 0.0.40
codegen_flags: <defaults>
</compile_context>

<pallas_src>
import functools

import jax
import jax.numpy as jnp
from jax import lax
from jax.experimental import pallas as pl
from jax.experimental.pallas import tpu as pltpu


# ----------------------------------------------------------------------------- spec helpers
def _shared_spec(shape):
    # Weight / constant resident in VMEM; block index never changes across the grid.
    # TODO(synk): on v7x (64 MiB VMEM) mark these pipeline_mode=pl.Buffered(1) at realistic sizes
    # to drop the redundant second pipeline buffer.
    shape = tuple(shape)
    n = len(shape)
    return pl.BlockSpec(shape, lambda b: (0,) * n)


# ----------------------------------------------------------------------------- fused forward kernel
def _fused_forward_kernel(x_ref, m_ref, pos_ref, pool_ref, expand_ref, sel_ref,
                          shiftp_ref, shiftn_ref,
                          t_tap, t_w1x, t_w1s, t_b1, t_w2, t_b2, t_w3,
                          d_tap, d_w1x, d_w1s, d_b1, d_w2, d_b2, d_w3,
                          emb_wx, emb_wm,
                          wqkv_ref, wfc_ref, g1_ref, beta1_ref,
                          wff1_ref, bff1_ref, wff2_ref, bff2_ref,
                          g2_ref, beta2_ref, out_w_ref, out_b_ref,
                          rec_ref, imp_ref,
                          *, bt, n_steps, n_layers, n_heads, d_k, d_v, inv_temperature):
    T = n_steps
    R, D = x_ref.shape                     # R = bt * T rows, feature dim on lanes
    bf16 = jnp.bfloat16
    dotf = functools.partial(jnp.dot, preferred_element_type=jnp.float32)

    x = x_ref[...]                         # (R, D) f32, rows ordered (sample-major, time-minor)
    m = m_ref[...]                         # (R, D) f32
    pool = pool_ref[...]                   # (bt, R)  0/1: per-sample row pooling
    expand = expand_ref[...]               # (R, bt)  0/1: per-sample stat broadcast
    sel = sel_ref[...]                     # (H*bt*T, bt) 0/1: (head,sample,query-row) -> sample

    # -------- nonstationary_norm: masked per-sample mean/std via pooling matmuls (MXU) --------
    # (PyPOTS adds eps to the observation count and to the squared-sum before dividing.)
    msum = dotf(pool, m) + 1e-9                            # (bt, D)
    means = dotf(pool, x) / msum                           # (bt, D)
    means_rows = dotf(expand, means)                       # (R, D)
    xc = (x - means_rows) * m
    var = dotf(pool, xc * xc) + 1e-9
    stdev = jnp.sqrt(var / msum)                           # (bt, D)
    stdev_rows = dotf(expand, stdev)                       # (R, D)

    # -------- tau / delta Projectors --------
    # Circular Conv1d(in=T, out=1, k=3, circular pad) over the feature axis: per-tap time
    # contractions are folded into per-sample pooling matmuls (t_tap/d_tap = pool * conv-weights,
    # built host-side), followed by tiny (D, D) +/-1 circular-shift matmuls.
    # NOTE(synk): at realistic D (>=128) the shift matmuls should become pltpu.roll on the XLU;
    # kept as proven (D, D) matmuls here since D=4 lanes is below a lane tile.
    shift_prev = shiftp_ref[...]
    shift_next = shiftn_ref[...]

    def projector(tap_ref, w1x, w1s, b1, w2, b2, w3, stats):
        taps = tap_ref[...]                                # (3, bt, R)
        s0 = dotf(taps[0], x)                              # (bt, D) tap applied to x[.., (e-1)%D]
        s1 = dotf(taps[1], x)
        s2 = dotf(taps[2], x)
        conv = dotf(s0, shift_prev) + s1 + dotf(s2, shift_next)          # (bt, D)
        # backbone MLP on concat([conv_out, stats]) -> first-layer weight split into w1x / w1s
        h = jnp.maximum(dotf(conv, w1x[...]) + dotf(stats, w1s[...]) + b1[...], 0.0)
        h = jnp.maximum(dotf(h, w2[...]) + b2[...], 0.0)
        return dotf(h, w3[...])

    tau = jnp.exp(projector(t_tap, t_w1x, t_w1s, t_b1, t_w2, t_b2, t_w3, stdev))   # (bt, 1)
    delta = projector(d_tap, d_w1x, d_w1s, d_b1, d_w2, d_b2, d_w3, means)          # (bt, T)

    N = n_heads * bt
    # expand per-sample tau/delta to the stacked (head, sample, query-row) score rows via one
    # tiny 0/1 matmul, then split the leading dims (minor dims untouched, T multiple of 8).
    tau3 = dotf(sel, tau).reshape(N, T, 1)                 # (N, T, 1)
    delta3 = dotf(sel, delta).reshape(N, T, T)             # (N, T, T)

    # -------- SaitsEmbedding: concat(X, mask) linear + positional encoding (bf16 MXU) --------
    enc = (dotf(x.astype(bf16), emb_wx[...])
           + dotf(m.astype(bf16), emb_wm[...])
           + pos_ref[...])                                 # (R, d_model) f32

    # PyPOTS default triangular src_mask (torch.triu diagonal=1), broadcast over the stacked batch.
    row = lax.broadcasted_iota(jnp.int32, (T, T), 0)
    col = lax.broadcasted_iota(jnp.int32, (T, T), 1)
    causal = col > row                                     # (T, T) -> broadcast to (N, T, T)

    hdk = n_heads * d_k

    def layer_norm(v, g, b):                               # eps = 1e-5 (nn.LayerNorm default)
        mu = jnp.mean(v, axis=-1, keepdims=True)
        vc = v - mu
        vv = jnp.mean(vc * vc, axis=-1, keepdims=True)
        return vc * lax.rsqrt(vv + 1e-5) * g + b

    # NOTE(synk): static unroll is fine for shallow stacks; for n_layers >~ 4 switch to
    # lax.fori_loop carrying `enc` with dynamic indexing of the stacked weight refs.
    for layer in range(n_layers):
        enc_b = enc.astype(bf16)
        # fused QKV projection: one bf16 matmul on bt*T rows
        qkv = dotf(enc_b, wqkv_ref[layer])                 # (R, 2*hdk + H*d_v) f32
        qs, ks, vs = [], [], []
        for h in range(n_heads):
            qs.append(qkv[:, h * d_k:(h + 1) * d_k].reshape(bt, T, d_k))
            ks.append(qkv[:, hdk + h * d_k: hdk + (h + 1) * d_k].reshape(bt, T, d_k))
            vs.append(qkv[:, 2 * hdk + h * d_v: 2 * hdk + (h + 1) * d_v].reshape(bt, T, d_v))
        q_all = jnp.concatenate(qs, axis=0).astype(bf16)   # (N, T, d_k), n = h*bt + b
        k_all = jnp.concatenate(ks, axis=0).astype(bf16)
        v_all = jnp.concatenate(vs, axis=0).astype(bf16)

        # one batched QK^T over all heads and samples
        scores = lax.dot_general(q_all, k_all, (((2,), (2,)), ((0,), (0,))),
                                 preferred_element_type=jnp.float32)     # (N, T, T)
        # de-stationary rescale + causal mask + softmax applied ONCE on the stacked scores
        scores = scores * tau3 + delta3
        # -1e9 sentinel stands in for PyTorch's -inf masked_fill (applied before temperature)
        scores = jnp.where(causal, jnp.float32(-1e9), scores) * inv_temperature
        scores = scores - jnp.max(scores, axis=-1, keepdims=True)
        p = jnp.exp(scores)
        p = p / jnp.sum(p, axis=-1, keepdims=True)         # exact divide (matches torch softmax)
        o_all = lax.dot_general(p.astype(bf16), v_all, (((2,), (1,)), ((0,), (0,))),
                                preferred_element_type=jnp.float32)      # (N, T, d_v)

        # single head-batched output projection: concat_h(o_h) @ Wfc == sum_h o_h @ Wfc[h]
        o_h = o_all.reshape(n_heads, R, d_v).astype(bf16)                # regroup (head, rows)
        partial = lax.dot_general(o_h, wfc_ref[layer], (((2,), (1,)), ((0,), (0,))),
                                  preferred_element_type=jnp.float32)    # (H, R, d_model)
        attn = partial[0]
        for h in range(1, n_heads):
            attn = attn + partial[h]

        y = layer_norm(attn + enc, g1_ref[layer], beta1_ref[layer])
        z = jnp.maximum(dotf(y.astype(bf16), wff1_ref[layer]) + bff1_ref[layer], 0.0)
        z = dotf(z.astype(bf16), wff2_ref[layer]) + bff2_ref[layer]
        enc = layer_norm(z + y, g2_ref[layer], beta2_ref[layer])

    # -------- output projection + nonstationary_denorm + imputation mix --------
    # NOTE(synk): weights/operands of the big matmuls are bf16 (f32 accumulation); expect ~1e-2
    # relative drift vs. the f32 torch reference.
    rec = dotf(enc.astype(bf16), out_w_ref[...]) + out_b_ref[...]        # (R, D)
    rec = rec * stdev_rows + means_rows
    rec_ref[...] = rec
    # TODO(synk): for tiny n_features on v5e, emit a lane-dense (bt, T*D) output slab instead of
    # 4-lane masked stores.
    imp_ref[...] = m * x + (1.0 - m) * rec


# ----------------------------------------------------------------------------- pallas_call wrapper
def nonstationary_transformer_forward(X, missing_mask, params, block_batch=None):
    B, T, D = X.shape
    H = params["n_heads"]
    d_k, d_v = params["d_k"], params["d_v"]
    f32 = jnp.float32

    # samples per grid block: fill sublanes (aim for >=128 activation rows) while dividing B
    # evenly; keep the resulting grid length even where possible so v7x's two TCs split it.
    bt = block_batch if block_batch is not None else min(B, max(1, 128 // max(T, 1)))
    bt = max(1, min(bt, B))
    while B % bt:
        bt -= 1
    n_blocks = B // bt
    R = bt * T
    N = H * bt

    # ---------------- host-side layout glue (tiny constants, built once per call) ----------------
    X2 = X.reshape(B * T, D).astype(f32)
    M2 = missing_mask.reshape(B * T, D).astype(f32)
    # fold the embedding bias into the positional-encoding table and tile it to bt samples
    pos_rows = jnp.tile((params["pos"] + params["emb_b"]).astype(f32), (bt, 1))     # (R, d_model)

    r_idx = jnp.arange(R)
    b_of_r = r_idx // T
    b_rng = jnp.arange(bt)
    pool = (b_of_r[None, :] == b_rng[:, None]).astype(f32)                          # (bt, R)
    expand = (b_of_r[:, None] == b_rng[None, :]).astype(f32)                        # (R, bt)
    n_of_row = jnp.arange(N * T) // T                                               # n = h*bt + b
    sel = ((n_of_row % bt)[:, None] == b_rng[None, :]).astype(f32)                  # (N*T, bt)

    d_idx = jnp.arange(D)
    # y = x @ shift_prev  ->  y[e] = x[(e-1) % D]   ;   y = x @ shift_next -> y[e] = x[(e+1) % D]
    shift_prev = (d_idx[None, :] == (d_idx[:, None] + 1) % D).astype(f32)           # (D, D)
    shift_next = (d_idx[None, :] == (d_idx[:, None] - 1) % D).astype(f32)           # (D, D)

    def tap_matrices(conv):        # conv: (3, T, 1) tap-major Conv1d weight -> (3, bt, R)
        taps = jnp.tile(conv[:, :, 0], (1, bt))                                     # (3, R)
        return taps[:, None, :] * pool[None, :, :]

    pt, pd = params["tau"], params["delta"]
    arrays = [X2, M2, pos_rows, pool, expand, sel, shift_prev, shift_next,
              tap_matrices(pt["conv"]), pt["w1x"], pt["w1s"], pt["b1"], pt["w2"], pt["b2"], pt["w3"],
              tap_matrices(pd["conv"]), pd["w1x"], pd["w1s"], pd["b1"], pd["w2"], pd["b2"], pd["w3"],
              params["emb_wx"], params["emb_wm"],
              params["wqkv"], params["wfc"], params["g1"], params["beta1"],
              params["wff1"], params["bff1"], params["wff2"], params["bff2"],
              params["g2"], params["beta2"], params["out_w"], params["out_b"]]

    in_specs = [pl.BlockSpec((R, D), lambda i: (i, 0)),
                pl.BlockSpec((R, D), lambda i: (i, 0))] + \
               [_shared_spec(a.shape) for a in arrays[2:]]
    out_shape = (jax.ShapeDtypeStruct((B * T, D), f32),
                 jax.ShapeDtypeStruct((B * T, D), f32))
    out_specs = (pl.BlockSpec((R, D), lambda i: (i, 0)),
                 pl.BlockSpec((R, D), lambda i: (i, 0)))

    kern = functools.partial(_fused_forward_kernel,
                             bt=bt, n_steps=T, n_layers=params["n_layers"], n_heads=H,
                             d_k=d_k, d_v=d_v, inv_temperature=float(1.0 / (d_k ** 0.5)))

    rec2, imp2 = pl.pallas_call(
        kern, grid=(n_blocks,), in_specs=in_specs, out_specs=out_specs, out_shape=out_shape,
        compiler_params=pltpu.CompilerParams(
            dimension_semantics=("parallel",),
            vmem_limit_bytes=64 * 1024 * 1024),
    )(*arrays)

    return {"imputed_data": imp2.reshape(B, T, D),
            "reconstruction": rec2.reshape(B, T, D)}


# ----------------------------------------------------------------------------- parameters (synthetic, deterministic)
def init_params(key, *, n_steps, n_features, n_layers, d_model, n_heads, d_ffn, d_hidden):
    d_k = d_v = d_model // n_heads
    h0, h1 = d_hidden[0], d_hidden[1]
    keys = iter(jax.random.split(key, 64))

    def w(shape, dtype=jnp.float32, scale=0.1):
        return (scale * jax.random.normal(next(keys), shape)).astype(dtype)

    def zeros(shape):
        return jnp.zeros(shape, jnp.float32)

    def ones(shape):
        return jnp.ones(shape, jnp.float32)

    def projector(d_out):
        return {"conv": w((3, n_steps, 1)),              # tap-major Conv1d weight [k, n_steps, 1]
                "w1x": w((n_features, h0)), "w1s": w((n_features, h0)), "b1": zeros((1, h0)),
                "w2": w((h0, h1)), "b2": zeros((1, h1)),
                "w3": w((h1, d_out))}

    L = n_layers
    params = {
        # SaitsEmbedding (matmul operands in bf16; bias / pos table in f32)
        "emb_wx": w((n_features, d_model), jnp.bfloat16),
        "emb_wm": w((n_features, d_model), jnp.bfloat16),
        "emb_b": zeros((1, d_model)),
        # tau / delta projectors (kept f32: tau is exponentiated, delta is added to scores)
        "tau": projector(1), "delta": projector(n_steps),
        # per-layer stacks: fused [Q | K | V] along the last axis; Wfc pre-split per head
        "wqkv": w((L, d_model, n_heads * (2 * d_k + d_v)), jnp.bfloat16),
        "wfc": w((L, n_heads, d_v, d_model), jnp.bfloat16),
        "g1": ones((L, 1, d_model)), "beta1": zeros((L, 1, d_model)),
        "wff1": w((L, d_model, d_ffn), jnp.bfloat16), "bff1": zeros((L, 1, d_ffn)),
        "wff2": w((L, d_ffn, d_model), jnp.bfloat16), "bff2": zeros((L, 1, d_model)),
        "g2": ones((L, 1, d_model)), "beta2": zeros((L, 1, d_model)),
        "out_w": w((d_model, n_features), jnp.bfloat16), "out_b": zeros((1, n_features)),
        "n_layers": n_layers, "n_heads": n_heads, "d_k": d_k, "d_v": d_v,
    }

    # SAITS sinusoidal positional encoding table (first n_steps rows)
    position = jnp.arange(n_steps, dtype=jnp.float32)[:, None]
    div_term = jnp.exp(jnp.arange(0, d_model, 2, dtype=jnp.float32) * (-jnp.log(10000.0) / d_model))
    pe = jnp.zeros((n_steps, d_model), jnp.float32)
    pe = pe.at[:, 0::2].set(jnp.sin(position * div_term))
    pe = pe.at[:, 1::2].set(jnp.cos(position * div_term))
    params["pos"] = pe
    return params


# ----------------------------------------------------------------------------- main
if __name__ == "__main__":
    B, T, D = 4, 8, 4                        # batch, n_steps, n_features
    n_layers, d_model, n_heads, d_ffn = 2, 32, 2, 32
    d_projector_hidden = [16, 16]            # n_projector_hidden_layers = 2

    key = jax.random.PRNGKey(0)
    kx, km, kp = jax.random.split(key, 3)
    X_full = jax.random.normal(kx, (B, T, D), dtype=jnp.float32)
    missing_mask = (jax.random.uniform(km, (B, T, D)) > 0.3).astype(jnp.float32)
    missing_mask = missing_mask.at[:, 0, :].set(1.0)   # at least one observation per series
    X = X_full * missing_mask                          # PyPOTS convention: missing entries are 0

    params = init_params(kp, n_steps=T, n_features=D, n_layers=n_layers,
                         d_model=d_model, n_heads=n_heads, d_ffn=d_ffn,
                         d_hidden=d_projector_hidden)

    # block_batch=2 -> 2 samples (16 activation rows) per grid step, grid of length 2
    results = nonstationary_transformer_forward(X, missing_mask, params, block_batch=2)
    imputed = jax.block_until_ready(results["imputed_data"])

    assert imputed.shape == (B, T, D)
    assert bool(jnp.all(jnp.isfinite(imputed)))
    # observed values must pass through unchanged
    assert bool(jnp.allclose(jnp.where(missing_mask == 1, imputed, 0.0),
                             jnp.where(missing_mask == 1, X, 0.0), atol=1e-5))
    print("KERNEL_OK")
</pallas_src>

<mosaic_0001>
module attributes {stable_mosaic.version = 11 : i64} {
  func.func @_fused_forward_kernel(%arg0: i32, %arg1: memref<16x4xf32, #tpu.memory_space<vmem>>, %arg2: memref<16x4xf32, #tpu.memory_space<vmem>>, %arg3: memref<16x32xf32, #tpu.memory_space<vmem>>, %arg4: memref<2x16xf32, #tpu.memory_space<vmem>>, %arg5: memref<16x2xf32, #tpu.memory_space<vmem>>, %arg6: memref<32x2xf32, #tpu.memory_space<vmem>>, %arg7: memref<4x4xf32, #tpu.memory_space<vmem>>, %arg8: memref<4x4xf32, #tpu.memory_space<vmem>>, %arg9: memref<3x2x16xf32, #tpu.memory_space<vmem>>, %arg10: memref<4x16xf32, #tpu.memory_space<vmem>>, %arg11: memref<4x16xf32, #tpu.memory_space<vmem>>, %arg12: memref<1x16xf32, #tpu.memory_space<vmem>>, %arg13: memref<16x16xf32, #tpu.memory_space<vmem>>, %arg14: memref<1x16xf32, #tpu.memory_space<vmem>>, %arg15: memref<16x1xf32, #tpu.memory_space<vmem>>, %arg16: memref<3x2x16xf32, #tpu.memory_space<vmem>>, %arg17: memref<4x16xf32, #tpu.memory_space<vmem>>, %arg18: memref<4x16xf32, #tpu.memory_space<vmem>>, %arg19: memref<1x16xf32, #tpu.memory_space<vmem>>, %arg20: memref<16x16xf32, #tpu.memory_space<vmem>>, %arg21: memref<1x16xf32, #tpu.memory_space<vmem>>, %arg22: memref<16x8xf32, #tpu.memory_space<vmem>>, %arg23: memref<4x32xbf16, #tpu.memory_space<vmem>>, %arg24: memref<4x32xbf16, #tpu.memory_space<vmem>>, %arg25: memref<2x32x96xbf16, #tpu.memory_space<vmem>>, %arg26: memref<2x2x16x32xbf16, #tpu.memory_space<vmem>>, %arg27: memref<2x1x32xf32, #tpu.memory_space<vmem>>, %arg28: memref<2x1x32xf32, #tpu.memory_space<vmem>>, %arg29: memref<2x32x32xbf16, #tpu.memory_space<vmem>>, %arg30: memref<2x1x32xf32, #tpu.memory_space<vmem>>, %arg31: memref<2x32x32xbf16, #tpu.memory_space<vmem>>, %arg32: memref<2x1x32xf32, #tpu.memory_space<vmem>>, %arg33: memref<2x1x32xf32, #tpu.memory_space<vmem>>, %arg34: memref<2x1x32xf32, #tpu.memory_space<vmem>>, %arg35: memref<32x4xbf16, #tpu.memory_space<vmem>>, %arg36: memref<1x4xf32, #tpu.memory_space<vmem>>, %arg37: memref<16x4xf32, #tpu.memory_space<vmem>>, %arg38: memref<16x4xf32, #tpu.memory_space<vmem>>) attributes {dimension_semantics = [#tpu.dimension_semantics<parallel>], iteration_bounds = array<i64: 2>, scalar_prefetch = 0 : i64, scratch_operands = 0 : i64, tpu.core_type = #tpu.core_type<tc>, window_params = [{transform_indices = @transform_0, window_bounds = array<i64: 16, 4>}, {transform_indices = @transform_1, window_bounds = array<i64: 16, 4>}, {pipeline_mode = #tpu.pipeline_mode<synchronous>, transform_indices = @transform_2, window_bounds = array<i64: 16, 32>}, {pipeline_mode = #tpu.pipeline_mode<synchronous>, transform_indices = @transform_3, window_bounds = array<i64: 2, 16>}, {pipeline_mode = #tpu.pipeline_mode<synchronous>, transform_indices = @transform_4, window_bounds = array<i64: 16, 2>}, {pipeline_mode = #tpu.pipeline_mode<synchronous>, transform_indices = @transform_5, window_bounds = array<i64: 32, 2>}, {pipeline_mode = #tpu.pipeline_mode<synchronous>, transform_indices = @transform_6, window_bounds = array<i64: 4, 4>}, {pipeline_mode = #tpu.pipeline_mode<synchronous>, transform_indices = @transform_7, window_bounds = array<i64: 4, 4>}, {pipeline_mode = #tpu.pipeline_mode<synchronous>, transform_indices = @transform_8, window_bounds = array<i64: 3, 2, 16>}, {pipeline_mode = #tpu.pipeline_mode<synchronous>, transform_indices = @transform_9, window_bounds = array<i64: 4, 16>}, {pipeline_mode = #tpu.pipeline_mode<synchronous>, transform_indices = @transform_10, window_bounds = array<i64: 4, 16>}, {pipeline_mode = #tpu.pipeline_mode<synchronous>, transform_indices = @transform_11, window_bounds = array<i64: 1, 16>}, {pipeline_mode = #tpu.pipeline_mode<synchronous>, transform_indices = @transform_12, window_bounds = array<i64: 16, 16>}, {pipeline_mode = #tpu.pipeline_mode<synchronous>, transform_indices = @transform_13, window_bounds = array<i64: 1, 16>}, {pipeline_mode = #tpu.pipeline_mode<synchronous>, transform_indices = @transform_14, window_bounds = array<i64: 16, 1>}, {pipeline_mode = #tpu.pipeline_mode<synchronous>, transform_indices = @transform_15, window_bounds = array<i64: 3, 2, 16>}, {pipeline_mode = #tpu.pipeline_mode<synchronous>, transform_indices = @transform_16, window_bounds = array<i64: 4, 16>}, {pipeline_mode = #tpu.pipeline_mode<synchronous>, transform_indices = @transform_17, window_bounds = array<i64: 4, 16>}, {pipeline_mode = #tpu.pipeline_mode<synchronous>, transform_indices = @transform_18, window_bounds = array<i64: 1, 16>}, {pipeline_mode = #tpu.pipeline_mode<synchronous>, transform_indices = @transform_19, window_bounds = array<i64: 16, 16>}, {pipeline_mode = #tpu.pipeline_mode<synchronous>, transform_indices = @transform_20, window_bounds = array<i64: 1, 16>}, {pipeline_mode = #tpu.pipeline_mode<synchronous>, transform_indices = @transform_21, window_bounds = array<i64: 16, 8>}, {pipeline_mode = #tpu.pipeline_mode<synchronous>, transform_indices = @transform_22, window_bounds = array<i64: 4, 32>}, {pipeline_mode = #tpu.pipeline_mode<synchronous>, transform_indices = @transform_23, window_bounds = array<i64: 4, 32>}, {pipeline_mode = #tpu.pipeline_mode<synchronous>, transform_indices = @transform_24, window_bounds = array<i64: 2, 32, 96>}, {pipeline_mode = #tpu.pipeline_mode<synchronous>, transform_indices = @transform_25, window_bounds = array<i64: 2, 2, 16, 32>}, {pipeline_mode = #tpu.pipeline_mode<synchronous>, transform_indices = @transform_26, window_bounds = array<i64: 2, 1, 32>}, {pipeline_mode = #tpu.pipeline_mode<synchronous>, transform_indices = @transform_27, window_bounds = array<i64: 2, 1, 32>}, {pipeline_mode = #tpu.pipeline_mode<synchronous>, transform_indices = @transform_28, window_bounds = array<i64: 2, 32, 32>}, {pipeline_mode = #tpu.pipeline_mode<synchronous>, transform_indices = @transform_29, window_bounds = array<i64: 2, 1, 32>}, {pipeline_mode = #tpu.pipeline_mode<synchronous>, transform_indices = @transform_30, window_bounds = array<i64: 2, 32, 32>}, {pipeline_mode = #tpu.pipeline_mode<synchronous>, transform_indices = @transform_31, window_bounds = array<i64: 2, 1, 32>}, {pipeline_mode = #tpu.pipeline_mode<synchronous>, transform_indices = @transform_32, window_bounds = array<i64: 2, 1, 32>}, {pipeline_mode = #tpu.pipeline_mode<synchronous>, transform_indices = @transform_33, window_bounds = array<i64: 2, 1, 32>}, {pipeline_mode = #tpu.pipeline_mode<synchronous>, transform_indices = @transform_34, window_bounds = array<i64: 32, 4>}, {pipeline_mode = #tpu.pipeline_mode<synchronous>, transform_indices = @transform_35, window_bounds = array<i64: 1, 4>}, {transform_indices = @transform_36, window_bounds = array<i64: 16, 4>}, {transform_indices = @transform_37, window_bounds = array<i64: 16, 4>}]} {
    %c0 = arith.constant 0 : index
    %c0_0 = arith.constant 0 : index
    %0 = vector.load %arg1[%c0, %c0_0] : memref<16x4xf32, #tpu.memory_space<vmem>>, vector<16x4xf32>
    %c0_1 = arith.constant 0 : index
    %c0_2 = arith.constant 0 : index
    %1 = vector.load %arg2[%c0_1, %c0_2] : memref<16x4xf32, #tpu.memory_space<vmem>>, vector<16x4xf32>
    %c0_3 = arith.constant 0 : index
    %c0_4 = arith.constant 0 : index
    %2 = vector.load %arg4[%c0_3, %c0_4] : memref<2x16xf32, #tpu.memory_space<vmem>>, vector<2x16xf32>
    %c0_5 = arith.constant 0 : index
    %c0_6 = arith.constant 0 : index
    %3 = vector.load %arg5[%c0_5, %c0_6] : memref<16x2xf32, #tpu.memory_space<vmem>>, vector<16x2xf32>
    %c0_7 = arith.constant 0 : index
    %c0_8 = arith.constant 0 : index
    %4 = vector.load %arg6[%c0_7, %c0_8] : memref<32x2xf32, #tpu.memory_space<vmem>>, vector<32x2xf32>
    %cst = arith.constant dense<0.000000e+00> : vector<2x4xf32>
    %5 = tpu.matmul %2, %1, %cst {dimension_numbers = #tpu.dot_dimension_numbers<[1], [0], [0], [1], [0, 0, 1, 1], [], []>} : vector<2x16xf32>, vector<16x4xf32>, vector<2x4xf32> -> vector<2x4xf32>
    %cst_9 = arith.constant 9.99999971E-10 : f32
    %6 = vector.broadcast %cst_9 : f32 to vector<2x4xf32>
    %7 = arith.addf %5, %6 : vector<2x4xf32>
    %cst_10 = arith.constant dense<0.000000e+00> : vector<2x4xf32>
    %8 = tpu.matmul %2, %0, %cst_10 {dimension_numbers = #tpu.dot_dimension_numbers<[1], [0], [0], [1], [0, 0, 1, 1], [], []>} : vector<2x16xf32>, vector<16x4xf32>, vector<2x4xf32> -> vector<2x4xf32>
    %9 = arith.divf %8, %7 : vector<2x4xf32>
    %cst_11 = arith.constant dense<0.000000e+00> : vector<16x4xf32>
    %10 = tpu.matmul %3, %9, %cst_11 {dimension_numbers = #tpu.dot_dimension_numbers<[1], [0], [0], [1], [0, 0, 1, 1], [], []>} : vector<16x2xf32>, vector<2x4xf32>, vector<16x4xf32> -> vector<16x4xf32>
    %11 = arith.subf %0, %10 : vector<16x4xf32>
    %12 = arith.mulf %11, %1 : vector<16x4xf32>
    %13 = arith.mulf %12, %12 : vector<16x4xf32>
    %cst_12 = arith.constant dense<0.000000e+00> : vector<2x4xf32>
    %14 = tpu.matmul %2, %13, %cst_12 {dimension_numbers = #tpu.dot_dimension_numbers<[1], [0], [0], [1], [0, 0, 1, 1], [], []>} : vector<2x16xf32>, vector<16x4xf32>, vector<2x4xf32> -> vector<2x4xf32>
    %cst_13 = arith.constant 9.99999971E-10 : f32
    %15 = vector.broadcast %cst_13 : f32 to vector<2x4xf32>
    %16 = arith.addf %14, %15 : vector<2x4xf32>
    %17 = arith.divf %16, %7 : vector<2x4xf32>
    %18 = math.sqrt %17 : vector<2x4xf32>
    %cst_14 = arith.constant dense<0.000000e+00> : vector<16x4xf32>
    %19 = tpu.matmul %3, %18, %cst_14 {dimension_numbers = #tpu.dot_dimension_numbers<[1], [0], [0], [1], [0, 0, 1, 1], [], []>} : vector<16x2xf32>, vector<2x4xf32>, vector<16x4xf32> -> vector<16x4xf32>
    %c0_15 = arith.constant 0 : index
    %c0_16 = arith.constant 0 : index
    %20 = vector.load %arg7[%c0_15, %c0_16] : memref<4x4xf32, #tpu.memory_space<vmem>>, vector<4x4xf32>
    %c0_17 = arith.constant 0 : index
    %c0_18 = arith.constant 0 : index
    %21 = vector.load %arg8[%c0_17, %c0_18] : memref<4x4xf32, #tpu.memory_space<vmem>>, vector<4x4xf32>
    %c0_19 = arith.constant 0 : index
    %c0_20 = arith.constant 0 : index
    %c0_21 = arith.constant 0 : index
    %22 = vector.load %arg9[%c0_19, %c0_20, %c0_21] : memref<3x2x16xf32, #tpu.memory_space<vmem>>, vector<3x2x16xf32>
    %23 = vector.extract_strided_slice %22 {offsets = [0, 0, 0], sizes = [1, 2, 16], strides = [1, 1, 1]} : vector<3x2x16xf32> to vector<1x2x16xf32>
    %24 = vector.shape_cast %23 : vector<1x2x16xf32> to vector<2x16xf32>
    %cst_22 = arith.constant dense<0.000000e+00> : vector<2x4xf32>
    %25 = tpu.matmul %24, %0, %cst_22 {dimension_numbers = #tpu.dot_dimension_numbers<[1], [0], [0], [1], [0, 0, 1, 1], [], []>} : vector<2x16xf32>, vector<16x4xf32>, vector<2x4xf32> -> vector<2x4xf32>
    %26 = vector.extract_strided_slice %22 {offsets = [1, 0, 0], sizes = [1, 2, 16], strides = [1, 1, 1]} : vector<3x2x16xf32> to vector<1x2x16xf32>
    %27 = vector.shape_cast %26 : vector<1x2x16xf32> to vector<2x16xf32>
    %cst_23 = arith.constant dense<0.000000e+00> : vector<2x4xf32>
    %28 = tpu.matmul %27, %0, %cst_23 {dimension_numbers = #tpu.dot_dimension_numbers<[1], [0], [0], [1], [0, 0, 1, 1], [], []>} : vector<2x16xf32>, vector<16x4xf32>, vector<2x4xf32> -> vector<2x4xf32>
    %29 = vector.extract_strided_slice %22 {offsets = [2, 0, 0], sizes = [1, 2, 16], strides = [1, 1, 1]} : vector<3x2x16xf32> to vector<1x2x16xf32>
    %30 = vector.shape_cast %29 : vector<1x2x16xf32> to vector<2x16xf32>
    %cst_24 = arith.constant dense<0.000000e+00> : vector<2x4xf32>
    %31 = tpu.matmul %30, %0, %cst_24 {dimension_numbers = #tpu.dot_dimension_numbers<[1], [0], [0], [1], [0, 0, 1, 1], [], []>} : vector<2x16xf32>, vector<16x4xf32>, vector<2x4xf32> -> vector<2x4xf32>
    %cst_25 = arith.constant dense<0.000000e+00> : vector<2x4xf32>
    %32 = tpu.matmul %25, %20, %cst_25 {dimension_numbers = #tpu.dot_dimension_numbers<[1], [0], [0], [1], [0, 0, 1, 1], [], []>} : vector<2x4xf32>, vector<4x4xf32>, vector<2x4xf32> -> vector<2x4xf32>
    %33 = arith.addf %32, %28 : vector<2x4xf32>
    %cst_26 = arith.constant dense<0.000000e+00> : vector<2x4xf32>
    %34 = tpu.matmul %31, %21, %cst_26 {dimension_numbers = #tpu.dot_dimension_numbers<[1], [0], [0], [1], [0, 0, 1, 1], [], []>} : vector<2x4xf32>, vector<4x4xf32>, vector<2x4xf32> -> vector<2x4xf32>
    %35 = arith.addf %33, %34 : vector<2x4xf32>
    %c0_27 = arith.constant 0 : index
    %c0_28 = arith.constant 0 : index
    %36 = vector.load %arg10[%c0_27, %c0_28] : memref<4x16xf32, #tpu.memory_space<vmem>>, vector<4x16xf32>
    %cst_29 = arith.constant dense<0.000000e+00> : vector<2x16xf32>
    %37 = tpu.matmul %35, %36, %cst_29 {dimension_numbers = #tpu.dot_dimension_numbers<[1], [0], [0], [1], [0, 0, 1, 1], [], []>} : vector<2x4xf32>, vector<4x16xf32>, vector<2x16xf32> -> vector<2x16xf32>
    %c0_30 = arith.constant 0 : index
    %c0_31 = arith.constant 0 : index
    %38 = vector.load %arg11[%c0_30, %c0_31] : memref<4x16xf32, #tpu.memory_space<vmem>>, vector<4x16xf32>
    %cst_32 = arith.constant dense<0.000000e+00> : vector<2x16xf32>
    %39 = tpu.matmul %18, %38, %cst_32 {dimension_numbers = #tpu.dot_dimension_numbers<[1], [0], [0], [1], [0, 0, 1, 1], [], []>} : vector<2x4xf32>, vector<4x16xf32>, vector<2x16xf32> -> vector<2x16xf32>
    %40 = arith.addf %37, %39 : vector<2x16xf32>
    %c0_33 = arith.constant 0 : index
    %c0_34 = arith.constant 0 : index
    %41 = vector.load %arg12[%c0_33, %c0_34] : memref<1x16xf32, #tpu.memory_space<vmem>>, vector<1x16xf32>
    %42 = vector.broadcast %41 : vector<1x16xf32> to vector<2x16xf32>
    %43 = arith.addf %40, %42 : vector<2x16xf32>
    %cst_35 = arith.constant 0.000000e+00 : f32
    %44 = vector.broadcast %cst_35 : f32 to vector<2x16xf32>
    %45 = arith.maximumf %43, %44 : vector<2x16xf32>
    %c0_36 = arith.constant 0 : index
    %c0_37 = arith.constant 0 : index
    %46 = vector.load %arg13[%c0_36, %c0_37] : memref<16x16xf32, #tpu.memory_space<vmem>>, vector<16x16xf32>
    %cst_38 = arith.constant dense<0.000000e+00> : vector<2x16xf32>
    %47 = tpu.matmul %45, %46, %cst_38 {dimension_numbers = #tpu.dot_dimension_numbers<[1], [0], [0], [1], [0, 0, 1, 1], [], []>} : vector<2x16xf32>, vector<16x16xf32>, vector<2x16xf32> -> vector<2x16xf32>
    %c0_39 = arith.constant 0 : index
    %c0_40 = arith.constant 0 : index
    %48 = vector.load %arg14[%c0_39, %c0_40] : memref<1x16xf32, #tpu.memory_space<vmem>>, vector<1x16xf32>
    %49 = vector.broadcast %48 : vector<1x16xf32> to vector<2x16xf32>
    %50 = arith.addf %47, %49 : vector<2x16xf32>
    %cst_41 = arith.constant 0.000000e+00 : f32
    %51 = vector.broadcast %cst_41 : f32 to vector<2x16xf32>
    %52 = arith.maximumf %50, %51 : vector<2x16xf32>
    %c0_42 = arith.constant 0 : index
    %c0_43 = arith.constant 0 : index
    %53 = vector.load %arg15[%c0_42, %c0_43] : memref<16x1xf32, #tpu.memory_space<vmem>>, vector<16x1xf32>
    %cst_44 = arith.constant dense<0.000000e+00> : vector<2x1xf32>
    %54 = tpu.matmul %52, %53, %cst_44 {dimension_numbers = #tpu.dot_dimension_numbers<[1], [0], [0], [1], [0, 0, 1, 1], [], []>} : vector<2x16xf32>, vector<16x1xf32>, vector<2x1xf32> -> vector<2x1xf32>
    %55 = math.exp %54 : vector<2x1xf32>
    %c0_45 = arith.constant 0 : index
    %c0_46 = arith.constant 0 : index
    %c0_47 = arith.constant 0 : index
    %56 = vector.load %arg16[%c0_45, %c0_46, %c0_47] : memref<3x2x16xf32, #tpu.memory_space<vmem>>, vector<3x2x16xf32>
    %57 = vector.extract_strided_slice %56 {offsets = [0, 0, 0], sizes = [1, 2, 16], strides = [1, 1, 1]} : vector<3x2x16xf32> to vector<1x2x16xf32>
    %58 = vector.shape_cast %57 : vector<1x2x16xf32> to vector<2x16xf32>
    %cst_48 = arith.constant dense<0.000000e+00> : vector<2x4xf32>
    %59 = tpu.matmul %58, %0, %cst_48 {dimension_numbers = #tpu.dot_dimension_numbers<[1], [0], [0], [1], [0, 0, 1, 1], [], []>} : vector<2x16xf32>, vector<16x4xf32>, vector<2x4xf32> -> vector<2x4xf32>
    %60 = vector.extract_strided_slice %56 {offsets = [1, 0, 0], sizes = [1, 2, 16], strides = [1, 1, 1]} : vector<3x2x16xf32> to vector<1x2x16xf32>
    %61 = vector.shape_cast %60 : vector<1x2x16xf32> to vector<2x16xf32>
    %cst_49 = arith.constant dense<0.000000e+00> : vector<2x4xf32>
    %62 = tpu.matmul %61, %0, %cst_49 {dimension_numbers = #tpu.dot_dimension_numbers<[1], [0], [0], [1], [0, 0, 1, 1], [], []>} : vector<2x16xf32>, vector<16x4xf32>, vector<2x4xf32> -> vector<2x4xf32>
    %63 = vector.extract_strided_slice %56 {offsets = [2, 0, 0], sizes = [1, 2, 16], strides = [1, 1, 1]} : vector<3x2x16xf32> to vector<1x2x16xf32>
    %64 = vector.shape_cast %63 : vector<1x2x16xf32> to vector<2x16xf32>
    %cst_50 = arith.constant dense<0.000000e+00> : vector<2x4xf32>
    %65 = tpu.matmul %64, %0, %cst_50 {dimension_numbers = #tpu.dot_dimension_numbers<[1], [0], [0], [1], [0, 0, 1, 1], [], []>} : vector<2x16xf32>, vector<16x4xf32>, vector<2x4xf32> -> vector<2x4xf32>
    %cst_51 = arith.constant dense<0.000000e+00> : vector<2x4xf32>
    %66 = tpu.matmul %59, %20, %cst_51 {dimension_numbers = #tpu.dot_dimension_numbers<[1], [0], [0], [1], [0, 0, 1, 1], [], []>} : vector<2x4xf32>, vector<4x4xf32>, vector<2x4xf32> -> vector<2x4xf32>
    %67 = arith.addf %66, %62 : vector<2x4xf32>
    %cst_52 = arith.constant dense<0.000000e+00> : vector<2x4xf32>
    %68 = tpu.matmul %65, %21, %cst_52 {dimension_numbers = #tpu.dot_dimension_numbers<[1], [0], [0], [1], [0, 0, 1, 1], [], []>} : vector<2x4xf32>, vector<4x4xf32>, vector<2x4xf32> -> vector<2x4xf32>
    %69 = arith.addf %67, %68 : vector<2x4xf32>
    %c0_53 = arith.constant 0 : index
    %c0_54 = arith.constant 0 : index
    %70 = vector.load %arg17[%c0_53, %c0_54] : memref<4x16xf32, #tpu.memory_space<vmem>>, vector<4x16xf32>
    %cst_55 = arith.constant dense<0.000000e+00> : vector<2x16xf32>
    %71 = tpu.matmul %69, %70, %cst_55 {dimension_numbers = #tpu.dot_dimension_numbers<[1], [0], [0], [1], [0, 0, 1, 1], [], []>} : vector<2x4xf32>, vector<4x16xf32>, vector<2x16xf32> -> vector<2x16xf32>
    %c0_56 = arith.constant 0 : index
    %c0_57 = arith.constant 0 : index
    %72 = vector.load %arg18[%c0_56, %c0_57] : memref<4x16xf32, #tpu.memory_space<vmem>>, vector<4x16xf32>
    %cst_58 = arith.constant dense<0.000000e+00> : vector<2x16xf32>
    %73 = tpu.matmul %9, %72, %cst_58 {dimension_numbers = #tpu.dot_dimension_numbers<[1], [0], [0], [1], [0, 0, 1, 1], [], []>} : vector<2x4xf32>, vector<4x16xf32>, vector<2x16xf32> -> vector<2x16xf32>
    %74 = arith.addf %71, %73 : vector<2x16xf32>
    %c0_59 = arith.constant 0 : index
    %c0_60 = arith.constant 0 : index
    %75 = vector.load %arg19[%c0_59, %c0_60] : memref<1x16xf32, #tpu.memory_space<vmem>>, vector<1x16xf32>
    %76 = vector.broadcast %75 : vector<1x16xf32> to vector<2x16xf32>
    %77 = arith.addf %74, %76 : vector<2x16xf32>
    %cst_61 = arith.constant 0.000000e+00 : f32
    %78 = vector.broadcast %cst_61 : f32 to vector<2x16xf32>
    %79 = arith.maximumf %77, %78 : vector<2x16xf32>
    %c0_62 = arith.constant 0 : index
    %c0_63 = arith.constant 0 : index
    %80 = vector.load %arg20[%c0_62, %c0_63] : memref<16x16xf32, #tpu.memory_space<vmem>>, vector<16x16xf32>
    %cst_64 = arith.constant dense<0.000000e+00> : vector<2x16xf32>
    %81 = tpu.matmul %79, %80, %cst_64 {dimension_numbers = #tpu.dot_dimension_numbers<[1], [0], [0], [1], [0, 0, 1, 1], [], []>} : vector<2x16xf32>, vector<16x16xf32>, vector<2x16xf32> -> vector<2x16xf32>
    %c0_65 = arith.constant 0 : index
    %c0_66 = arith.constant 0 : index
    %82 = vector.load %arg21[%c0_65, %c0_66] : memref<1x16xf32, #tpu.memory_space<vmem>>, vector<1x16xf32>
    %83 = vector.broadcast %82 : vector<1x16xf32> to vector<2x16xf32>
    %84 = arith.addf %81, %83 : vector<2x16xf32>
    %cst_67 = arith.constant 0.000000e+00 : f32
    %85 = vector.broadcast %cst_67 : f32 to vector<2x16xf32>
    %86 = arith.maximumf %84, %85 : vector<2x16xf32>
    %c0_68 = arith.constant 0 : index
    %c0_69 = arith.constant 0 : index
    %87 = vector.load %arg22[%c0_68, %c0_69] : memref<16x8xf32, #tpu.memory_space<vmem>>, vector<16x8xf32>
    %cst_70 = arith.constant dense<0.000000e+00> : vector<2x8xf32>
    %88 = tpu.matmul %86, %87, %cst_70 {dimension_numbers = #tpu.dot_dimension_numbers<[1], [0], [0], [1], [0, 0, 1, 1], [], []>} : vector<2x16xf32>, vector<16x8xf32>, vector<2x8xf32> -> vector<2x8xf32>
    %cst_71 = arith.constant dense<0.000000e+00> : vector<32x1xf32>
    %89 = tpu.matmul %4, %55, %cst_71 {dimension_numbers = #tpu.dot_dimension_numbers<[1], [0], [0], [1], [0, 0, 1, 1], [], []>} : vector<32x2xf32>, vector<2x1xf32>, vector<32x1xf32> -> vector<32x1xf32>
    %90 = vector.shape_cast %89 : vector<32x1xf32> to vector<4x8x1xf32>
    %cst_72 = arith.constant dense<0.000000e+00> : vector<32x8xf32>
    %91 = tpu.matmul %4, %88, %cst_72 {dimension_numbers = #tpu.dot_dimension_numbers<[1], [0], [0], [1], [0, 0, 1, 1], [], []>} : vector<32x2xf32>, vector<2x8xf32>, vector<32x8xf32> -> vector<32x8xf32>
    %92 = vector.shape_cast %91 : vector<32x8xf32> to vector<4x8x8xf32>
    %93 = arith.truncf %0 : vector<16x4xf32> to vector<16x4xbf16>
    %c0_73 = arith.constant 0 : index
    %c0_74 = arith.constant 0 : index
    %94 = vector.load %arg23[%c0_73, %c0_74] : memref<4x32xbf16, #tpu.memory_space<vmem>>, vector<4x32xbf16>
    %cst_75 = arith.constant dense<0.000000e+00> : vector<16x32xf32>
    %95 = tpu.matmul %93, %94, %cst_75 {dimension_numbers = #tpu.dot_dimension_numbers<[1], [0], [0], [1], [0, 0, 1, 1], [], []>} : vector<16x4xbf16>, vector<4x32xbf16>, vector<16x32xf32> -> vector<16x32xf32>
    %96 = arith.truncf %1 : vector<16x4xf32> to vector<16x4xbf16>
    %c0_76 = arith.constant 0 : index
    %c0_77 = arith.constant 0 : index
    %97 = vector.load %arg24[%c0_76, %c0_77] : memref<4x32xbf16, #tpu.memory_space<vmem>>, vector<4x32xbf16>
    %cst_78 = arith.constant dense<0.000000e+00> : vector<16x32xf32>
    %98 = tpu.matmul %96, %97, %cst_78 {dimension_numbers = #tpu.dot_dimension_numbers<[1], [0], [0], [1], [0, 0, 1, 1], [], []>} : vector<16x4xbf16>, vector<4x32xbf16>, vector<16x32xf32> -> vector<16x32xf32>
    %99 = arith.addf %95, %98 : vector<16x32xf32>
    %c0_79 = arith.constant 0 : index
    %c0_80 = arith.constant 0 : index
    %100 = vector.load %arg3[%c0_79, %c0_80] : memref<16x32xf32, #tpu.memory_space<vmem>>, vector<16x32xf32>
    %101 = arith.addf %99, %100 : vector<16x32xf32>
    %102 = tpu.iota {dimensions = array<i32: 0>} : vector<8x8xi32>
    %103 = tpu.iota {dimensions = array<i32: 1>} : vector<8x8xi32>
    %104 = arith.cmpi sgt, %103, %102 : vector<8x8xi32>
    %105 = arith.truncf %101 : vector<16x32xf32> to vector<16x32xbf16>
    %c0_81 = arith.constant 0 : index
    %c0_82 = arith.constant 0 : index
    %c0_83 = arith.constant 0 : index
    %106 = vector.load %arg25[%c0_81, %c0_82, %c0_83] : memref<2x32x96xbf16, #tpu.memory_space<vmem>>, vector<1x32x96xbf16>
    %107 = vector.shape_cast %106 : vector<1x32x96xbf16> to vector<32x96xbf16>
    %cst_84 = arith.constant dense<0.000000e+00> : vector<16x96xf32>
    %108 = tpu.matmul %105, %107, %cst_84 {dimension_numbers = #tpu.dot_dimension_numbers<[1], [0], [0], [1], [0, 0, 1, 1], [], []>} : vector<16x32xbf16>, vector<32x96xbf16>, vector<16x96xf32> -> vector<16x96xf32>
    %109 = vector.extract_strided_slice %108 {offsets = [0, 0], sizes = [16, 16], strides = [1, 1]} : vector<16x96xf32> to vector<16x16xf32>
    %110 = vector.shape_cast %109 : vector<16x16xf32> to vector<2x8x16xf32>
    %111 = vector.extract_strided_slice %108 {offsets = [0, 32], sizes = [16, 16], strides = [1, 1]} : vector<16x96xf32> to vector<16x16xf32>
    %112 = vector.shape_cast %111 : vector<16x16xf32> to vector<2x8x16xf32>
    %113 = vector.extract_strided_slice %108 {offsets = [0, 64], sizes = [16, 16], strides = [1, 1]} : vector<16x96xf32> to vector<16x16xf32>
    %114 = vector.shape_cast %113 : vector<16x16xf32> to vector<2x8x16xf32>
    %115 = vector.extract_strided_slice %108 {offsets = [0, 16], sizes = [16, 16], strides = [1, 1]} : vector<16x96xf32> to vector<16x16xf32>
    %116 = vector.shape_cast %115 : vector<16x16xf32> to vector<2x8x16xf32>
    %117 = vector.extract_strided_slice %108 {offsets = [0, 48], sizes = [16, 16], strides = [1, 1]} : vector<16x96xf32> to vector<16x16xf32>
    %118 = vector.shape_cast %117 : vector<16x16xf32> to vector<2x8x16xf32>
    %119 = vector.extract_strided_slice %108 {offsets = [0, 80], sizes = [16, 16], strides = [1, 1]} : vector<16x96xf32> to vector<16x16xf32>
    %120 = vector.shape_cast %119 : vector<16x16xf32> to vector<2x8x16xf32>
    %121 = tpu.concatenate %110, %116 in 0 : vector<2x8x16xf32>, vector<2x8x16xf32> -> vector<4x8x16xf32>
    %122 = arith.truncf %121 : vector<4x8x16xf32> to vector<4x8x16xbf16>
    %123 = tpu.concatenate %112, %118 in 0 : vector<2x8x16xf32>, vector<2x8x16xf32> -> vector<4x8x16xf32>
    %124 = arith.truncf %123 : vector<4x8x16xf32> to vector<4x8x16xbf16>
    %125 = tpu.concatenate %114, %120 in 0 : vector<2x8x16xf32>, vector<2x8x16xf32> -> vector<4x8x16xf32>
    %126 = arith.truncf %125 : vector<4x8x16xf32> to vector<4x8x16xbf16>
    %cst_85 = arith.constant dense<0.000000e+00> : vector<4x8x8xf32>
    %127 = tpu.matmul %122, %124, %cst_85 {dimension_numbers = #tpu.dot_dimension_numbers<[2], [2], [1], [1], [0, 0, 0, 1, 1, 1], [0], [0]>} : vector<4x8x16xbf16>, vector<4x8x16xbf16>, vector<4x8x8xf32> -> vector<4x8x8xf32>
    %128 = vector.broadcast %90 : vector<4x8x1xf32> to vector<4x8x8xf32>
    %129 = arith.mulf %127, %128 : vector<4x8x8xf32>
    %130 = arith.addf %129, %92 : vector<4x8x8xf32>
    %cst_86 = arith.constant -1.000000e+09 : f32
    %131 = vector.shape_cast %104 : vector<8x8xi1> to vector<1x8x8xi1>
    %132 = vector.broadcast %131 : vector<1x8x8xi1> to vector<4x8x8xi1>
    %133 = vector.broadcast %cst_86 : f32 to vector<4x8x8xf32>
    %134 = arith.select %132, %133, %130 : vector<4x8x8xi1>, vector<4x8x8xf32>
    %cst_87 = arith.constant 2.500000e-01 : f32
    %135 = vector.broadcast %cst_87 : f32 to vector<4x8x8xf32>
    %136 = arith.mulf %134, %135 : vector<4x8x8xf32>
    %cst_88 = arith.constant dense<0xFF800000> : vector<4x8xf32>
    %137 = vector.multi_reduction <maximumf>, %136, %cst_88 [2] : vector<4x8x8xf32> to vector<4x8xf32>
    %138 = vector.shape_cast %137 : vector<4x8xf32> to vector<4x8x1xf32>
    %139 = vector.broadcast %138 : vector<4x8x1xf32> to vector<4x8x8xf32>
    %140 = arith.subf %136, %139 : vector<4x8x8xf32>
    %141 = math.exp %140 : vector<4x8x8xf32>
    %cst_89 = arith.constant dense<0.000000e+00> : vector<4x8xf32>
    %142 = vector.multi_reduction <add>, %141, %cst_89 [2] : vector<4x8x8xf32> to vector<4x8xf32>
    %143 = vector.shape_cast %142 : vector<4x8xf32> to vector<4x8x1xf32>
    %144 = vector.broadcast %143 : vector<4x8x1xf32> to vector<4x8x8xf32>
    %145 = arith.divf %141, %144 : vector<4x8x8xf32>
    %146 = arith.truncf %145 : vector<4x8x8xf32> to vector<4x8x8xbf16>
    %cst_90 = arith.constant dense<0.000000e+00> : vector<4x8x16xf32>
    %147 = tpu.matmul %146, %126, %cst_90 {dimension_numbers = #tpu.dot_dimension_numbers<[2], [1], [1], [2], [0, 0, 0, 1, 1, 2], [0], [0]>} : vector<4x8x8xbf16>, vector<4x8x16xbf16>, vector<4x8x16xf32> -> vector<4x8x16xf32>
    %148 = vector.shape_cast %147 : vector<4x8x16xf32> to vector<2x16x16xf32>
    %149 = arith.truncf %148 : vector<2x16x16xf32> to vector<2x16x16xbf16>
    %c0_91 = arith.constant 0 : index
    %c0_92 = arith.constant 0 : index
    %c0_93 = arith.constant 0 : index
    %c0_94 = arith.constant 0 : index
    %150 = vector.load %arg26[%c0_91, %c0_92, %c0_93, %c0_94] : memref<2x2x16x32xbf16, #tpu.memory_space<vmem>>, vector<1x2x16x32xbf16>
    %151 = vector.shape_cast %150 : vector<1x2x16x32xbf16> to vector<2x16x32xbf16>
    %cst_95 = arith.constant dense<0.000000e+00> : vector<2x16x32xf32>
    %152 = tpu.matmul %149, %151, %cst_95 {dimension_numbers = #tpu.dot_dimension_numbers<[2], [1], [1], [2], [0, 0, 0, 1, 1, 2], [0], [0]>} : vector<2x16x16xbf16>, vector<2x16x32xbf16>, vector<2x16x32xf32> -> vector<2x16x32xf32>
    %153 = vector.extract_strided_slice %152 {offsets = [0, 0, 0], sizes = [1, 16, 32], strides = [1, 1, 1]} : vector<2x16x32xf32> to vector<1x16x32xf32>
    %154 = vector.shape_cast %153 : vector<1x16x32xf32> to vector<16x32xf32>
    %155 = vector.extract_strided_slice %152 {offsets = [1, 0, 0], sizes = [1, 16, 32], strides = [1, 1, 1]} : vector<2x16x32xf32> to vector<1x16x32xf32>
    %156 = vector.shape_cast %155 : vector<1x16x32xf32> to vector<16x32xf32>
    %157 = arith.addf %154, %156 : vector<16x32xf32>
    %158 = arith.addf %157, %101 : vector<16x32xf32>
    %c0_96 = arith.constant 0 : index
    %c0_97 = arith.constant 0 : index
    %c0_98 = arith.constant 0 : index
    %159 = vector.load %arg27[%c0_96, %c0_97, %c0_98] : memref<2x1x32xf32, #tpu.memory_space<vmem>>, vector<1x1x32xf32>
    %160 = vector.shape_cast %159 : vector<1x1x32xf32> to vector<1x32xf32>
    %c0_99 = arith.constant 0 : index
    %c0_100 = arith.constant 0 : index
    %c0_101 = arith.constant 0 : index
    %161 = vector.load %arg28[%c0_99, %c0_100, %c0_101] : memref<2x1x32xf32, #tpu.memory_space<vmem>>, vector<1x1x32xf32>
    %162 = vector.shape_cast %161 : vector<1x1x32xf32> to vector<1x32xf32>
    %cst_102 = arith.constant dense<0.000000e+00> : vector<16xf32>
    %163 = vector.multi_reduction <add>, %158, %cst_102 [1] : vector<16x32xf32> to vector<16xf32>
    %164 = vector.shape_cast %163 : vector<16xf32> to vector<16x1xf32>
    %cst_103 = arith.constant 3.200000e+01 : f32
    %165 = vector.broadcast %cst_103 : f32 to vector<16x1xf32>
    %166 = arith.divf %164, %165 : vector<16x1xf32>
    %167 = vector.broadcast %166 : vector<16x1xf32> to vector<16x32xf32>
    %168 = arith.subf %158, %167 : vector<16x32xf32>
    %169 = arith.mulf %168, %168 : vector<16x32xf32>
    %cst_104 = arith.constant dense<0.000000e+00> : vector<16xf32>
    %170 = vector.multi_reduction <add>, %169, %cst_104 [1] : vector<16x32xf32> to vector<16xf32>
    %171 = vector.shape_cast %170 : vector<16xf32> to vector<16x1xf32>
    %cst_105 = arith.constant 3.200000e+01 : f32
    %172 = vector.broadcast %cst_105 : f32 to vector<16x1xf32>
    %173 = arith.divf %171, %172 : vector<16x1xf32>
    %cst_106 = arith.constant 9.99999974E-6 : f32
    %174 = vector.broadcast %cst_106 : f32 to vector<16x1xf32>
    %175 = arith.addf %173, %174 : vector<16x1xf32>
    %176 = math.rsqrt %175 : vector<16x1xf32>
    %177 = vector.broadcast %176 : vector<16x1xf32> to vector<16x32xf32>
    %178 = arith.mulf %168, %177 : vector<16x32xf32>
    %179 = vector.broadcast %160 : vector<1x32xf32> to vector<16x32xf32>
    %180 = arith.mulf %178, %179 : vector<16x32xf32>
    %181 = vector.broadcast %162 : vector<1x32xf32> to vector<16x32xf32>
    %182 = arith.addf %180, %181 : vector<16x32xf32>
    %183 = arith.truncf %182 : vector<16x32xf32> to vector<16x32xbf16>
    %c0_107 = arith.constant 0 : index
    %c0_108 = arith.constant 0 : index
    %c0_109 = arith.constant 0 : index
    %184 = vector.load %arg29[%c0_107, %c0_108, %c0_109] : memref<2x32x32xbf16, #tpu.memory_space<vmem>>, vector<1x32x32xbf16>
    %185 = vector.shape_cast %184 : vector<1x32x32xbf16> to vector<32x32xbf16>
    %cst_110 = arith.constant dense<0.000000e+00> : vector<16x32xf32>
    %186 = tpu.matmul %183, %185, %cst_110 {dimension_numbers = #tpu.dot_dimension_numbers<[1], [0], [0], [1], [0, 0, 1, 1], [], []>} : vector<16x32xbf16>, vector<32x32xbf16>, vector<16x32xf32> -> vector<16x32xf32>
    %c0_111 = arith.constant 0 : index
    %c0_112 = arith.constant 0 : index
    %c0_113 = arith.constant 0 : index
    %187 = vector.load %arg30[%c0_111, %c0_112, %c0_113] : memref<2x1x32xf32, #tpu.memory_space<vmem>>, vector<1x1x32xf32>
    %188 = vector.shape_cast %187 : vector<1x1x32xf32> to vector<1x32xf32>
    %189 = vector.broadcast %188 : vector<1x32xf32> to vector<16x32xf32>
    %190 = arith.addf %186, %189 : vector<16x32xf32>
    %cst_114 = arith.constant 0.000000e+00 : f32
    %191 = vector.broadcast %cst_114 : f32 to vector<16x32xf32>
    %192 = arith.maximumf %190, %191 : vector<16x32xf32>
    %193 = arith.truncf %192 : vector<16x32xf32> to vector<16x32xbf16>
    %c0_115 = arith.constant 0 : index
    %c0_116 = arith.constant 0 : index
    %c0_117 = arith.constant 0 : index
    %194 = vector.load %arg31[%c0_115, %c0_116, %c0_117] : memref<2x32x32xbf16, #tpu.memory_space<vmem>>, vector<1x32x32xbf16>
    %195 = vector.shape_cast %194 : vector<1x32x32xbf16> to vector<32x32xbf16>
    %cst_118 = arith.constant dense<0.000000e+00> : vector<16x32xf32>
    %196 = tpu.matmul %193, %195, %cst_118 {dimension_numbers = #tpu.dot_dimension_numbers<[1], [0], [0], [1], [0, 0, 1, 1], [], []>} : vector<16x32xbf16>, vector<32x32xbf16>, vector<16x32xf32> -> vector<16x32xf32>
    %c0_119 = arith.constant 0 : index
    %c0_120 = arith.constant 0 : index
    %c0_121 = arith.constant 0 : index
    %197 = vector.load %arg32[%c0_119, %c0_120, %c0_121] : memref<2x1x32xf32, #tpu.memory_space<vmem>>, vector<1x1x32xf32>
    %198 = vector.shape_cast %197 : vector<1x1x32xf32> to vector<1x32xf32>
    %199 = vector.broadcast %198 : vector<1x32xf32> to vector<16x32xf32>
    %200 = arith.addf %196, %199 : vector<16x32xf32>
    %201 = arith.addf %200, %182 : vector<16x32xf32>
    %c0_122 = arith.constant 0 : index
    %c0_123 = arith.constant 0 : index
    %c0_124 = arith.constant 0 : index
    %202 = vector.load %arg33[%c0_122, %c0_123, %c0_124] : memref<2x1x32xf32, #tpu.memory_space<vmem>>, vector<1x1x32xf32>
    %203 = vector.shape_cast %202 : vector<1x1x32xf32> to vector<1x32xf32>
    %c0_125 = arith.constant 0 : index
    %c0_126 = arith.constant 0 : index
    %c0_127 = arith.constant 0 : index
    %204 = vector.load %arg34[%c0_125, %c0_126, %c0_127] : memref<2x1x32xf32, #tpu.memory_space<vmem>>, vector<1x1x32xf32>
    %205 = vector.shape_cast %204 : vector<1x1x32xf32> to vector<1x32xf32>
    %cst_128 = arith.constant dense<0.000000e+00> : vector<16xf32>
    %206 = vector.multi_reduction <add>, %201, %cst_128 [1] : vector<16x32xf32> to vector<16xf32>
    %207 = vector.shape_cast %206 : vector<16xf32> to vector<16x1xf32>
    %cst_129 = arith.constant 3.200000e+01 : f32
    %208 = vector.broadcast %cst_129 : f32 to vector<16x1xf32>
    %209 = arith.divf %207, %208 : vector<16x1xf32>
    %210 = vector.broadcast %209 : vector<16x1xf32> to vector<16x32xf32>
    %211 = arith.subf %201, %210 : vector<16x32xf32>
    %212 = arith.mulf %211, %211 : vector<16x32xf32>
    %cst_130 = arith.constant dense<0.000000e+00> : vector<16xf32>
    %213 = vector.multi_reduction <add>, %212, %cst_130 [1] : vector<16x32xf32> to vector<16xf32>
    %214 = vector.shape_cast %213 : vector<16xf32> to vector<16x1xf32>
    %cst_131 = arith.constant 3.200000e+01 : f32
    %215 = vector.broadcast %cst_131 : f32 to vector<16x1xf32>
    %216 = arith.divf %214, %215 : vector<16x1xf32>
    %cst_132 = arith.constant 9.99999974E-6 : f32
    %217 = vector.broadcast %cst_132 : f32 to vector<16x1xf32>
    %218 = arith.addf %216, %217 : vector<16x1xf32>
    %219 = math.rsqrt %218 : vector<16x1xf32>
    %220 = vector.broadcast %219 : vector<16x1xf32> to vector<16x32xf32>
    %221 = arith.mulf %211, %220 : vector<16x32xf32>
    %222 = vector.broadcast %203 : vector<1x32xf32> to vector<16x32xf32>
    %223 = arith.mulf %221, %222 : vector<16x32xf32>
    %224 = vector.broadcast %205 : vector<1x32xf32> to vector<16x32xf32>
    %225 = arith.addf %223, %224 : vector<16x32xf32>
    %226 = arith.truncf %225 : vector<16x32xf32> to vector<16x32xbf16>
    %c1 = arith.constant 1 : index
    %c0_133 = arith.constant 0 : index
    %c0_134 = arith.constant 0 : index
    %227 = vector.load %arg25[%c1, %c0_133, %c0_134] : memref<2x32x96xbf16, #tpu.memory_space<vmem>>, vector<1x32x96xbf16>
    %228 = vector.shape_cast %227 : vector<1x32x96xbf16> to vector<32x96xbf16>
    %cst_135 = arith.constant dense<0.000000e+00> : vector<16x96xf32>
    %229 = tpu.matmul %226, %228, %cst_135 {dimension_numbers = #tpu.dot_dimension_numbers<[1], [0], [0], [1], [0, 0, 1, 1], [], []>} : vector<16x32xbf16>, vector<32x96xbf16>, vector<16x96xf32> -> vector<16x96xf32>
    %230 = vector.extract_strided_slice %229 {offsets = [0, 0], sizes = [16, 16], strides = [1, 1]} : vector<16x96xf32> to vector<16x16xf32>
    %231 = vector.shape_cast %230 : vector<16x16xf32> to vector<2x8x16xf32>
    %232 = vector.extract_strided_slice %229 {offsets = [0, 32], sizes = [16, 16], strides = [1, 1]} : vector<16x96xf32> to vector<16x16xf32>
    %233 = vector.shape_cast %232 : vector<16x16xf32> to vector<2x8x16xf32>
    %234 = vector.extract_strided_slice %229 {offsets = [0, 64], sizes = [16, 16], strides = [1, 1]} : vector<16x96xf32> to vector<16x16xf32>
    %235 = vector.shape_cast %234 : vector<16x16xf32> to vector<2x8x16xf32>
    %236 = vector.extract_strided_slice %229 {offsets = [0, 16], sizes = [16, 16], strides = [1, 1]} : vector<16x96xf32> to vector<16x16xf32>
    %237 = vector.shape_cast %236 : vector<16x16xf32> to vector<2x8x16xf32>
    %238 = vector.extract_strided_slice %229 {offsets = [0, 48], sizes = [16, 16], strides = [1, 1]} : vector<16x96xf32> to vector<16x16xf32>
    %239 = vector.shape_cast %238 : vector<16x16xf32> to vector<2x8x16xf32>
    %240 = vector.extract_strided_slice %229 {offsets = [0, 80], sizes = [16, 16], strides = [1, 1]} : vector<16x96xf32> to vector<16x16xf32>
    %241 = vector.shape_cast %240 : vector<16x16xf32> to vector<2x8x16xf32>
    %242 = tpu.concatenate %231, %237 in 0 : vector<2x8x16xf32>, vector<2x8x16xf32> -> vector<4x8x16xf32>
    %243 = arith.truncf %242 : vector<4x8x16xf32> to vector<4x8x16xbf16>
    %244 = tpu.concatenate %233, %239 in 0 : vector<2x8x16xf32>, vector<2x8x16xf32> -> vector<4x8x16xf32>
    %245 = arith.truncf %244 : vector<4x8x16xf32> to vector<4x8x16xbf16>
    %246 = tpu.concatenate %235, %241 in 0 : vector<2x8x16xf32>, vector<2x8x16xf32> -> vector<4x8x16xf32>
    %247 = arith.truncf %246 : vector<4x8x16xf32> to vector<4x8x16xbf16>
    %cst_136 = arith.constant dense<0.000000e+00> : vector<4x8x8xf32>
    %248 = tpu.matmul %243, %245, %cst_136 {dimension_numbers = #tpu.dot_dimension_numbers<[2], [2], [1], [1], [0, 0, 0, 1, 1, 1], [0], [0]>} : vector<4x8x16xbf16>, vector<4x8x16xbf16>, vector<4x8x8xf32> -> vector<4x8x8xf32>
    %249 = vector.broadcast %90 : vector<4x8x1xf32> to vector<4x8x8xf32>
    %250 = arith.mulf %248, %249 : vector<4x8x8xf32>
    %251 = arith.addf %250, %92 : vector<4x8x8xf32>
    %cst_137 = arith.constant -1.000000e+09 : f32
    %252 = vector.shape_cast %104 : vector<8x8xi1> to vector<1x8x8xi1>
    %253 = vector.broadcast %252 : vector<1x8x8xi1> to vector<4x8x8xi1>
    %254 = vector.broadcast %cst_137 : f32 to vector<4x8x8xf32>
    %255 = arith.select %253, %254, %251 : vector<4x8x8xi1>, vector<4x8x8xf32>
    %cst_138 = arith.constant 2.500000e-01 : f32
    %256 = vector.broadcast %cst_138 : f32 to vector<4x8x8xf32>
    %257 = arith.mulf %255, %256 : vector<4x8x8xf32>
    %cst_139 = arith.constant dense<0xFF800000> : vector<4x8xf32>
    %258 = vector.multi_reduction <maximumf>, %257, %cst_139 [2] : vector<4x8x8xf32> to vector<4x8xf32>
    %259 = vector.shape_cast %258 : vector<4x8xf32> to vector<4x8x1xf32>
    %260 = vector.broadcast %259 : vector<4x8x1xf32> to vector<4x8x8xf32>
    %261 = arith.subf %257, %260 : vector<4x8x8xf32>
    %262 = math.exp %261 : vector<4x8x8xf32>
    %cst_140 = arith.constant dense<0.000000e+00> : vector<4x8xf32>
    %263 = vector.multi_reduction <add>, %262, %cst_140 [2] : vector<4x8x8xf32> to vector<4x8xf32>
    %264 = vector.shape_cast %263 : vector<4x8xf32> to vector<4x8x1xf32>
    %265 = vector.broadcast %264 : vector<4x8x1xf32> to vector<4x8x8xf32>
    %266 = arith.divf %262, %265 : vector<4x8x8xf32>
    %267 = arith.truncf %266 : vector<4x8x8xf32> to vector<4x8x8xbf16>
    %cst_141 = arith.constant dense<0.000000e+00> : vector<4x8x16xf32>
    %268 = tpu.matmul %267, %247, %cst_141 {dimension_numbers = #tpu.dot_dimension_numbers<[2], [1], [1], [2], [0, 0, 0, 1, 1, 2], [0], [0]>} : vector<4x8x8xbf16>, vector<4x8x16xbf16>, vector<4x8x16xf32> -> vector<4x8x16xf32>
    %269 = vector.shape_cast %268 : vector<4x8x16xf32> to vector<2x16x16xf32>
    %270 = arith.truncf %269 : vector<2x16x16xf32> to vector<2x16x16xbf16>
    %c1_142 = arith.constant 1 : index
    %c0_143 = arith.constant 0 : index
    %c0_144 = arith.constant 0 : index
    %c0_145 = arith.constant 0 : index
    %271 = vector.load %arg26[%c1_142, %c0_143, %c0_144, %c0_145] : memref<2x2x16x32xbf16, #tpu.memory_space<vmem>>, vector<1x2x16x32xbf16>
    %272 = vector.shape_cast %271 : vector<1x2x16x32xbf16> to vector<2x16x32xbf16>
    %cst_146 = arith.constant dense<0.000000e+00> : vector<2x16x32xf32>
    %273 = tpu.matmul %270, %272, %cst_146 {dimension_numbers = #tpu.dot_dimension_numbers<[2], [1], [1], [2], [0, 0, 0, 1, 1, 2], [0], [0]>} : vector<2x16x16xbf16>, vector<2x16x32xbf16>, vector<2x16x32xf32> -> vector<2x16x32xf32>
    %274 = vector.extract_strided_slice %273 {offsets = [0, 0, 0], sizes = [1, 16, 32], strides = [1, 1, 1]} : vector<2x16x32xf32> to vector<1x16x32xf32>
    %275 = vector.shape_cast %274 : vector<1x16x32xf32> to vector<16x32xf32>
    %276 = vector.extract_strided_slice %273 {offsets = [1, 0, 0], sizes = [1, 16, 32], strides = [1, 1, 1]} : vector<2x16x32xf32> to vector<1x16x32xf32>
    %277 = vector.shape_cast %276 : vector<1x16x32xf32> to vector<16x32xf32>
    %278 = arith.addf %275, %277 : vector<16x32xf32>
    %279 = arith.addf %278, %225 : vector<16x32xf32>
    %c1_147 = arith.constant 1 : index
    %c0_148 = arith.constant 0 : index
    %c0_149 = arith.constant 0 : index
    %280 = vector.load %arg27[%c1_147, %c0_148, %c0_149] : memref<2x1x32xf32, #tpu.memory_space<vmem>>, vector<1x1x32xf32>
    %281 = vector.shape_cast %280 : vector<1x1x32xf32> to vector<1x32xf32>
    %c1_150 = arith.constant 1 : index
    %c0_151 = arith.constant 0 : index
    %c0_152 = arith.constant 0 : index
    %282 = vector.load %arg28[%c1_150, %c0_151, %c0_152] : memref<2x1x32xf32, #tpu.memory_space<vmem>>, vector<1x1x32xf32>
    %283 = vector.shape_cast %282 : vector<1x1x32xf32> to vector<1x32xf32>
    %cst_153 = arith.constant dense<0.000000e+00> : vector<16xf32>
    %284 = vector.multi_reduction <add>, %279, %cst_153 [1] : vector<16x32xf32> to vector<16xf32>
    %285 = vector.shape_cast %284 : vector<16xf32> to vector<16x1xf32>
    %cst_154 = arith.constant 3.200000e+01 : f32
    %286 = vector.broadcast %cst_154 : f32 to vector<16x1xf32>
    %287 = arith.divf %285, %286 : vector<16x1xf32>
    %288 = vector.broadcast %287 : vector<16x1xf32> to vector<16x32xf32>
    %289 = arith.subf %279, %288 : vector<16x32xf32>
    %290 = arith.mulf %289, %289 : vector<16x32xf32>
    %cst_155 = arith.constant dense<0.000000e+00> : vector<16xf32>
    %291 = vector.multi_reduction <add>, %290, %cst_155 [1] : vector<16x32xf32> to vector<16xf32>
    %292 = vector.shape_cast %291 : vector<16xf32> to vector<16x1xf32>
    %cst_156 = arith.constant 3.200000e+01 : f32
    %293 = vector.broadcast %cst_156 : f32 to vector<16x1xf32>
    %294 = arith.divf %292, %293 : vector<16x1xf32>
    %cst_157 = arith.constant 9.99999974E-6 : f32
    %295 = vector.broadcast %cst_157 : f32 to vector<16x1xf32>
    %296 = arith.addf %294, %295 : vector<16x1xf32>
    %297 = math.rsqrt %296 : vector<16x1xf32>
    %298 = vector.broadcast %297 : vector<16x1xf32> to vector<16x32xf32>
    %299 = arith.mulf %289, %298 : vector<16x32xf32>
    %300 = vector.broadcast %281 : vector<1x32xf32> to vector<16x32xf32>
    %301 = arith.mulf %299, %300 : vector<16x32xf32>
    %302 = vector.broadcast %283 : vector<1x32xf32> to vector<16x32xf32>
    %303 = arith.addf %301, %302 : vector<16x32xf32>
    %304 = arith.truncf %303 : vector<16x32xf32> to vector<16x32xbf16>
    %c1_158 = arith.constant 1 : index
    %c0_159 = arith.constant 0 : index
    %c0_160 = arith.constant 0 : index
    %305 = vector.load %arg29[%c1_158, %c0_159, %c0_160] : memref<2x32x32xbf16, #tpu.memory_space<vmem>>, vector<1x32x32xbf16>
    %306 = vector.shape_cast %305 : vector<1x32x32xbf16> to vector<32x32xbf16>
    %cst_161 = arith.constant dense<0.000000e+00> : vector<16x32xf32>
    %307 = tpu.matmul %304, %306, %cst_161 {dimension_numbers = #tpu.dot_dimension_numbers<[1], [0], [0], [1], [0, 0, 1, 1], [], []>} : vector<16x32xbf16>, vector<32x32xbf16>, vector<16x32xf32> -> vector<16x32xf32>
    %c1_162 = arith.constant 1 : index
    %c0_163 = arith.constant 0 : index
    %c0_164 = arith.constant 0 : index
    %308 = vector.load %arg30[%c1_162, %c0_163, %c0_164] : memref<2x1x32xf32, #tpu.memory_space<vmem>>, vector<1x1x32xf32>
    %309 = vector.shape_cast %308 : vector<1x1x32xf32> to vector<1x32xf32>
    %310 = vector.broadcast %309 : vector<1x32xf32> to vector<16x32xf32>
    %311 = arith.addf %307, %310 : vector<16x32xf32>
    %cst_165 = arith.constant 0.000000e+00 : f32
    %312 = vector.broadcast %cst_165 : f32 to vector<16x32xf32>
    %313 = arith.maximumf %311, %312 : vector<16x32xf32>
    %314 = arith.truncf %313 : vector<16x32xf32> to vector<16x32xbf16>
    %c1_166 = arith.constant 1 : index
    %c0_167 = arith.constant 0 : index
    %c0_168 = arith.constant 0 : index
    %315 = vector.load %arg31[%c1_166, %c0_167, %c0_168] : memref<2x32x32xbf16, #tpu.memory_space<vmem>>, vector<1x32x32xbf16>
    %316 = vector.shape_cast %315 : vector<1x32x32xbf16> to vector<32x32xbf16>
    %cst_169 = arith.constant dense<0.000000e+00> : vector<16x32xf32>
    %317 = tpu.matmul %314, %316, %cst_169 {dimension_numbers = #tpu.dot_dimension_numbers<[1], [0], [0], [1], [0, 0, 1, 1], [], []>} : vector<16x32xbf16>, vector<32x32xbf16>, vector<16x32xf32> -> vector<16x32xf32>
    %c1_170 = arith.constant 1 : index
    %c0_171 = arith.constant 0 : index
    %c0_172 = arith.constant 0 : index
    %318 = vector.load %arg32[%c1_170, %c0_171, %c0_172] : memref<2x1x32xf32, #tpu.memory_space<vmem>>, vector<1x1x32xf32>
    %319 = vector.shape_cast %318 : vector<1x1x32xf32> to vector<1x32xf32>
    %320 = vector.broadcast %319 : vector<1x32xf32> to vector<16x32xf32>
    %321 = arith.addf %317, %320 : vector<16x32xf32>
    %322 = arith.addf %321, %303 : vector<16x32xf32>
    %c1_173 = arith.constant 1 : index
    %c0_174 = arith.constant 0 : index
    %c0_175 = arith.constant 0 : index
    %323 = vector.load %arg33[%c1_173, %c0_174, %c0_175] : memref<2x1x32xf32, #tpu.memory_space<vmem>>, vector<1x1x32xf32>
    %324 = vector.shape_cast %323 : vector<1x1x32xf32> to vector<1x32xf32>
    %c1_176 = arith.constant 1 : index
    %c0_177 = arith.constant 0 : index
    %c0_178 = arith.constant 0 : index
    %325 = vector.load %arg34[%c1_176, %c0_177, %c0_178] : memref<2x1x32xf32, #tpu.memory_space<vmem>>, vector<1x1x32xf32>
    %326 = vector.shape_cast %325 : vector<1x1x32xf32> to vector<1x32xf32>
    %cst_179 = arith.constant dense<0.000000e+00> : vector<16xf32>
    %327 = vector.multi_reduction <add>, %322, %cst_179 [1] : vector<16x32xf32> to vector<16xf32>
    %328 = vector.shape_cast %327 : vector<16xf32> to vector<16x1xf32>
    %cst_180 = arith.constant 3.200000e+01 : f32
    %329 = vector.broadcast %cst_180 : f32 to vector<16x1xf32>
    %330 = arith.divf %328, %329 : vector<16x1xf32>
    %331 = vector.broadcast %330 : vector<16x1xf32> to vector<16x32xf32>
    %332 = arith.subf %322, %331 : vector<16x32xf32>
    %333 = arith.mulf %332, %332 : vector<16x32xf32>
    %cst_181 = arith.constant dense<0.000000e+00> : vector<16xf32>
    %334 = vector.multi_reduction <add>, %333, %cst_181 [1] : vector<16x32xf32> to vector<16xf32>
    %335 = vector.shape_cast %334 : vector<16xf32> to vector<16x1xf32>
    %cst_182 = arith.constant 3.200000e+01 : f32
    %336 = vector.broadcast %cst_182 : f32 to vector<16x1xf32>
    %337 = arith.divf %335, %336 : vector<16x1xf32>
    %cst_183 = arith.constant 9.99999974E-6 : f32
    %338 = vector.broadcast %cst_183 : f32 to vector<16x1xf32>
    %339 = arith.addf %337, %338 : vector<16x1xf32>
    %340 = math.rsqrt %339 : vector<16x1xf32>
    %341 = vector.broadcast %340 : vector<16x1xf32> to vector<16x32xf32>
    %342 = arith.mulf %332, %341 : vector<16x32xf32>
    %343 = vector.broadcast %324 : vector<1x32xf32> to vector<16x32xf32>
    %344 = arith.mulf %342, %343 : vector<16x32xf32>
    %345 = vector.broadcast %326 : vector<1x32xf32> to vector<16x32xf32>
    %346 = arith.addf %344, %345 : vector<16x32xf32>
    %347 = arith.truncf %346 : vector<16x32xf32> to vector<16x32xbf16>
    %c0_184 = arith.constant 0 : index
    %c0_185 = arith.constant 0 : index
    %348 = vector.load %arg35[%c0_184, %c0_185] : memref<32x4xbf16, #tpu.memory_space<vmem>>, vector<32x4xbf16>
    %cst_186 = arith.constant dense<0.000000e+00> : vector<16x4xf32>
    %349 = tpu.matmul %347, %348, %cst_186 {dimension_numbers = #tpu.dot_dimension_numbers<[1], [0], [0], [1], [0, 0, 1, 1], [], []>} : vector<16x32xbf16>, vector<32x4xbf16>, vector<16x4xf32> -> vector<16x4xf32>
    %c0_187 = arith.constant 0 : index
    %c0_188 = arith.constant 0 : index
    %350 = vector.load %arg36[%c0_187, %c0_188] : memref<1x4xf32, #tpu.memory_space<vmem>>, vector<1x4xf32>
    %351 = vector.broadcast %350 : vector<1x4xf32> to vector<16x4xf32>
    %352 = arith.addf %349, %351 : vector<16x4xf32>
    %353 = arith.mulf %352, %19 : vector<16x4xf32>
    %354 = arith.addf %353, %10 : vector<16x4xf32>
    %c0_189 = arith.constant 0 : index
    %c0_190 = arith.constant 0 : index
    %355 = vector.load %arg37[%c0_189, %c0_190] : memref<16x4xf32, #tpu.memory_space<vmem>>, vector<16x4xf32>
    tpu.vector_store %arg37[%c0_189, %c0_190], %354 {strides = array<i32>} : memref<16x4xf32, #tpu.memory_space<vmem>>, vector<16x4xf32>,
    %356 = arith.mulf %1, %0 : vector<16x4xf32>
    %cst_191 = arith.constant 1.000000e+00 : f32
    %357 = vector.broadcast %cst_191 : f32 to vector<16x4xf32>
    %358 = arith.subf %357, %1 : vector<16x4xf32>
    %359 = arith.mulf %358, %354 : vector<16x4xf32>
    %360 = arith.addf %356, %359 : vector<16x4xf32>
    %c0_192 = arith.constant 0 : index
    %c0_193 = arith.constant 0 : index
    %361 = vector.load %arg38[%c0_192, %c0_193] : memref<16x4xf32, #tpu.memory_space<vmem>>, vector<16x4xf32>
    tpu.vector_store %arg38[%c0_192, %c0_193], %360 {strides = array<i32>} : memref<16x4xf32, #tpu.memory_space<vmem>>, vector<16x4xf32>,
    return
  }
  func.func @transform_0(%arg0: i32) -> (i32, i32) {
    %c0_i32 = arith.constant 0 : i32
    %c0_i32_0 = arith.constant 0 : i32
    return %arg0, %c0_i32 : i32, i32
  }
  func.func @transform_1(%arg0: i32) -> (i32, i32) {
    %c0_i32 = arith.constant 0 : i32
    %c0_i32_0 = arith.constant 0 : i32
    return %arg0, %c0_i32 : i32, i32
  }
  func.func @transform_2(%arg0: i32) -> (i32, i32) {
    %c0_i32 = arith.constant 0 : i32
    %c0_i32_0 = arith.constant 0 : i32
    %c0_i32_1 = arith.constant 0 : i32
    return %c0_i32, %c0_i32_0 : i32, i32
  }
  func.func @transform_3(%arg0: i32) -> (i32, i32) {
    %c0_i32 = arith.constant 0 : i32
    %c0_i32_0 = arith.constant 0 : i32
    %c0_i32_1 = arith.constant 0 : i32
    return %c0_i32, %c0_i32_0 : i32, i32
  }
  func.func @transform_4(%arg0: i32) -> (i32, i32) {
    %c0_i32 = arith.constant 0 : i32
    %c0_i32_0 = arith.constant 0 : i32
    %c0_i32_1 = arith.constant 0 : i32
    return %c0_i32, %c0_i32_0 : i32, i32
  }
  func.func @transform_5(%arg0: i32) -> (i32, i32) {
    %c0_i32 = arith.constant 0 : i32
    %c0_i32_0 = arith.constant 0 : i32
    %c0_i32_1 = arith.constant 0 : i32
    return %c0_i32, %c0_i32_0 : i32, i32
  }
  func.func @transform_6(%arg0: i32) -> (i32, i32) {
    %c0_i32 = arith.constant 0 : i32
    %c0_i32_0 = arith.constant 0 : i32
    %c0_i32_1 = arith.constant 0 : i32
    return %c0_i32, %c0_i32_0 : i32, i32
  }
  func.func @transform_7(%arg0: i32) -> (i32, i32) {
    %c0_i32 = arith.constant 0 : i32
    %c0_i32_0 = arith.constant 0 : i32
    %c0_i32_1 = arith.constant 0 : i32
    return %c0_i32, %c0_i32_0 : i32, i32
  }
  func.func @transform_8(%arg0: i32) -> (i32, i32, i32) {
    %c0_i32 = arith.constant 0 : i32
    %c0_i32_0 = arith.constant 0 : i32
    %c0_i32_1 = arith.constant 0 : i32
    %c0_i32_2 = arith.constant 0 : i32
    return %c0_i32, %c0_i32_0, %c0_i32_1 : i32, i32, i32
  }
  func.func @transform_9(%arg0: i32) -> (i32, i32) {
    %c0_i32 = arith.constant 0 : i32
    %c0_i32_0 = arith.constant 0 : i32
    %c0_i32_1 = arith.constant 0 : i32
    return %c0_i32, %c0_i32_0 : i32, i32
  }
  func.func @transform_10(%arg0: i32) -> (i32, i32) {
    %c0_i32 = arith.constant 0 : i32
    %c0_i32_0 = arith.constant 0 : i32
    %c0_i32_1 = arith.constant 0 : i32
    return %c0_i32, %c0_i32_0 : i32, i32
  }
  func.func @transform_11(%arg0: i32) -> (i32, i32) {
    %c0_i32 = arith.constant 0 : i32
    %c0_i32_0 = arith.constant 0 : i32
    %c0_i32_1 = arith.constant 0 : i32
    return %c0_i32, %c0_i32_0 : i32, i32
  }
  func.func @transform_12(%arg0: i32) -> (i32, i32) {
    %c0_i32 = arith.constant 0 : i32
    %c0_i32_0 = arith.constant 0 : i32
    %c0_i32_1 = arith.constant 0 : i32
    return %c0_i32, %c0_i32_0 : i32, i32
  }
  func.func @transform_13(%arg0: i32) -> (i32, i32) {
    %c0_i32 = arith.constant 0 : i32
    %c0_i32_0 = arith.constant 0 : i32
    %c0_i32_1 = arith.constant 0 : i32
    return %c0_i32, %c0_i32_0 : i32, i32
  }
  func.func @transform_14(%arg0: i32) -> (i32, i32) {
    %c0_i32 = arith.constant 0 : i32
    %c0_i32_0 = arith.constant 0 : i32
    %c0_i32_1 = arith.constant 0 : i32
    return %c0_i32, %c0_i32_0 : i32, i32
  }
  func.func @transform_15(%arg0: i32) -> (i32, i32, i32) {
    %c0_i32 = arith.constant 0 : i32
    %c0_i32_0 = arith.constant 0 : i32
    %c0_i32_1 = arith.constant 0 : i32
    %c0_i32_2 = arith.constant 0 : i32
    return %c0_i32, %c0_i32_0, %c0_i32_1 : i32, i32, i32
  }
  func.func @transform_16(%arg0: i32) -> (i32, i32) {
    %c0_i32 = arith.constant 0 : i32
    %c0_i32_0 = arith.constant 0 : i32
    %c0_i32_1 = arith.constant 0 : i32
    return %c0_i32, %c0_i32_0 : i32, i32
  }
  func.func @transform_17(%arg0: i32) -> (i32, i32) {
    %c0_i32 = arith.constant 0 : i32
    %c0_i32_0 = arith.constant 0 : i32
    %c0_i32_1 = arith.constant 0 : i32
    return %c0_i32, %c0_i32_0 : i32, i32
  }
  func.func @transform_18(%arg0: i32) -> (i32, i32) {
    %c0_i32 = arith.constant 0 : i32
    %c0_i32_0 = arith.constant 0 : i32
    %c0_i32_1 = arith.constant 0 : i32
    return %c0_i32, %c0_i32_0 : i32, i32
  }
  func.func @transform_19(%arg0: i32) -> (i32, i32) {
    %c0_i32 = arith.constant 0 : i32
    %c0_i32_0 = arith.constant 0 : i32
    %c0_i32_1 = arith.constant 0 : i32
    return %c0_i32, %c0_i32_0 : i32, i32
  }
  func.func @transform_20(%arg0: i32) -> (i32, i32) {
    %c0_i32 = arith.constant 0 : i32
    %c0_i32_0 = arith.constant 0 : i32
    %c0_i32_1 = arith.constant 0 : i32
    return %c0_i32, %c0_i32_0 : i32, i32
  }
  func.func @transform_21(%arg0: i32) -> (i32, i32) {
    %c0_i32 = arith.constant 0 : i32
    %c0_i32_0 = arith.constant 0 : i32
    %c0_i32_1 = arith.constant 0 : i32
    return %c0_i32, %c0_i32_0 : i32, i32
  }
  func.func @transform_22(%arg0: i32) -> (i32, i32) {
    %c0_i32 = arith.constant 0 : i32
    %c0_i32_0 = arith.constant 0 : i32
    %c0_i32_1 = arith.constant 0 : i32
    return %c0_i32, %c0_i32_0 : i32, i32
  }
  func.func @transform_23(%arg0: i32) -> (i32, i32) {
    %c0_i32 = arith.constant 0 : i32
    %c0_i32_0 = arith.constant 0 : i32
    %c0_i32_1 = arith.constant 0 : i32
    return %c0_i32, %c0_i32_0 : i32, i32
  }
  func.func @transform_24(%arg0: i32) -> (i32, i32, i32) {
    %c0_i32 = arith.constant 0 : i32
    %c0_i32_0 = arith.constant 0 : i32
    %c0_i32_1 = arith.constant 0 : i32
    %c0_i32_2 = arith.constant 0 : i32
    return %c0_i32, %c0_i32_0, %c0_i32_1 : i32, i32, i32
  }
  func.func @transform_25(%arg0: i32) -> (i32, i32, i32, i32) {
    %c0_i32 = arith.constant 0 : i32
    %c0_i32_0 = arith.constant 0 : i32
    %c0_i32_1 = arith.constant 0 : i32
    %c0_i32_2 = arith.constant 0 : i32
    %c0_i32_3 = arith.constant 0 : i32
    return %c0_i32, %c0_i32_0, %c0_i32_1, %c0_i32_2 : i32, i32, i32, i32
  }
  func.func @transform_26(%arg0: i32) -> (i32, i32, i32) {
    %c0_i32 = arith.constant 0 : i32
    %c0_i32_0 = arith.constant 0 : i32
    %c0_i32_1 = arith.constant 0 : i32
    %c0_i32_2 = arith.constant 0 : i32
    return %c0_i32, %c0_i32_0, %c0_i32_1 : i32, i32, i32
  }
  func.func @transform_27(%arg0: i32) -> (i32, i32, i32) {
    %c0_i32 = arith.constant 0 : i32
    %c0_i32_0 = arith.constant 0 : i32
    %c0_i32_1 = arith.constant 0 : i32
    %c0_i32_2 = arith.constant 0 : i32
    return %c0_i32, %c0_i32_0, %c0_i32_1 : i32, i32, i32
  }
  func.func @transform_28(%arg0: i32) -> (i32, i32, i32) {
    %c0_i32 = arith.constant 0 : i32
    %c0_i32_0 = arith.constant 0 : i32
    %c0_i32_1 = arith.constant 0 : i32
    %c0_i32_2 = arith.constant 0 : i32
    return %c0_i32, %c0_i32_0, %c0_i32_1 : i32, i32, i32
  }
  func.func @transform_29(%arg0: i32) -> (i32, i32, i32) {
    %c0_i32 = arith.constant 0 : i32
    %c0_i32_0 = arith.constant 0 : i32
    %c0_i32_1 = arith.constant 0 : i32
    %c0_i32_2 = arith.constant 0 : i32
    return %c0_i32, %c0_i32_0, %c0_i32_1 : i32, i32, i32
  }
  func.func @transform_30(%arg0: i32) -> (i32, i32, i32) {
    %c0_i32 = arith.constant 0 : i32
    %c0_i32_0 = arith.constant 0 : i32
    %c0_i32_1 = arith.constant 0 : i32
    %c0_i32_2 = arith.constant 0 : i32
    return %c0_i32, %c0_i32_0, %c0_i32_1 : i32, i32, i32
  }
  func.func @transform_31(%arg0: i32) -> (i32, i32, i32) {
    %c0_i32 = arith.constant 0 : i32
    %c0_i32_0 = arith.constant 0 : i32
    %c0_i32_1 = arith.constant 0 : i32
    %c0_i32_2 = arith.constant 0 : i32
    return %c0_i32, %c0_i32_0, %c0_i32_1 : i32, i32, i32
  }
  func.func @transform_32(%arg0: i32) -> (i32, i32, i32) {
    %c0_i32 = arith.constant 0 : i32
    %c0_i32_0 = arith.constant 0 : i32
    %c0_i32_1 = arith.constant 0 : i32
    %c0_i32_2 = arith.constant 0 : i32
    return %c0_i32, %c0_i32_0, %c0_i32_1 : i32, i32, i32
  }
  func.func @transform_33(%arg0: i32) -> (i32, i32, i32) {
    %c0_i32 = arith.constant 0 : i32
    %c0_i32_0 = arith.constant 0 : i32
    %c0_i32_1 = arith.constant 0 : i32
    %c0_i32_2 = arith.constant 0 : i32
    return %c0_i32, %c0_i32_0, %c0_i32_1 : i32, i32, i32
  }
  func.func @transform_34(%arg0: i32) -> (i32, i32) {
    %c0_i32 = arith.constant 0 : i32
    %c0_i32_0 = arith.constant 0 : i32
    %c0_i32_1 = arith.constant 0 : i32
    return %c0_i32, %c0_i32_0 : i32, i32
  }
  func.func @transform_35(%arg0: i32) -> (i32, i32) {
    %c0_i32 = arith.constant 0 : i32
    %c0_i32_0 = arith.constant 0 : i32
    %c0_i32_1 = arith.constant 0 : i32
    return %c0_i32, %c0_i32_0 : i32, i32
  }
  func.func @transform_36(%arg0: i32) -> (i32, i32) {
    %c0_i32 = arith.constant 0 : i32
    %c0_i32_0 = arith.constant 0 : i32
    return %arg0, %c0_i32 : i32, i32
  }
  func.func @transform_37(%arg0: i32) -> (i32, i32) {
    %c0_i32 = arith.constant 0 : i32
    %c0_i32_0 = arith.constant 0 : i32
    return %arg0, %c0_i32 : i32, i32
  }
}

</mosaic_0001>

<bundles_post_ra>
// kernel: tpu_custom_call.1
= control target key start
LH: loop header
LB: loop body
LE: loop exit
PB: predicated region body
PF: predicated region fallthrough
CT: control target
= control target key end

     0   :  { %s8413_s6 = smov 1   ;;  %s8414_s10 = smov 2   ;;  %s9931_s0 = inlined_call_operand.smem [shape: u32[38], index: -1, kind: input, shape index: {}] }
   0x1   :  { %s8515_s5 = sld [smem:[%s9931_s0]]   ;;  %s8415_s14 = smov 3  }
   0x2   :  { %s8520_s9 = sld [smem:[%s9931_s0 + %s8413_s6]]   ;;  %s8416_s18 = smov 4  }
   0x3   :  { %s8525_s13 = sld [smem:[%s9931_s0 + %s8414_s10]]   ;;  %s8417_s22 = smov 5  }
   0x4   :  { %s8530_s17 = sld [smem:[%s9931_s0 + %s8415_s14]]   ;;  %s8418_s26 = smov 6  }
   0x5   :  { %s8535_s21 = sld [smem:[%s9931_s0 + %s8416_s18]]   ;;  %s8419_s30 = smov 7  }
   0x6   :  { %s8540_s25 = sld [smem:[%s9931_s0 + %s8417_s22]]   ;;  %s8420_s4 = smov 8  }
   0x7   :  { %10005 = sst [smem:[#allocation83_spill]] %s8515_s5  ;;  %s8421_s10 = smov 9  }
   0x8   :  { %10006 = sst [smem:[#allocation84_spill]] %s8520_s9  ;;  %s8422_s15 = smov 10  }
   0x9   :  { %10007 = sst [smem:[#allocation85_spill]] %s8525_s13  ;;  %s8423_s20 = smov 11  }
   0xa   :  { %10008 = sst [smem:[#allocation86_spill]] %s8530_s17  ;;  %s8425_s1 = smov 13  }
   0xb   :  { %10009 = sst [smem:[#allocation87_spill]] %s8535_s21  ;;  %s8426_s7 = smov 14  }
   0xc   :  { %s8545_s29 = sld [smem:[%s9931_s0 + %s8418_s26]]   ;;  %s8424_s26 = smov 12  }
   0xd   :  { %s8550_s3 = sld [smem:[%s9931_s0 + %s8419_s30]]   ;;  %s8428_s22 = smov 16  }
   0xe   :  { %s8555_s8 = sld [smem:[%s9931_s0 + %s8420_s4]]   ;;  %s8429_s28 = smov 17  }
   0xf   :  { %s8560_s14 = sld [smem:[%s9931_s0 + %s8421_s10]]  }
  0x10   :  { %s8565_s19 = sld [smem:[%s9931_s0 + %s8422_s15]]   ;;  %s8427_s15 = smov 15  }
  0x11   :  { %s8570_s24 = sld [smem:[%s9931_s0 + %s8423_s20]]  }
  0x12   :  { %10010 = sst [smem:[#allocation88_spill]] %s8545_s29 }
  0x13   :  { %10011 = sst [smem:[#allocation89_spill]] %s8550_s3 }
  0x14   :  { %10012 = sst [smem:[#allocation90_spill]] %s8555_s8 }
  0x15   :  { %10013 = sst [smem:[#allocation91_spill]] %s8560_s14 }
  0x16   :  { %10014 = sst [smem:[#allocation92_spill]] %s8565_s19 }
  0x17   :  { %s8575_s30 = sld [smem:[%s9931_s0 + %s8424_s26]]  }
  0x18   :  { %s8580_s6 = sld [smem:[%s9931_s0 + %s8425_s1]]  }
  0x19   :  { %s8585_s12 = sld [smem:[%s9931_s0 + %s8426_s7]]   ;;  %s8430_s7 = smov 18  }
  0x1a   :  { %s8590_s20 = sld [smem:[%s9931_s0 + %s8427_s15]]   ;;  %s8431_s15 = smov 19  }
  0x1b   :  { %s8595_s27 = sld [smem:[%s9931_s0 + %s8428_s22]]   ;;  %s8432_s22 = smov 20  }
  0x1c   :  { %s8600_s4 = sld [smem:[%s9931_s0 + %s8429_s28]]   ;;  %s8433_s28 = smov 21  }
  0x1d   :  { %10015 = sst [smem:[#allocation93_spill]] %s8575_s30 }
  0x1e   :  { %10016 = sst [smem:[#allocation94_spill]] %s8580_s6 }
  0x1f   :  { %10017 = sst [smem:[#allocation95_spill]] %s8585_s12 }
  0x20   :  { %s8605_s9 = sld [smem:[%s9931_s0 + %s8430_s7]]   ;;  %s8434_s7 = smov 22  }
  0x21   :  { %10018 = sst [smem:[#allocation96_spill]] %s8595_s27 }
  0x22   :  { %10019 = sst [smem:[#allocation97_spill]] %s8600_s4 }
  0x23   :  { %s8610_s5 = sld [smem:[%s9931_s0 + %s8431_s15]]   ;;  %s8435_s15 = smov 23  }
  0x24   :  { %s8615_s27 = sld [smem:[%s9931_s0 + %s8432_s22]]   ;;  %s8436_s22 = smov 24  }
  0x25   :  { %s8620_s12 = sld [smem:[%s9931_s0 + %s8433_s28]]   ;;  %s8437_s28 = smov 25  }
  0x26   :  { %10020 = sst [smem:[#allocation98_spill]] %s8605_s9 }
  0x27   :  { %s8625_s9 = sld [smem:[%s9931_s0 + %s8434_s7]]   ;;  %s8438_s7 = smov 26  }
  0x28   :  { %s8630_s30 = sld [smem:[%s9931_s0 + %s8435_s15]]   ;;  %s8439_s15 = smov 27  }
  0x29   :  { %10021 = sst [smem:[#allocation99_spill]] %s8610_s5 }
  0x2a   :  { %10022 = sst [smem:[#allocation100_spill]] %s8615_s27 }
  0x2b   :  { %10023 = sst [smem:[#allocation101_spill]] %s8620_s12 }
  0x2c   :  { %s8635_s27 = sld [smem:[%s9931_s0 + %s8436_s22]]   ;;  %s8440_s22 = smov 28  }
  0x2d   :  { %10024 = sst [smem:[#allocation102_spill]] %s8625_s9 }
  0x2e   :  { %s8640_s19 = sld [smem:[%s9931_s0 + %s8437_s28]]   ;;  %s8441_s28 = smov 29  }
  0x2f   :  { %s8645_s9 = sld [smem:[%s9931_s0 + %s8438_s7]]   ;;  %s8442_s7 = smov 30  }
  0x30   :  { %s8650_s8 = sld [smem:[%s9931_s0 + %s8439_s15]]   ;;  %s8443_s15 = smov 31  }
  0x31   :  { %s8660_s29 = sld [smem:[%s9931_s0 + %s8441_s28]]   ;;  %s8445_s28 = smov 33  }
  0x32   :  { %10025 = sst [smem:[#allocation103_spill]] %s8635_s27 }
  0x33   :  { %s8655_s27 = sld [smem:[%s9931_s0 + %s8440_s22]]   ;;  %s8444_s22 = smov 32  }
  0x34   :  { %10026 = sst [smem:[#allocation104_spill]] %s8640_s19 }
  0x35   :  { %10027 = sst [smem:[#allocation105_spill]] %s8645_s9 }
  0x36   :  { %10028 = sst [smem:[#allocation106_spill]] %s8650_s8 }
  0x37   :  { %s8665_s9 = sld [smem:[%s9931_s0 + %s8442_s7]]   ;;  %s8446_s7 = smov 34  }
  0x38   :  { %s8670_s21 = sld [smem:[%s9931_s0 + %s8443_s15]]   ;;  %s8447_s15 = smov 35  }
  0x39   :  { %10029 = sst [smem:[#allocation107_spill]] %s8655_s27 }
  0x3a   :  { %s8675_s27 = sld [smem:[%s9931_s0 + %s8444_s22]]   ;;  %s8448_s22 = smov 36  }
  0x3b   :  { %s8680_s13 = sld [smem:[%s9931_s0 + %s8445_s28]]   ;;  %s8449_s28 = smov 37  }
  0x3d   :  { %10030 = sst [smem:[#allocation108_spill]] %s8665_s9 }
  0x3e   :  { %10031 = sst [smem:[#allocation109_spill]] %s8670_s21 }
  0x3f   :  { %s8685_s9 = sld [smem:[%s9931_s0 + %s8446_s7]]  }
  0x40   :  { %10032 = sst [smem:[#allocation110_spill]] %s8675_s27 }
  0x41   :  { %10033 = sst [smem:[#allocation111_spill]] %s8680_s13 }
  0x42   :  { %s8690_s21 = sld [smem:[%s9931_s0 + %s8447_s15]]  }
  0x43   :  { %s8695_s27 = sld [smem:[%s9931_s0 + %s8448_s22]]  }
  0x44   :  { %s8700_s13 = sld [smem:[%s9931_s0 + %s8449_s28]]  }
  0x45   :  { %10034 = sst [smem:[#allocation112_spill]] %s8685_s9 }
  0x4a   :  { %10035 = sst [smem:[#allocation113_spill]] %s8700_s13 }
  0x4b   :  { %81 = vsyncpa [#allocation3], 0 }
  0x4c   :  { %83 = vsyncpa [#allocation3 + $0x1], 0 }
  0x4d   :  { %84 = vsyncpa [#allocation6], 0 }
  0x4e   :  { %86 = vsyncpa [#allocation6 + $0x1], 0 }
  0x4f   :  { %87 = vsyncpa [#allocation9], 0 }
  0x50   :  { %88 = vsyncpa [#allocation12], 0 }
  0x51   :  { %89 = vsyncpa [#allocation15], 0 }
  0x52   :  { %90 = vsyncpa [#allocation18], 0 }
  0x53   :  { %91 = vsyncpa [#allocation21], 0 }
  0x54   :  { %92 = vsyncpa [#allocation24], 0 }
  0x55   :  { %93 = vsyncpa [#allocation27], 0 }
  0x56   :  { %94 = vsyncpa [#allocation30], 0 }
  0x57   :  { %95 = vsyncpa [#allocation33], 0 }
  0x58   :  { %96 = vsyncpa [#allocation36], 0 }
  0x59   :  { %97 = vsyncpa [#allocation39], 0 }
  0x5a   :  { %98 = vsyncpa [#allocation42], 0 }
  0x5b   :  { %99 = vsyncpa [#allocation45], 0 }
  0x5c   :  { %100 = vsyncpa [#allocation48], 0 }
  0x5d   :  { %101 = vsyncpa [#allocation51], 0 }
  0x5e   :  { %102 = vsyncpa [#allocation54], 0 }
  0x5f   :  { %103 = vsyncpa [#allocation57], 0 }
  0x60   :  { %104 = vsyncpa [#allocation4], 0 }
  0x61   :  { %106 = vsyncpa [#allocation4 + $0x1], 0 }
  0x62   :  { %107 = vsyncpa [#allocation60], 0 }
  0x63   :  { %109 = vsyncpa [#allocation60 + $0x1], 0  ;;  %s8702_s0 = smov 0   ;;  %s8704_s7 = smov 0  }
  0x64   :  { %s8706_s10 = smov 0   ;;  %s8708_s11 = smov 0  }
  0x65 LB: > { %s10036_s19 = sld [smem:[#allocation104_spill]]  ;;  %s10038_s17 = sld [smem:[#allocation86_spill]]  ;;  %s8403_s7 = sphi %s8704_s7, %s10138_s7   ;;  %s8399_s0 = sphi %s8702_s0, %s10137_s0   ;;  %s8411_s11 = sphi %s8708_s11, %s10135_s11   ;;  %s8407_s10 = sphi %s8706_s10, %s10139_s10  }
  0x66   : > { %s10037_s9 = sld [smem:[#allocation112_spill]]  ;;  %s10039_s14 = sld [smem:[#allocation91_spill]] }
  0x67   : > { %s10040_s12 = sld [smem:[#allocation101_spill]]  ;;  %s10041_s8 = sld [smem:[#allocation106_spill]] }
  0x68   : > { %s10042_s6 = sld [smem:[#allocation94_spill]]  ;;  %s10043_s5 = sld [smem:[#allocation99_spill]] }
  0x69   : > { %s10044_s4 = sld [smem:[#allocation97_spill]]  ;;  %10046 = sst [smem:[#allocation114_spill]] %s8399_s0 }
  0x6a   : > { %s10045_s3 = sld [smem:[#allocation89_spill]]  ;;  %s8723_s15 = sadd.s32 4294967295, %s8411_s11  }
  0x6b   : > { %s6124_s16 = sadd.s32 4294967294, %s8411_s11   ;;  %s8727_s18 = sadd.s32 1, %s8411_s11  }
  0x6c   : > { %10047 = sst [smem:[#allocation115_spill]] %s8727_s18  ;;  %s122_s22 = sadd.s32 1, %s8407_s10 }
  0x6d   : > { %s119_s23 = ssub.s32 %s8411_s11, %s8727_s18  ;;  %p129_p0 = scmp.ne.s32.totalorder %s8407_s10, %s8403_s7 }
  0x6e   : > { %p120_p1 = scmp.eq.s32.totalorder %s119_s23, 0  ;;  %p130_p2 = scmp.eq.s32.totalorder %s8411_s11, 0 }
  0x6f   : > { %p135_p3 = scmp.ne.s32.totalorder %s8403_s7, %s8399_s0  ;;  %p9998_p4 = scmp.eq.s32.totalorder %s8723_s15, 0 }
  0x70   : > { %s8739_s26 = scalar_select %p120_p1, %s8407_s10, %s122_s22  }
  0x71   : > { %p8741_p5 = por %p130_p2, %p129_p0  ;;  %p8747_p6 = por %p9998_p4, %p135_p3 }
  0x72   : > { %10048 = sst [smem:[#allocation116_spill]] %s8739_s26  ;;  %p899_p7 = scmp.eq.s32.totalorder %s8723_s15, 1 }
  0x73   : > { %s10050_s1 = scalar_select %p8747_p6, 1, 0 }
  0x74   : > { %p905_p8 = scmp.eq.s32.totalorder %s6124_s16, 1  ;;  %p6125_p9 = scmp.ge.s32.totalorder %s8411_s11, 1 }
  0x75   : > { %p938_p10 = scmp.lt.s32.totalorder %s8411_s11, 3  ;;  %p8754_p11 = por %p899_p7, %p129_p0 }
  0x76   : > { %p8758_p12 = por %p905_p8, %p135_p3 }
  0x77   : > { %s10051_s2 = scalar_select %p8754_p11, 1, 0 }
  0x78   : > { %s10053_s22 = scalar_select %p8758_p12, 1, 0 }
  0x79   : > { %10052 = sst [smem:[#allocation117_spill]] %s10051_s2  ;;  %p8762_p13 = pnand %p6125_p9, %p938_p10 }
  0x7a   : > { %10054 = sst [smem:[#allocation118_spill]] %s10053_s22  ;;  %s8450_s26 = smov (!%p8762_p13), [#allocation8]  }
  0x7b   : > { %s10055_s23 = scalar_select %p8762_p13, 1, 0 }
  0x7c   : > { %942 = sbr.rel (%p8762_p13) target bundleno = 949 (0x3b5), region = 12  ;;  %s964_s16 = sshll.u32 (!%p8762_p13), %s8450_s26, 4  ;;  %s965_s16 = int_to_ptr.vmem [resolvable:$true] %s964_s16 }
  0x7d   : > { %s7293_s18 = scalar_lea.hbm (!%p8762_p13), %s10038_s17, 32 }
  0x7e   : > { %p7294_p0 = scmp.ne.s32.totalorder (!%p8762_p13), %s10038_s17, %s7293_s18  ;;  %p7299_p3 = scmp.lt.u32.totalorder (!%p8762_p13), %s7293_s18, %s10038_s17 }
  0x80   : > { %p7295_p1 = pnand (!%p8762_p13), %p7294_p0, %p9998_p4 }
  0x82   : > { %p7296_p2 = pneg (!%p8762_p13), %p7295_p1 }
  0x84   : > { %p7301_p7 = pnand %p7299_p3, %p7296_p2 }
  0x86   : > { %7304 = shalt.err (!%p7301_p7)
}
  0x87   : > { %s7305_s22 = scalar_lea.vmem %s965_s16, 32  ;;  %p7312_p12 = scmp.lt.s32.totalorder %s965_s16, %s965_s16 }
  0x88   : > { %p7306_p8 = scmp.ne.s32.totalorder %s965_s16, %s7305_s22  ;;  %p7313_p11 = scmp.lt.s32.totalorder %s7305_s22, %s7305_s22 }
  0x8a   : > { %p7307_p9 = pnand %p7306_p8, %p9998_p4  ;;  %p7314_p6 = por %p7313_p11, %p7312_p12 }
  0x8c   : > { %p7308_p10 = pneg %p7307_p9 }
  0x8e   : > { %p7315_p13 = pnand %p7314_p6, %p7308_p10 }
  0x90   : > { %7318 = shalt.err (!%p7315_p13)
}
  0x91   : > { %6858 = dma.hbm_to_vmem [thread:$0]  (%p9998_p4), %s10038_s17, 32, %s965_s16, [#allocation9]  }
  0x92   : > { %s8451_s18 = smov [#allocation11]   ;;  %s8452_s0 = smov [#allocation14]  }
  0x93   : > { %s987_s26 = sshll.u32 %s8451_s18, 4  ;;  %s1012_s13 = sshll.u32 %s8452_s0, 4  ;;  %s988_s26 = int_to_ptr.vmem [resolvable:$true] %s987_s26  ;;  %s1013_s13 = int_to_ptr.vmem [resolvable:$true] %s1012_s13 }
  0x94   : > { %s7319_s2 = scalar_lea.hbm %s8540_s25, 512 }
  0x95   : > { %p7320_p0 = scmp.ne.s32.totalorder %s8540_s25, %s7319_s2  ;;  %p7325_p6 = scmp.lt.u32.totalorder %s7319_s2, %s8540_s25 }
  0x97   : > { %p7321_p1 = pnand %p7320_p0, %p9998_p4 }
  0x99   : > { %p7322_p11 = pneg %p7321_p1 }
  0x9b   : > { %p7327_p12 = pnand %p7325_p6, %p7322_p11 }
  0x9d   : > { %7330 = shalt.err (!%p7327_p12)
}
  0x9e   : > { %s7331_s22 = scalar_lea.vmem %s988_s26, 512  ;;  %p7338_p7 = scmp.lt.s32.totalorder %s988_s26, %s988_s26 }
  0x9f   : > { %p7332_p13 = scmp.ne.s32.totalorder %s988_s26, %s7331_s22  ;;  %p7339_p8 = scmp.lt.s32.totalorder %s7331_s22, %s7331_s22 }
  0xa1   : > { %p7333_p2 = pnand %p7332_p13, %p9998_p4  ;;  %p7340_p9 = por %p7339_p8, %p7338_p7 }
  0xa3   : > { %p7334_p3 = pneg %p7333_p2 }
  0xa5   : > { %p7341_p10 = pnand %p7340_p9, %p7334_p3 }
  0xa7   : > { %7344 = shalt.err (!%p7341_p10)
}
  0xa8   : > { %s9962_s0 = smov 128   ;;  %s9964_s2 = smov 8  }
  0xa9   : > { %6862 = dma.hbm_to_vmem [thread:$0]  (%p9998_p4), %s8540_s25, 512, %s988_s26, [#allocation12], %s9962_s0, %s9962_s0, %s9964_s2  }
  0xaa   : > { %s7345_s16 = scalar_lea.hbm %s10045_s3, 64 }
  0xab   : > { %p7346_p0 = scmp.ne.s32.totalorder %s10045_s3, %s7345_s16  ;;  %p7351_p6 = scmp.lt.u32.totalorder %s7345_s16, %s10045_s3 }
  0xad   : > { %p7347_p1 = pnand %p7346_p0, %p9998_p4 }
  0xaf   : > { %p7348_p11 = pneg %p7347_p1 }
  0xb1   : > { %p7353_p12 = pnand %p7351_p6, %p7348_p11 }
  0xb3   : > { %7356 = shalt.err (!%p7353_p12)
}
  0xb4   : > { %s7357_s18 = scalar_lea.vmem %s1013_s13, 64  ;;  %p7364_p7 = scmp.lt.s32.totalorder %s1013_s13, %s1013_s13 }
  0xb5   : > { %p7358_p13 = scmp.ne.s32.totalorder %s1013_s13, %s7357_s18  ;;  %p7365_p8 = scmp.lt.s32.totalorder %s7357_s18, %s7357_s18 }
  0xb7   : > { %p7359_p2 = pnand %p7358_p13, %p9998_p4  ;;  %p7366_p9 = por %p7365_p8, %p7364_p7 }
  0xb9   : > { %p7360_p3 = pneg %p7359_p2 }
  0xbb   : > { %p7367_p10 = pnand %p7366_p9, %p7360_p3 }
  0xbd   : > { %7370 = shalt.err (!%p7367_p10)
}
  0xbe   : > { %6866 = dma.hbm_to_vmem [thread:$0]  (%p9998_p4), %s10045_s3, 64, %s1013_s13, [#allocation15]  }
  0xbf   : > { %s8455_s26 = smov [#allocation17]   ;;  %s8456_s16 = smov [#allocation20]  }
  0xc0   : > { %s1036_s22 = sshll.u32 %s8455_s26, 4  ;;  %s1058_s0 = sshll.u32 %s8456_s16, 4  ;;  %s1037_s22 = int_to_ptr.vmem [resolvable:$true] %s1036_s22  ;;  %s1059_s0 = int_to_ptr.vmem [resolvable:$true] %s1058_s0 }
  0xc1   : > { %s7371_s2 = scalar_lea.hbm %s10039_s14, 64 }
  0xc2   : > { %p7372_p0 = scmp.ne.s32.totalorder %s10039_s14, %s7371_s2  ;;  %p7377_p6 = scmp.lt.u32.totalorder %s7371_s2, %s10039_s14 }
  0xc4   : > { %p7373_p1 = pnand %p7372_p0, %p9998_p4 }
  0xc6   : > { %p7374_p11 = pneg %p7373_p1 }
  0xc8   : > { %p7379_p12 = pnand %p7377_p6, %p7374_p11 }
  0xca   : > { %7382 = shalt.err (!%p7379_p12)
}
  0xcb   : > { %s7383_s18 = scalar_lea.vmem %s1037_s22, 64  ;;  %p7390_p7 = scmp.lt.s32.totalorder %s1037_s22, %s1037_s22 }
  0xcc   : > { %p7384_p13 = scmp.ne.s32.totalorder %s1037_s22, %s7383_s18  ;;  %p7391_p8 = scmp.lt.s32.totalorder %s7383_s18, %s7383_s18 }
  0xce   : > { %p7385_p2 = pnand %p7384_p13, %p9998_p4  ;;  %p7392_p9 = por %p7391_p8, %p7390_p7 }
  0xd0   : > { %p7386_p3 = pneg %p7385_p2 }
  0xd2   : > { %p7393_p10 = pnand %p7392_p9, %p7386_p3 }
  0xd4   : > { %7396 = shalt.err (!%p7393_p10)
}
  0xd5   : > { %6870 = dma.hbm_to_vmem [thread:$0]  (%p9998_p4), %s10039_s14, 64, %s1037_s22, [#allocation18]  }
  0xd6   : > { %s7397_s13 = scalar_lea.hbm %s8570_s24, 16 }
  0xd7   : > { %p7398_p0 = scmp.ne.s32.totalorder %s8570_s24, %s7397_s13  ;;  %p7403_p6 = scmp.lt.u32.totalorder %s7397_s13, %s8570_s24 }
  0xd9   : > { %p7399_p1 = pnand %p7398_p0, %p9998_p4 }
  0xdb   : > { %p7400_p11 = pneg %p7399_p1 }
  0xdd   : > { %p7405_p12 = pnand %p7403_p6, %p7400_p11 }
  0xdf   : > { %7408 = shalt.err (!%p7405_p12)
}
  0xe0   : > { %s7409_s2 = scalar_lea.vmem %s1059_s0, 16  ;;  %s7415_s26 = scalar_lea.vmem %s1059_s0, 32 }
  0xe1   : > { %p7410_p13 = scmp.ne.s32.totalorder %s1059_s0, %s7409_s2  ;;  %p7416_p7 = scmp.lt.s32.totalorder %s1059_s0, %s1059_s0 }
  0xe2   : > { %p7417_p8 = scmp.lt.s32.totalorder %s7415_s26, %s7409_s2 }
  0xe3   : > { %p7411_p2 = pnand %p7410_p13, %p9998_p4 }
  0xe4   : > { %p7418_p9 = por %p7417_p8, %p7416_p7 }
  0xe5   : > { %p7412_p3 = pneg %p7411_p2 }
  0xe7   : > { %p7419_p10 = pnand %p7418_p9, %p7412_p3 }
  0xe9   : > { %7422 = shalt.err (!%p7419_p10)
}
  0xea   : > { %6874 = dma.hbm_to_vmem [thread:$0]  (%p9998_p4), %s8570_s24, 16, %s1059_s0, [#allocation21]  }
  0xeb   : > { %s8457_s22 = smov [#allocation23]   ;;  %s7423_s18 = scalar_lea.hbm %s10042_s6, 16 }
  0xec   : > { %s1082_s16 = sshll.u32 %s8457_s22, 4  ;;  %p7424_p0 = scmp.ne.s32.totalorder %s10042_s6, %s7423_s18  ;;  %s1083_s16 = int_to_ptr.vmem [resolvable:$true] %s1082_s16 }
  0xed   : > { %p7429_p6 = scmp.lt.u32.totalorder %s7423_s18, %s10042_s6 }
  0xee   : > { %p7425_p1 = pnand %p7424_p0, %p9998_p4 }
  0xf0   : > { %p7426_p11 = pneg %p7425_p1 }
  0xf2   : > { %p7431_p12 = pnand %p7429_p6, %p7426_p11 }
  0xf4   : > { %7434 = shalt.err (!%p7431_p12)
}
  0xf5   : > { %s7435_s13 = scalar_lea.vmem %s1083_s16, 16  ;;  %s7441_s2 = scalar_lea.vmem %s1083_s16, 32 }
  0xf6   : > { %p7436_p13 = scmp.ne.s32.totalorder %s1083_s16, %s7435_s13  ;;  %p7442_p7 = scmp.lt.s32.totalorder %s1083_s16, %s1083_s16 }
  0xf7   : > { %p7443_p8 = scmp.lt.s32.totalorder %s7441_s2, %s7435_s13 }
  0xf8   : > { %p7437_p2 = pnand %p7436_p13, %p9998_p4 }
  0xf9   : > { %p7444_p9 = por %p7443_p8, %p7442_p7 }
  0xfa   : > { %p7438_p3 = pneg %p7437_p2 }
  0xfc   : > { %p7445_p10 = pnand %p7444_p9, %p7438_p3 }
  0xfe   : > { %7448 = shalt.err (!%p7445_p10)
}
  0xff   : > { %6878 = dma.hbm_to_vmem [thread:$0]  (%p9998_p4), %s10042_s6, 16, %s1083_s16, [#allocation24]  }
 0x100   : > { %s8458_s0 = smov [#allocation26]   ;;  %s8459_s22 = smov [#allocation29]  }
 0x101   : > { %s1105_s26 = sshll.u32 %s8458_s0, 4  ;;  %s1130_s18 = sshll.u32 %s8459_s22, 4  ;;  %s1106_s26 = int_to_ptr.vmem [resolvable:$true] %s1105_s26  ;;  %s8831_s18 = int_to_ptr.vmem [resolvable:$true] %s1130_s18 }
 0x102   : > { %s7449_s3 = scalar_lea.hbm %s8590_s20, 96 }
 0x103   : > { %p7450_p0 = scmp.ne.s32.totalorder %s8590_s20, %s7449_s3  ;;  %p7455_p6 = scmp.lt.u32.totalorder %s7449_s3, %s8590_s20 }
 0x105   : > { %p7451_p1 = pnand %p7450_p0, %p9998_p4 }
 0x107   : > { %p7452_p11 = pneg %p7451_p1 }
 0x109   : > { %p7457_p12 = pnand %p7455_p6, %p7452_p11 }
 0x10b   : > { %7460 = shalt.err (!%p7457_p12)
}
 0x10c   : > { %s7461_s13 = scalar_lea.vmem %s1106_s26, 96  ;;  %p7468_p7 = scmp.lt.s32.totalorder %s1106_s26, %s1106_s26 }
 0x10d   : > { %p7462_p13 = scmp.ne.s32.totalorder %s1106_s26, %s7461_s13  ;;  %p7469_p8 = scmp.lt.s32.totalorder %s7461_s13, %s7461_s13 }
 0x10f   : > { %p7463_p2 = pnand %p7462_p13, %p9998_p4  ;;  %p7470_p9 = por %p7469_p8, %p7468_p7 }
 0x111   : > { %p7464_p3 = pneg %p7463_p2 }
 0x113   : > { %p7471_p10 = pnand %p7470_p9, %p7464_p3 }
 0x115   : > { %7474 = shalt.err (!%p7471_p10)
}
 0x116   : > { %s9967_s16 = smov 32   ;;  %s9968_s3 = smov 2  }
 0x117   : > { %6882 = dma.hbm_to_vmem [thread:$0]  (%p9998_p4), %s8590_s20, 96, %s1106_s26, [#allocation27], %s9967_s16, %s9967_s16, %s9968_s3  }
 0x118   : > { %s7475_s2 = scalar_lea.hbm %s10044_s4, 64 }
 0x119   : > { %p7476_p0 = scmp.ne.s32.totalorder %s10044_s4, %s7475_s2  ;;  %p7481_p6 = scmp.lt.u32.totalorder %s7475_s2, %s10044_s4 }
 0x11b   : > { %p7477_p1 = pnand %p7476_p0, %p9998_p4 }
 0x11d   : > { %p7478_p11 = pneg %p7477_p1 }
 0x11f   : > { %p7483_p12 = pnand %p7481_p6, %p7478_p11 }
 0x121   : > { %7486 = shalt.err (!%p7483_p12)
}
 0x122   : > { %s7487_s0 = scalar_lea.vmem %s8831_s18, 64  ;;  %p7494_p7 = scmp.lt.s32.totalorder %s8831_s18, %s8831_s18 }
 0x123   : > { %p7488_p13 = scmp.ne.s32.totalorder %s8831_s18, %s7487_s0  ;;  %p7495_p8 = scmp.lt.s32.totalorder %s7487_s0, %s7487_s0 }
 0x125   : > { %p7489_p2 = pnand %p7488_p13, %p9998_p4  ;;  %p7496_p9 = por %p7495_p8, %p7494_p7 }
 0x127   : > { %p7490_p3 = pneg %p7489_p2 }
 0x129   : > { %p7497_p10 = pnand %p7496_p9, %p7490_p3 }
 0x12b   : > { %7500 = shalt.err (!%p7497_p10)
}
 0x12c   : > { %6886 = dma.hbm_to_vmem [thread:$0]  (%p9998_p4), %s10044_s4, 64, %s8831_s18, [#allocation30]  }
 0x12d   : > { %s8462_s26 = smov [#allocation32]   ;;  %s8463_s13 = smov [#allocation35]  }
 0x12e   : > { %s1151_s22 = sshll.u32 %s8462_s26, 4  ;;  %s1175_s2 = sshll.u32 %s8463_s13, 4  ;;  %s1152_s22 = int_to_ptr.vmem [resolvable:$true] %s1151_s22  ;;  %s8861_s2 = int_to_ptr.vmem [resolvable:$true] %s1175_s2 }
 0x12f   : > { %s7501_s0 = scalar_lea.hbm %s10043_s5, 256 }
 0x130   : > { %p7502_p0 = scmp.ne.s32.totalorder %s10043_s5, %s7501_s0  ;;  %p7507_p6 = scmp.lt.u32.totalorder %s7501_s0, %s10043_s5 }
 0x132   : > { %p7503_p1 = pnand %p7502_p0, %p9998_p4 }
 0x134   : > { %p7504_p11 = pneg %p7503_p1 }
 0x136   : > { %p7509_p12 = pnand %p7507_p6, %p7504_p11 }
 0x138   : > { %7512 = shalt.err (!%p7509_p12)
}
 0x139   : > { %s7513_s16 = scalar_lea.vmem %s1152_s22, 256  ;;  %p7520_p7 = scmp.lt.s32.totalorder %s1152_s22, %s1152_s22 }
 0x13a   : > { %p7514_p13 = scmp.ne.s32.totalorder %s1152_s22, %s7513_s16  ;;  %p7521_p8 = scmp.lt.s32.totalorder %s7513_s16, %s7513_s16 }
 0x13c   : > { %p7515_p2 = pnand %p7514_p13, %p9998_p4  ;;  %p7522_p9 = por %p7521_p8, %p7520_p7 }
 0x13e   : > { %p7516_p3 = pneg %p7515_p2 }
 0x140   : > { %p7523_p10 = pnand %p7522_p9, %p7516_p3 }
 0x142   : > { %7526 = shalt.err (!%p7523_p10)
}
 0x143   : > { %s10056_s18 = smov 8   ;;  %s10057_s26 = smov 128  }
 0x144   : > { %6890 = dma.hbm_to_vmem [thread:$0]  (%p9998_p4), %s10043_s5, 256, %s1152_s22, [#allocation33], %s10057_s26, %s10057_s26, %s10056_s18  }
 0x145   : > { %s7527_s13 = scalar_lea.hbm %s10040_s12, 256 }
 0x146   : > { %p7528_p0 = scmp.ne.s32.totalorder %s10040_s12, %s7527_s13  ;;  %p7533_p6 = scmp.lt.u32.totalorder %s7527_s13, %s10040_s12 }
 0x148   : > { %p7529_p1 = pnand %p7528_p0, %p9998_p4 }
 0x14a   : > { %p7530_p11 = pneg %p7529_p1 }
 0x14c   : > { %p7535_p12 = pnand %p7533_p6, %p7530_p11 }
 0x14e   : > { %7538 = shalt.err (!%p7535_p12)
}
 0x14f   : > { %s7539_s16 = scalar_lea.vmem %s8861_s2, 256  ;;  %p7546_p7 = scmp.lt.s32.totalorder %s8861_s2, %s8861_s2 }
 0x150   : > { %p7540_p13 = scmp.ne.s32.totalorder %s8861_s2, %s7539_s16  ;;  %p7547_p8 = scmp.lt.s32.totalorder %s7539_s16, %s7539_s16 }
 0x152   : > { %p7541_p2 = pnand %p7540_p13, %p9998_p4  ;;  %p7548_p9 = por %p7547_p8, %p7546_p7 }
 0x154   : > { %p7542_p3 = pneg %p7541_p2 }
 0x156   : > { %p7549_p10 = pnand %p7548_p9, %p7542_p3 }
 0x158   : > { %7552 = shalt.err (!%p7549_p10)
}
 0x159   : > { %6894 = dma.hbm_to_vmem [thread:$0]  (%p9998_p4), %s10040_s12, 256, %s8861_s2, [#allocation36], %s10057_s26, %s10057_s26, %s10056_s18  }
 0x15a   : > { %s8464_s22 = smov [#allocation38]   ;;  %s7553_s13 = scalar_lea.hbm %s8630_s30, 32 }
 0x15b   : > { %s1200_s0 = sshll.u32 %s8464_s22, 4  ;;  %p7554_p0 = scmp.ne.s32.totalorder %s8630_s30, %s7553_s13  ;;  %s1201_s0 = int_to_ptr.vmem [resolvable:$true] %s1200_s0 }
 0x15c   : > { %p7559_p6 = scmp.lt.u32.totalorder %s7553_s13, %s8630_s30 }
 0x15d   : > { %p7555_p1 = pnand %p7554_p0, %p9998_p4 }
 0x15f   : > { %p7556_p11 = pneg %p7555_p1 }
 0x161   : > { %p7561_p12 = pnand %p7559_p6, %p7556_p11 }
 0x163   : > { %7564 = shalt.err (!%p7561_p12)
}
 0x164   : > { %s7565_s16 = scalar_lea.vmem %s1201_s0, 32  ;;  %p7572_p7 = scmp.lt.s32.totalorder %s1201_s0, %s1201_s0 }
 0x165   : > { %p7566_p13 = scmp.ne.s32.totalorder %s1201_s0, %s7565_s16  ;;  %p7573_p8 = scmp.lt.s32.totalorder %s7565_s16, %s7565_s16 }
 0x167   : > { %p7567_p2 = pnand %p7566_p13, %p9998_p4  ;;  %p7574_p9 = por %p7573_p8, %p7572_p7 }
 0x169   : > { %p7568_p3 = pneg %p7567_p2 }
 0x16b   : > { %p7575_p10 = pnand %p7574_p9, %p7568_p3 }
 0x16d   : > { %7578 = shalt.err (!%p7575_p10)
}
 0x16e   : > { %6898 = dma.hbm_to_vmem [thread:$0]  (%p9998_p4), %s8630_s30, 32, %s1201_s0, [#allocation39]  }
 0x16f   : > { %s8465_s2 = smov [#allocation41]   ;;  %s7579_s13 = scalar_lea.hbm %s10036_s19, 512 }
 0x170   : > { %s1223_s22 = sshll.u32 %s8465_s2, 4  ;;  %p7580_p0 = scmp.ne.s32.totalorder %s10036_s19, %s7579_s13  ;;  %s1224_s22 = int_to_ptr.vmem [resolvable:$true] %s1223_s22 }
 0x171   : > { %p7585_p6 = scmp.lt.u32.totalorder %s7579_s13, %s10036_s19 }
 0x172   : > { %p7581_p1 = pnand %p7580_p0, %p9998_p4 }
 0x174   : > { %p7582_p11 = pneg %p7581_p1 }
 0x176   : > { %p7587_p12 = pnand %p7585_p6, %p7582_p11 }
 0x178   : > { %7590 = shalt.err (!%p7587_p12)
}
 0x179   : > { %s7591_s16 = scalar_lea.vmem %s1224_s22, 512  ;;  %p7598_p7 = scmp.lt.s32.totalorder %s1224_s22, %s1224_s22 }
 0x17a   : > { %p7592_p13 = scmp.ne.s32.totalorder %s1224_s22, %s7591_s16  ;;  %p7599_p8 = scmp.lt.s32.totalorder %s7591_s16, %s7591_s16 }
 0x17c   : > { %p7593_p2 = pnand %p7592_p13, %p9998_p4  ;;  %p7600_p9 = por %p7599_p8, %p7598_p7 }
 0x17e   : > { %p7594_p3 = pneg %p7593_p2 }
 0x180   : > { %p7601_p10 = pnand %p7600_p9, %p7594_p3 }
 0x182   : > { %7604 = shalt.err (!%p7601_p10)
}
 0x183   : > { %s9972_s0 = smov 64   ;;  %s9974_s2 = smov 4  }
 0x184   : > { %6902 = dma.hbm_to_vmem [thread:$0]  (%p9998_p4), %s10036_s19, 512, %s1224_s22, [#allocation42], %s9972_s0, %s9972_s0, %s9974_s2  }
 0x185   : > { %s8468_s13 = smov [#allocation44]   ;;  %s8469_s4 = smov [#allocation47]  }
 0x186   : > { %s1249_s3 = sshll.u32 %s8468_s13, 4  ;;  %s1275_s16 = sshll.u32 %s8469_s4, 4  ;;  %s1250_s3 = int_to_ptr.vmem [resolvable:$true] %s1249_s3  ;;  %s8917_s16 = int_to_ptr.vmem [resolvable:$true] %s1275_s16 }
 0x187   : > { %s7605_s5 = scalar_lea.hbm %s10041_s8, 32 }
 0x188   : > { %p7606_p0 = scmp.ne.s32.totalorder %s10041_s8, %s7605_s5  ;;  %p7611_p6 = scmp.lt.u32.totalorder %s7605_s5, %s10041_s8 }
 0x18a   : > { %p7607_p1 = pnand %p7606_p0, %p9998_p4 }
 0x18c   : > { %p7608_p11 = pneg %p7607_p1 }
 0x18e   : > { %p7613_p12 = pnand %p7611_p6, %p7608_p11 }
 0x190   : > { %7616 = shalt.err (!%p7613_p12)
}
 0x191   : > { %s7617_s6 = scalar_lea.vmem %s1250_s3, 32  ;;  %p7624_p7 = scmp.lt.s32.totalorder %s1250_s3, %s1250_s3 }
 0x192   : > { %p7618_p13 = scmp.ne.s32.totalorder %s1250_s3, %s7617_s6  ;;  %p7625_p8 = scmp.lt.s32.totalorder %s7617_s6, %s7617_s6 }
 0x194   : > { %p7619_p2 = pnand %p7618_p13, %p9998_p4  ;;  %p7626_p9 = por %p7625_p8, %p7624_p7 }
 0x196   : > { %p7620_p3 = pneg %p7619_p2 }
 0x198   : > { %p7627_p10 = pnand %p7626_p9, %p7620_p3 }
 0x19a   : > { %7630 = shalt.err (!%p7627_p10)
}
 0x19b   : > { %s9979_s4 = smov 16   ;;  %s9981_s5 = smov 1  }
 0x19c   : > { %6906 = dma.hbm_to_vmem [thread:$0]  (%p9998_p4), %s10041_s8, 32, %s1250_s3, [#allocation45], %s9979_s4, %s9979_s4, %s9981_s5  }
 0x19d   : > { %s7631_s22 = scalar_lea.hbm %s8660_s29, 32 }
 0x19e   : > { %p7632_p0 = scmp.ne.s32.totalorder %s8660_s29, %s7631_s22  ;;  %p7637_p6 = scmp.lt.u32.totalorder %s7631_s22, %s8660_s29 }
 0x1a0   : > { %p7633_p1 = pnand %p7632_p0, %p9998_p4 }
 0x1a2   : > { %p7634_p11 = pneg %p7633_p1 }
 0x1a4   : > { %p7639_p12 = pnand %p7637_p6, %p7634_p11 }
 0x1a6   : > { %7642 = shalt.err (!%p7639_p12)
}
 0x1a7   : > { %s7643_s6 = scalar_lea.vmem %s8917_s16, 32  ;;  %p7650_p7 = scmp.lt.s32.totalorder %s8917_s16, %s8917_s16 }
 0x1a8   : > { %p7644_p13 = scmp.ne.s32.totalorder %s8917_s16, %s7643_s6  ;;  %p7651_p8 = scmp.lt.s32.totalorder %s7643_s6, %s7643_s6 }
 0x1aa   : > { %p7645_p2 = pnand %p7644_p13, %p9998_p4  ;;  %p7652_p9 = por %p7651_p8, %p7650_p7 }
 0x1ac   : > { %p7646_p3 = pneg %p7645_p2 }
 0x1ae   : > { %p7653_p10 = pnand %p7652_p9, %p7646_p3 }
 0x1b0   : > { %7656 = shalt.err (!%p7653_p10)
}
 0x1b1   : > { %s10058_s3 = sld [smem:[#allocation109_spill]]  ;;  %s8472_s13 = smov [#allocation50]  }
 0x1b2   : > { %6910 = dma.hbm_to_vmem [thread:$0]  (%p9998_p4), %s8660_s29, 32, %s8917_s16, [#allocation48], %s9979_s4, %s9979_s4, %s9981_s5  }
 0x1b3   : > { %s1301_s22 = sshll.u32 %s8472_s13, 4  ;;  %s8473_s0 = smov [#allocation53]   ;;  %s1302_s22 = int_to_ptr.vmem [resolvable:$true] %s1301_s22 }
 0x1b4   : > { %s1327_s2 = sshll.u32 %s8473_s0, 4  ;;  %s8950_s2 = int_to_ptr.vmem [resolvable:$true] %s1327_s2 }
 0x1b7   : > { %s7657_s6 = scalar_lea.hbm %s10058_s3, 32 }
 0x1b8   : > { %p7658_p0 = scmp.ne.s32.totalorder %s10058_s3, %s7657_s6  ;;  %p7663_p6 = scmp.lt.u32.totalorder %s7657_s6, %s10058_s3 }
 0x1ba   : > { %p7659_p1 = pnand %p7658_p0, %p9998_p4 }
 0x1bc   : > { %p7660_p11 = pneg %p7659_p1 }
 0x1be   : > { %p7665_p12 = pnand %p7663_p6, %p7660_p11 }
 0x1c0   : > { %7668 = shalt.err (!%p7665_p12)
}
 0x1c1   : > { %s7669_s8 = scalar_lea.vmem %s1302_s22, 32  ;;  %p7676_p7 = scmp.lt.s32.totalorder %s1302_s22, %s1302_s22 }
 0x1c2   : > { %p7670_p13 = scmp.ne.s32.totalorder %s1302_s22, %s7669_s8  ;;  %p7677_p8 = scmp.lt.s32.totalorder %s7669_s8, %s7669_s8 }
 0x1c4   : > { %p7671_p2 = pnand %p7670_p13, %p9998_p4  ;;  %p7678_p9 = por %p7677_p8, %p7676_p7 }
 0x1c6   : > { %p7672_p3 = pneg %p7671_p2 }
 0x1c8   : > { %p7679_p10 = pnand %p7678_p9, %p7672_p3 }
 0x1ca   : > { %7682 = shalt.err (!%p7679_p10)
}
 0x1cb   : > { %s10059_s0 = sld [smem:[#allocation111_spill]] }
 0x1cc   : > { %6914 = dma.hbm_to_vmem [thread:$0]  (%p9998_p4), %s10058_s3, 32, %s1302_s22, [#allocation51], %s9979_s4, %s9979_s4, %s9981_s5  }
 0x1d1   : > { %s10060_s16 = smov %s10059_s0  ;;  %s7683_s13 = scalar_lea.hbm %s10059_s0, 32 }
 0x1d2   : > { %p7684_p0 = scmp.ne.s32.totalorder %s10060_s16, %s7683_s13  ;;  %p7689_p6 = scmp.lt.u32.totalorder %s7683_s13, %s10060_s16 }
 0x1d4   : > { %p7685_p1 = pnand %p7684_p0, %p9998_p4 }
 0x1d6   : > { %p7686_p11 = pneg %p7685_p1 }
 0x1d8   : > { %p7691_p12 = pnand %p7689_p6, %p7686_p11 }
 0x1da   : > { %7694 = shalt.err (!%p7691_p12)
}
 0x1db   : > { %s7695_s8 = scalar_lea.vmem %s8950_s2, 32  ;;  %p7702_p7 = scmp.lt.s32.totalorder %s8950_s2, %s8950_s2 }
 0x1dc   : > { %p7696_p13 = scmp.ne.s32.totalorder %s8950_s2, %s7695_s8  ;;  %p7703_p8 = scmp.lt.s32.totalorder %s7695_s8, %s7695_s8 }
 0x1de   : > { %p7697_p2 = pnand %p7696_p13, %p9998_p4  ;;  %p7704_p9 = por %p7703_p8, %p7702_p7 }
 0x1e0   : > { %p7698_p3 = pneg %p7697_p2 }
 0x1e2   : > { %p7705_p10 = pnand %p7704_p9, %p7698_p3 }
 0x1e4   : > { %7708 = shalt.err (!%p7705_p10)
}
 0x1e5   : > { %s10061_s22 = sld [smem:[#allocation85_spill]]  ;;  %s8474_s6 = smov [#allocation7]  }
 0x1e6   : > { %6918 = dma.hbm_to_vmem [thread:$0]  (%p9998_p4), %s10060_s16, 32, %s8950_s2, [#allocation54], %s9979_s4, %s9979_s4, %s9981_s5  }
 0x1e7   : > { %s950_s0 = sshll.u32 %s8474_s6, 4  ;;  %s8475_s13 = smov [#allocation10]   ;;  %s951_s0 = int_to_ptr.vmem [resolvable:$true] %s950_s0 }
 0x1e8   : > { %s974_s8 = sshll.u32 %s8475_s13, 4  ;;  %s975_s8 = int_to_ptr.vmem [resolvable:$true] %s974_s8 }
 0x1eb   : > { %s7709_s3 = scalar_lea.hbm %s10061_s22, 256 }
 0x1ec   : > { %p7710_p0 = scmp.ne.s32.totalorder %s10061_s22, %s7709_s3  ;;  %p7715_p6 = scmp.lt.u32.totalorder %s7709_s3, %s10061_s22 }
 0x1ee   : > { %p7711_p1 = pnand %p7710_p0, %p9998_p4 }
 0x1f0   : > { %p7712_p11 = pneg %p7711_p1 }
 0x1f2   : > { %p7717_p12 = pnand %p7715_p6, %p7712_p11 }
 0x1f4   : > { %7720 = shalt.err (!%p7717_p12)
}
 0x1f5   : > { %s7721_s12 = scalar_lea.vmem %s951_s0, 256  ;;  %p7728_p7 = scmp.lt.s32.totalorder %s951_s0, %s951_s0 }
 0x1f6   : > { %p7722_p13 = scmp.ne.s32.totalorder %s951_s0, %s7721_s12  ;;  %p7729_p8 = scmp.lt.s32.totalorder %s7721_s12, %s7721_s12 }
 0x1f8   : > { %p7723_p2 = pnand %p7722_p13, %p9998_p4  ;;  %p7730_p9 = por %p7729_p8, %p7728_p7 }
 0x1fa   : > { %p7724_p3 = pneg %p7723_p2 }
 0x1fc   : > { %p7731_p10 = pnand %p7730_p9, %p7724_p3 }
 0x1fe   : > { %7734 = shalt.err (!%p7731_p10)
}
 0x1ff   : > { %s10062_s2 = sld [smem:[#allocation87_spill]] }
 0x200   : > { %6856 = dma.hbm_to_vmem [thread:$0]  (%p9998_p4), %s10061_s22, 256, %s951_s0, [#allocation6], %s10057_s26, %s10057_s26, %s10056_s18  }
 0x205   : > { %s7735_s3 = scalar_lea.hbm %s10062_s2, 256 }
 0x206   : > { %p7736_p0 = scmp.ne.s32.totalorder %s10062_s2, %s7735_s3  ;;  %p7741_p6 = scmp.lt.u32.totalorder %s7735_s3, %s10062_s2 }
 0x208   : > { %p7737_p1 = pnand %p7736_p0, %p9998_p4 }
 0x20a   : > { %p7738_p11 = pneg %p7737_p1 }
 0x20c   : > { %p7743_p12 = pnand %p7741_p6, %p7738_p11 }
 0x20e   : > { %7746 = shalt.err (!%p7743_p12)
}
 0x20f   : > { %s7747_s12 = scalar_lea.vmem %s975_s8, 256  ;;  %p7754_p7 = scmp.lt.s32.totalorder %s975_s8, %s975_s8 }
 0x210   : > { %p7748_p13 = scmp.ne.s32.totalorder %s975_s8, %s7747_s12  ;;  %p7755_p8 = scmp.lt.s32.totalorder %s7747_s12, %s7747_s12 }
 0x212   : > { %p7749_p2 = pnand %p7748_p13, %p9998_p4  ;;  %p7756_p9 = por %p7755_p8, %p7754_p7 }
 0x214   : > { %p7750_p3 = pneg %p7749_p2 }
 0x216   : > { %p7757_p10 = pnand %p7756_p9, %p7750_p3 }
 0x218   : > { %7760 = shalt.err (!%p7757_p10)
}
 0x219   : > { %s10063_s6 = sld [smem:[#allocation88_spill]]  ;;  %s8476_s0 = smov [#allocation13]  }
 0x21a   : > { %6860 = dma.hbm_to_vmem [thread:$0]  (%p9998_p4), %s10062_s2, 256, %s975_s8, [#allocation9], %s10057_s26, %s10057_s26, %s10056_s18  }
 0x21b   : > { %s1001_s13 = sshll.u32 %s8476_s0, 4  ;;  %s8477_s3 = smov [#allocation16]   ;;  %s1002_s13 = int_to_ptr.vmem [resolvable:$true] %s1001_s13 }
 0x21c   : > { %s1022_s4 = sshll.u32 %s8477_s3, 4  ;;  %s1023_s4 = int_to_ptr.vmem [resolvable:$true] %s1022_s4 }
 0x21f   : > { %s7761_s12 = scalar_lea.hbm %s10063_s6, 64 }
 0x220   : > { %p7762_p0 = scmp.ne.s32.totalorder %s10063_s6, %s7761_s12  ;;  %p7767_p6 = scmp.lt.u32.totalorder %s7761_s12, %s10063_s6 }
 0x222   : > { %p7763_p1 = pnand %p7762_p0, %p9998_p4 }
 0x224   : > { %p7764_p11 = pneg %p7763_p1 }
 0x226   : > { %p7769_p12 = pnand %p7767_p6, %p7764_p11 }
 0x228   : > { %7772 = shalt.err (!%p7769_p12)
}
 0x229   : > { %s7773_s5 = scalar_lea.vmem %s1002_s13, 64  ;;  %p7780_p7 = scmp.lt.s32.totalorder %s1002_s13, %s1002_s13 }
 0x22a   : > { %p7774_p13 = scmp.ne.s32.totalorder %s1002_s13, %s7773_s5  ;;  %p7781_p8 = scmp.lt.s32.totalorder %s7773_s5, %s7773_s5 }
 0x22c   : > { %p7775_p2 = pnand %p7774_p13, %p9998_p4  ;;  %p7782_p9 = por %p7781_p8, %p7780_p7 }
 0x22e   : > { %p7776_p3 = pneg %p7775_p2 }
 0x230   : > { %p7783_p10 = pnand %p7782_p9, %p7776_p3 }
 0x232   : > { %7786 = shalt.err (!%p7783_p10)
}
 0x233   : > { %s10064_s8 = sld [smem:[#allocation90_spill]] }
 0x234   : > { %6864 = dma.hbm_to_vmem [thread:$0]  (%p9998_p4), %s10063_s6, 64, %s1002_s13, [#allocation12]  }
 0x239   : > { %s7787_s0 = scalar_lea.hbm %s10064_s8, 96 }
 0x23a   : > { %p7788_p0 = scmp.ne.s32.totalorder %s10064_s8, %s7787_s0  ;;  %p7793_p6 = scmp.lt.u32.totalorder %s7787_s0, %s10064_s8 }
 0x23c   : > { %p7789_p1 = pnand %p7788_p0, %p9998_p4 }
 0x23e   : > { %p7790_p11 = pneg %p7789_p1 }
 0x240   : > { %p7795_p12 = pnand %p7793_p6, %p7790_p11 }
 0x242   : > { %7798 = shalt.err (!%p7795_p12)
}
 0x243   : > { %s7799_s5 = scalar_lea.vmem %s1023_s4, 96  ;;  %p7806_p7 = scmp.lt.s32.totalorder %s1023_s4, %s1023_s4 }
 0x244   : > { %p7800_p13 = scmp.ne.s32.totalorder %s1023_s4, %s7799_s5  ;;  %p7807_p8 = scmp.lt.s32.totalorder %s7799_s5, %s7799_s5 }
 0x246   : > { %p7801_p2 = pnand %p7800_p13, %p9998_p4  ;;  %p7808_p9 = por %p7807_p8, %p7806_p7 }
 0x248   : > { %p7802_p3 = pneg %p7801_p2 }
 0x24a   : > { %p7809_p10 = pnand %p7808_p9, %p7802_p3 }
 0x24c   : > { %7812 = shalt.err (!%p7809_p10)
}
 0x24d   : > { %s10065_s13 = smov 2   ;;  %s10066_s3 = smov 32  }
 0x24e   : > { %s10067_s12 = sld [smem:[#allocation92_spill]]  ;;  %s8478_s0 = smov [#allocation19]  }
 0x24f   : > { %6868 = dma.hbm_to_vmem [thread:$0]  (%p9998_p4), %s10064_s8, 96, %s1023_s4, [#allocation15], %s10066_s3, %s10066_s3, %s10065_s13  }
 0x250   : > { %s1047_s2 = sshll.u32 %s8478_s0, 4  ;;  %s8479_s6 = smov [#allocation22]   ;;  %s1048_s2 = int_to_ptr.vmem [resolvable:$true] %s1047_s2 }
 0x251   : > { %s1068_s14 = sshll.u32 %s8479_s6, 4  ;;  %s1069_s14 = int_to_ptr.vmem [resolvable:$true] %s1068_s14 }
 0x254   : > { %s7813_s5 = scalar_lea.hbm %s10067_s12, 64 }
 0x255   : > { %p7814_p0 = scmp.ne.s32.totalorder %s10067_s12, %s7813_s5  ;;  %p7819_p6 = scmp.lt.u32.totalorder %s7813_s5, %s10067_s12 }
 0x257   : > { %p7815_p1 = pnand %p7814_p0, %p9998_p4 }
 0x259   : > { %p7816_p11 = pneg %p7815_p1 }
 0x25b   : > { %p7821_p12 = pnand %p7819_p6, %p7816_p11 }
 0x25d   : > { %7824 = shalt.err (!%p7821_p12)
}
 0x25e   : > { %s7825_s16 = scalar_lea.vmem %s1048_s2, 64  ;;  %p7832_p7 = scmp.lt.s32.totalorder %s1048_s2, %s1048_s2 }
 0x25f   : > { %p7826_p13 = scmp.ne.s32.totalorder %s1048_s2, %s7825_s16  ;;  %p7833_p8 = scmp.lt.s32.totalorder %s7825_s16, %s7825_s16 }
 0x261   : > { %p7827_p2 = pnand %p7826_p13, %p9998_p4  ;;  %p7834_p9 = por %p7833_p8, %p7832_p7 }
 0x263   : > { %p7828_p3 = pneg %p7827_p2 }
 0x265   : > { %p7835_p10 = pnand %p7834_p9, %p7828_p3 }
 0x267   : > { %7838 = shalt.err (!%p7835_p10)
}
 0x268   : > { %s10068_s4 = sld [smem:[#allocation93_spill]] }
 0x269   : > { %6872 = dma.hbm_to_vmem [thread:$0]  (%p9998_p4), %s10067_s12, 64, %s1048_s2, [#allocation18]  }
 0x26e   : > { %s7839_s6 = scalar_lea.hbm %s10068_s4, 256 }
 0x26f   : > { %p7840_p0 = scmp.ne.s32.totalorder %s10068_s4, %s7839_s6  ;;  %p7845_p6 = scmp.lt.u32.totalorder %s7839_s6, %s10068_s4 }
 0x271   : > { %p7841_p1 = pnand %p7840_p0, %p9998_p4 }
 0x273   : > { %p7842_p11 = pneg %p7841_p1 }
 0x275   : > { %p7847_p12 = pnand %p7845_p6, %p7842_p11 }
 0x277   : > { %7850 = shalt.err (!%p7847_p12)
}
 0x278   : > { %s7851_s16 = scalar_lea.vmem %s1069_s14, 256  ;;  %p7858_p7 = scmp.lt.s32.totalorder %s1069_s14, %s1069_s14 }
 0x279   : > { %p7852_p13 = scmp.ne.s32.totalorder %s1069_s14, %s7851_s16  ;;  %p7859_p8 = scmp.lt.s32.totalorder %s7851_s16, %s7851_s16 }
 0x27b   : > { %p7853_p2 = pnand %p7852_p13, %p9998_p4  ;;  %p7860_p9 = por %p7859_p8, %p7858_p7 }
 0x27d   : > { %p7854_p3 = pneg %p7853_p2 }
 0x27f   : > { %p7861_p10 = pnand %p7860_p9, %p7854_p3 }
 0x281   : > { %7864 = shalt.err (!%p7861_p10)
}
 0x282   : > { %s10069_s2 = sld [smem:[#allocation95_spill]]  ;;  %s8480_s13 = smov [#allocation25]  }
 0x283   : > { %6876 = dma.hbm_to_vmem [thread:$0]  (%p9998_p4), %s10068_s4, 256, %s1069_s14, [#allocation21], %s10057_s26, %s10057_s26, %s10056_s18  }
 0x284   : > { %s1092_s3 = sshll.u32 %s8480_s13, 4  ;;  %s8481_s0 = smov [#allocation28]   ;;  %s1093_s3 = int_to_ptr.vmem [resolvable:$true] %s1092_s3 }
 0x285   : > { %s1119_s5 = sshll.u32 %s8481_s0, 4  ;;  %s1120_s5 = int_to_ptr.vmem [resolvable:$true] %s1119_s5 }
 0x288   : > { %s7865_s6 = scalar_lea.hbm %s10069_s2, 256 }
 0x289   : > { %p7866_p0 = scmp.ne.s32.totalorder %s10069_s2, %s7865_s6  ;;  %p7871_p6 = scmp.lt.u32.totalorder %s7865_s6, %s10069_s2 }
 0x28b   : > { %p7867_p1 = pnand %p7866_p0, %p9998_p4 }
 0x28d   : > { %p7868_p11 = pneg %p7867_p1 }
 0x28f   : > { %p7873_p12 = pnand %p7871_p6, %p7868_p11 }
 0x291   : > { %7876 = shalt.err (!%p7873_p12)
}
 0x292   : > { %s7877_s16 = scalar_lea.vmem %s1093_s3, 256  ;;  %p7884_p7 = scmp.lt.s32.totalorder %s1093_s3, %s1093_s3 }
 0x293   : > { %p7878_p13 = scmp.ne.s32.totalorder %s1093_s3, %s7877_s16  ;;  %p7885_p8 = scmp.lt.s32.totalorder %s7877_s16, %s7877_s16 }
 0x295   : > { %p7879_p2 = pnand %p7878_p13, %p9998_p4  ;;  %p7886_p9 = por %p7885_p8, %p7884_p7 }
 0x297   : > { %p7880_p3 = pneg %p7879_p2 }
 0x299   : > { %p7887_p10 = pnand %p7886_p9, %p7880_p3 }
 0x29b   : > { %7890 = shalt.err (!%p7887_p10)
}
 0x29c   : > { %s10070_s14 = sld [smem:[#allocation96_spill]] }
 0x29d   : > { %6880 = dma.hbm_to_vmem [thread:$0]  (%p9998_p4), %s10069_s2, 256, %s1093_s3, [#allocation24], %s10057_s26, %s10057_s26, %s10056_s18  }
 0x2a2   : > { %s7891_s13 = scalar_lea.hbm %s10070_s14, 64 }
 0x2a3   : > { %p7892_p0 = scmp.ne.s32.totalorder %s10070_s14, %s7891_s13  ;;  %p7897_p6 = scmp.lt.u32.totalorder %s7891_s13, %s10070_s14 }
 0x2a5   : > { %p7893_p1 = pnand %p7892_p0, %p9998_p4 }
 0x2a7   : > { %p7894_p11 = pneg %p7893_p1 }
 0x2a9   : > { %p7899_p12 = pnand %p7897_p6, %p7894_p11 }
 0x2ab   : > { %7902 = shalt.err (!%p7899_p12)
}
 0x2ac   : > { %s7903_s0 = scalar_lea.vmem %s1120_s5, 64  ;;  %p7910_p7 = scmp.lt.s32.totalorder %s1120_s5, %s1120_s5 }
 0x2ad   : > { %p7904_p13 = scmp.ne.s32.totalorder %s1120_s5, %s7903_s0  ;;  %p7911_p8 = scmp.lt.s32.totalorder %s7903_s0, %s7903_s0 }
 0x2af   : > { %p7905_p2 = pnand %p7904_p13, %p9998_p4  ;;  %p7912_p9 = por %p7911_p8, %p7910_p7 }
 0x2b1   : > { %p7906_p3 = pneg %p7905_p2 }
 0x2b3   : > { %p7913_p10 = pnand %p7912_p9, %p7906_p3 }
 0x2b5   : > { %7916 = shalt.err (!%p7913_p10)
}
 0x2b6   : > { %s10071_s18 = sld [smem:[#allocation98_spill]]  ;;  %s8482_s26 = smov [#allocation31]  }
 0x2b7   : > { %6884 = dma.hbm_to_vmem [thread:$0]  (%p9998_p4), %s10070_s14, 64, %s1120_s5, [#allocation27]  }
 0x2b8   : > { %s1141_s3 = sshll.u32 %s8482_s26, 4  ;;  %s8483_s6 = smov [#allocation34]   ;;  %s1142_s3 = int_to_ptr.vmem [resolvable:$true] %s1141_s3 }
 0x2b9   : > { %s1165_s16 = sshll.u32 %s8483_s6, 4  ;;  %s1166_s16 = int_to_ptr.vmem [resolvable:$true] %s1165_s16 }
 0x2bc   : > { %s7917_s13 = scalar_lea.hbm %s10071_s18, 16 }
 0x2bd   : > { %p7918_p0 = scmp.ne.s32.totalorder %s10071_s18, %s7917_s13  ;;  %p7923_p6 = scmp.lt.u32.totalorder %s7917_s13, %s10071_s18 }
 0x2bf   : > { %p7919_p1 = pnand %p7918_p0, %p9998_p4 }
 0x2c1   : > { %p7920_p11 = pneg %p7919_p1 }
 0x2c3   : > { %p7925_p12 = pnand %p7923_p6, %p7920_p11 }
 0x2c5   : > { %7928 = shalt.err (!%p7925_p12)
}
 0x2c6   : > { %s7929_s0 = scalar_lea.vmem %s1142_s3, 16  ;;  %s7935_s5 = scalar_lea.vmem %s1142_s3, 32 }
 0x2c7   : > { %p7930_p13 = scmp.ne.s32.totalorder %s1142_s3, %s7929_s0  ;;  %p7936_p7 = scmp.lt.s32.totalorder %s1142_s3, %s1142_s3 }
 0x2c8   : > { %p7937_p8 = scmp.lt.s32.totalorder %s7935_s5, %s7929_s0 }
 0x2c9   : > { %p7931_p2 = pnand %p7930_p13, %p9998_p4 }
 0x2ca   : > { %p7938_p9 = por %p7937_p8, %p7936_p7 }
 0x2cb   : > { %p7932_p3 = pneg %p7931_p2 }
 0x2cd   : > { %p7939_p10 = pnand %p7938_p9, %p7932_p3 }
 0x2cf   : > { %7942 = shalt.err (!%p7939_p10)
}
 0x2d0   : > { %s10072_s26 = sld [smem:[#allocation100_spill]] }
 0x2d1   : > { %6888 = dma.hbm_to_vmem [thread:$0]  (%p9998_p4), %s10071_s18, 16, %s1142_s3, [#allocation30]  }
 0x2d6   : > { %s7943_s6 = scalar_lea.hbm %s10072_s26, 16 }
 0x2d7   : > { %p7944_p0 = scmp.ne.s32.totalorder %s10072_s26, %s7943_s6  ;;  %p7949_p6 = scmp.lt.u32.totalorder %s7943_s6, %s10072_s26 }
 0x2d9   : > { %p7945_p1 = pnand %p7944_p0, %p9998_p4 }
 0x2db   : > { %p7946_p11 = pneg %p7945_p1 }
 0x2dd   : > { %p7951_p12 = pnand %p7949_p6, %p7946_p11 }
 0x2df   : > { %7954 = shalt.err (!%p7951_p12)
}
 0x2e0   : > { %s7955_s13 = scalar_lea.vmem %s1166_s16, 16  ;;  %s7961_s0 = scalar_lea.vmem %s1166_s16, 32 }
 0x2e1   : > { %p7956_p13 = scmp.ne.s32.totalorder %s1166_s16, %s7955_s13  ;;  %p7962_p7 = scmp.lt.s32.totalorder %s1166_s16, %s1166_s16 }
 0x2e2   : > { %p7963_p8 = scmp.lt.s32.totalorder %s7961_s0, %s7955_s13 }
 0x2e3   : > { %p7957_p2 = pnand %p7956_p13, %p9998_p4 }
 0x2e4   : > { %p7964_p9 = por %p7963_p8, %p7962_p7 }
 0x2e5   : > { %p7958_p3 = pneg %p7957_p2 }
 0x2e7   : > { %p7965_p10 = pnand %p7964_p9, %p7958_p3 }
 0x2e9   : > { %7968 = shalt.err (!%p7965_p10)
}
 0x2ea   : > { %s10073_s3 = sld [smem:[#allocation102_spill]]  ;;  %s8484_s5 = smov [#allocation37]  }
 0x2eb   : > { %6892 = dma.hbm_to_vmem [thread:$0]  (%p9998_p4), %s10072_s26, 16, %s1166_s16, [#allocation33]  }
 0x2ec   : > { %s1189_s6 = sshll.u32 %s8484_s5, 4  ;;  %s8485_s2 = smov [#allocation40]   ;;  %s1190_s6 = int_to_ptr.vmem [resolvable:$true] %s1189_s6 }
 0x2ed   : > { %s1210_s4 = sshll.u32 %s8485_s2, 4  ;;  %s1211_s4 = int_to_ptr.vmem [resolvable:$true] %s1210_s4 }
 0x2f0   : > { %s7969_s8 = scalar_lea.hbm %s10073_s3, 32 }
 0x2f1   : > { %p7970_p0 = scmp.ne.s32.totalorder %s10073_s3, %s7969_s8  ;;  %p7975_p6 = scmp.lt.u32.totalorder %s7969_s8, %s10073_s3 }
 0x2f3   : > { %p7971_p1 = pnand %p7970_p0, %p9998_p4 }
 0x2f5   : > { %p7972_p11 = pneg %p7971_p1 }
 0x2f7   : > { %p7977_p12 = pnand %p7975_p6, %p7972_p11 }
 0x2f9   : > { %7980 = shalt.err (!%p7977_p12)
}
 0x2fa   : > { %s7981_s13 = scalar_lea.vmem %s1190_s6, 32  ;;  %p7988_p7 = scmp.lt.s32.totalorder %s1190_s6, %s1190_s6 }
 0x2fb   : > { %p7982_p13 = scmp.ne.s32.totalorder %s1190_s6, %s7981_s13  ;;  %p7989_p8 = scmp.lt.s32.totalorder %s7981_s13, %s7981_s13 }
 0x2fd   : > { %p7983_p2 = pnand %p7982_p13, %p9998_p4  ;;  %p7990_p9 = por %p7989_p8, %p7988_p7 }
 0x2ff   : > { %p7984_p3 = pneg %p7983_p2 }
 0x301   : > { %p7991_p10 = pnand %p7990_p9, %p7984_p3 }
 0x303   : > { %7994 = shalt.err (!%p7991_p10)
}
 0x304   : > { %s10074_s2 = sld [smem:[#allocation103_spill]] }
 0x305   : > { %6896 = dma.hbm_to_vmem [thread:$0]  (%p9998_p4), %s10073_s3, 32, %s1190_s6, [#allocation36]  }
 0x30a   : > { %s7995_s8 = scalar_lea.hbm %s10074_s2, 512 }
 0x30b   : > { %p7996_p0 = scmp.ne.s32.totalorder %s10074_s2, %s7995_s8  ;;  %p8001_p6 = scmp.lt.u32.totalorder %s7995_s8, %s10074_s2 }
 0x30d   : > { %p7997_p1 = pnand %p7996_p0, %p9998_p4 }
 0x30f   : > { %p7998_p11 = pneg %p7997_p1 }
 0x311   : > { %p8003_p12 = pnand %p8001_p6, %p7998_p11 }
 0x313   : > { %8006 = shalt.err (!%p8003_p12)
}
 0x314   : > { %s8007_s16 = scalar_lea.vmem %s1211_s4, 512  ;;  %p8014_p7 = scmp.lt.s32.totalorder %s1211_s4, %s1211_s4 }
 0x315   : > { %p8008_p13 = scmp.ne.s32.totalorder %s1211_s4, %s8007_s16  ;;  %p8015_p8 = scmp.lt.s32.totalorder %s8007_s16, %s8007_s16 }
 0x317   : > { %p8009_p2 = pnand %p8008_p13, %p9998_p4  ;;  %p8016_p9 = por %p8015_p8, %p8014_p7 }
 0x319   : > { %p8010_p3 = pneg %p8009_p2 }
 0x31b   : > { %p8017_p10 = pnand %p8016_p9, %p8010_p3 }
 0x31d   : > { %8020 = shalt.err (!%p8017_p10)
}
 0x31e   : > { %s10075_s0 = smov 4   ;;  %s10076_s5 = smov 64  }
 0x31f   : > { %s10077_s6 = sld [smem:[#allocation105_spill]]  ;;  %s8486_s13 = smov [#allocation43]  }
 0x320   : > { %6900 = dma.hbm_to_vmem [thread:$0]  (%p9998_p4), %s10074_s2, 512, %s1211_s4, [#allocation39], %s10076_s5, %s10076_s5, %s10075_s0  }
 0x321   : > { %s1236_s8 = sshll.u32 %s8486_s13, 4  ;;  %s8487_s3 = smov [#allocation46]   ;;  %s1237_s8 = int_to_ptr.vmem [resolvable:$true] %s1236_s8 }
 0x322   : > { %s1262_s12 = sshll.u32 %s8487_s3, 4  ;;  %s1263_s12 = int_to_ptr.vmem [resolvable:$true] %s1262_s12 }
 0x325   : > { %s8021_s16 = scalar_lea.hbm %s10077_s6, 32 }
 0x326   : > { %p8022_p0 = scmp.ne.s32.totalorder %s10077_s6, %s8021_s16  ;;  %p8027_p6 = scmp.lt.u32.totalorder %s8021_s16, %s10077_s6 }
 0x328   : > { %p8023_p1 = pnand %p8022_p0, %p9998_p4 }
 0x32a   : > { %p8024_p11 = pneg %p8023_p1 }
 0x32c   : > { %p8029_p12 = pnand %p8027_p6, %p8024_p11 }
 0x32e   : > { %8032 = shalt.err (!%p8029_p12)
}
 0x32f   : > { %s8033_s14 = scalar_lea.vmem %s1237_s8, 32  ;;  %p8040_p7 = scmp.lt.s32.totalorder %s1237_s8, %s1237_s8 }
 0x330   : > { %p8034_p13 = scmp.ne.s32.totalorder %s1237_s8, %s8033_s14  ;;  %p8041_p8 = scmp.lt.s32.totalorder %s8033_s14, %s8033_s14 }
 0x332   : > { %p8035_p2 = pnand %p8034_p13, %p9998_p4  ;;  %p8042_p9 = por %p8041_p8, %p8040_p7 }
 0x334   : > { %p8036_p3 = pneg %p8035_p2 }
 0x336   : > { %p8043_p10 = pnand %p8042_p9, %p8036_p3 }
 0x338   : > { %8046 = shalt.err (!%p8043_p10)
}
 0x339   : > { %s10078_s4 = smov 1   ;;  %s10079_s3 = smov 16  }
 0x33a   : > { %s10080_s13 = sld [smem:[#allocation107_spill]] }
 0x33b   : > { %6904 = dma.hbm_to_vmem [thread:$0]  (%p9998_p4), %s10077_s6, 32, %s1237_s8, [#allocation42], %s10079_s3, %s10079_s3, %s10078_s4  }
 0x340   : > { %s8047_s16 = scalar_lea.hbm %s10080_s13, 512 }
 0x341   : > { %p8048_p0 = scmp.ne.s32.totalorder %s10080_s13, %s8047_s16  ;;  %p8053_p6 = scmp.lt.u32.totalorder %s8047_s16, %s10080_s13 }
 0x343   : > { %p8049_p1 = pnand %p8048_p0, %p9998_p4 }
 0x345   : > { %p8050_p11 = pneg %p8049_p1 }
 0x347   : > { %p8055_p12 = pnand %p8053_p6, %p8050_p11 }
 0x349   : > { %8058 = shalt.err (!%p8055_p12)
}
 0x34a   : > { %s8059_s14 = scalar_lea.vmem %s1263_s12, 512  ;;  %p8066_p7 = scmp.lt.s32.totalorder %s1263_s12, %s1263_s12 }
 0x34b   : > { %p8060_p13 = scmp.ne.s32.totalorder %s1263_s12, %s8059_s14  ;;  %p8067_p8 = scmp.lt.s32.totalorder %s8059_s14, %s8059_s14 }
 0x34d   : > { %p8061_p2 = pnand %p8060_p13, %p9998_p4  ;;  %p8068_p9 = por %p8067_p8, %p8066_p7 }
 0x34f   : > { %p8062_p3 = pneg %p8061_p2 }
 0x351   : > { %p8069_p10 = pnand %p8068_p9, %p8062_p3 }
 0x353   : > { %8072 = shalt.err (!%p8069_p10)
}
 0x354   : > { %s10081_s8 = sld [smem:[#allocation108_spill]]  ;;  %s8488_s16 = smov [#allocation49]  }
 0x355   : > { %6908 = dma.hbm_to_vmem [thread:$0]  (%p9998_p4), %s10080_s13, 512, %s1263_s12, [#allocation45], %s10076_s5, %s10076_s5, %s10075_s0  }
 0x356   : > { %s1288_s2 = sshll.u32 %s8488_s16, 4  ;;  %s8489_s6 = smov [#allocation52]   ;;  %s1289_s2 = int_to_ptr.vmem [resolvable:$true] %s1288_s2 }
 0x357   : > { %s1314_s17 = sshll.u32 %s8489_s6, 4  ;;  %s1315_s17 = int_to_ptr.vmem [resolvable:$true] %s1314_s17 }
 0x35a   : > { %s8073_s14 = scalar_lea.hbm %s10081_s8, 512 }
 0x35b   : > { %p8074_p0 = scmp.ne.s32.totalorder %s10081_s8, %s8073_s14  ;;  %p8079_p6 = scmp.lt.u32.totalorder %s8073_s14, %s10081_s8 }
 0x35d   : > { %p8075_p1 = pnand %p8074_p0, %p9998_p4 }
 0x35f   : > { %p8076_p11 = pneg %p8075_p1 }
 0x361   : > { %p8081_p12 = pnand %p8079_p6, %p8076_p11 }
 0x363   : > { %8084 = shalt.err (!%p8081_p12)
}
 0x364   : > { %s8085_s18 = scalar_lea.vmem %s1289_s2, 512  ;;  %p8092_p7 = scmp.lt.s32.totalorder %s1289_s2, %s1289_s2 }
 0x365   : > { %p8086_p13 = scmp.ne.s32.totalorder %s1289_s2, %s8085_s18  ;;  %p8093_p8 = scmp.lt.s32.totalorder %s8085_s18, %s8085_s18 }
 0x367   : > { %p8087_p2 = pnand %p8086_p13, %p9998_p4  ;;  %p8094_p9 = por %p8093_p8, %p8092_p7 }
 0x369   : > { %p8088_p3 = pneg %p8087_p2 }
 0x36b   : > { %p8095_p10 = pnand %p8094_p9, %p8088_p3 }
 0x36d   : > { %8098 = shalt.err (!%p8095_p10)
}
 0x36e   : > { %s10082_s12 = sld [smem:[#allocation110_spill]] }
 0x36f   : > { %6912 = dma.hbm_to_vmem [thread:$0]  (%p9998_p4), %s10081_s8, 512, %s1289_s2, [#allocation48], %s10076_s5, %s10076_s5, %s10075_s0  }
 0x374   : > { %s8099_s6 = scalar_lea.hbm %s10082_s12, 32 }
 0x375   : > { %p8100_p0 = scmp.ne.s32.totalorder %s10082_s12, %s8099_s6  ;;  %p8105_p6 = scmp.lt.u32.totalorder %s8099_s6, %s10082_s12 }
 0x377   : > { %p8101_p1 = pnand %p8100_p0, %p9998_p4 }
 0x379   : > { %p8102_p11 = pneg %p8101_p1 }
 0x37b   : > { %p8107_p12 = pnand %p8105_p6, %p8102_p11 }
 0x37d   : > { %8110 = shalt.err (!%p8107_p12)
}
 0x37e   : > { %s8111_s18 = scalar_lea.vmem %s1315_s17, 32  ;;  %p8118_p7 = scmp.lt.s32.totalorder %s1315_s17, %s1315_s17 }
 0x37f   : > { %p8112_p13 = scmp.ne.s32.totalorder %s1315_s17, %s8111_s18  ;;  %p8119_p8 = scmp.lt.s32.totalorder %s8111_s18, %s8111_s18 }
 0x381   : > { %p8113_p2 = pnand %p8112_p13, %p9998_p4  ;;  %p8120_p9 = por %p8119_p8, %p8118_p7 }
 0x383   : > { %p8114_p3 = pneg %p8113_p2 }
 0x385   : > { %p8121_p10 = pnand %p8120_p9, %p8114_p3 }
 0x387   : > { %8124 = shalt.err (!%p8121_p10)
}
 0x388   : > { %6916 = dma.hbm_to_vmem [thread:$0]  (%p9998_p4), %s10082_s12, 32, %s1315_s17, [#allocation51], %s10079_s3, %s10079_s3, %s10078_s4  }
 0x389   : > { %s8490_s2 = smov [#allocation55]   ;;  %s8491_s14 = smov [#allocation56]  }
 0x38a   : > { %s1340_s16 = sshll.u32 %s8490_s2, 4  ;;  %s1354_s6 = sshll.u32 %s8491_s14, 4  ;;  %s1341_s16 = int_to_ptr.vmem [resolvable:$true] %s1340_s16  ;;  %s1355_s6 = int_to_ptr.vmem [resolvable:$true] %s1354_s6 }
 0x38b   : > { %s8125_s18 = scalar_lea.hbm %s10037_s9, 256 }
 0x38c   : > { %p8126_p0 = scmp.ne.s32.totalorder %s10037_s9, %s8125_s18  ;;  %p8131_p6 = scmp.lt.u32.totalorder %s8125_s18, %s10037_s9 }
 0x38e   : > { %p8127_p1 = pnand %p8126_p0, %p9998_p4 }
 0x390   : > { %p8128_p11 = pneg %p8127_p1 }
 0x392   : > { %p8133_p12 = pnand %p8131_p6, %p8128_p11 }
 0x394   : > { %8136 = shalt.err (!%p8133_p12)
}
 0x395   : > { %s8137_s8 = scalar_lea.vmem %s1341_s16, 256  ;;  %p8144_p7 = scmp.lt.s32.totalorder %s1341_s16, %s1341_s16 }
 0x396   : > { %p8138_p13 = scmp.ne.s32.totalorder %s1341_s16, %s8137_s8  ;;  %p8145_p8 = scmp.lt.s32.totalorder %s8137_s8, %s8137_s8 }
 0x398   : > { %p8139_p2 = pnand %p8138_p13, %p9998_p4  ;;  %p8146_p9 = por %p8145_p8, %p8144_p7 }
 0x39a   : > { %p8140_p3 = pneg %p8139_p2 }
 0x39c   : > { %p8147_p10 = pnand %p8146_p9, %p8140_p3 }
 0x39e   : > { %8150 = shalt.err (!%p8147_p10)
}
 0x39f   : > { %6920 = dma.hbm_to_vmem [thread:$0]  (%p9998_p4), %s10037_s9, 256, %s1341_s16, [#allocation54], %s10076_s5, %s10076_s5, %s10075_s0  }
 0x3a0   : > { %s8151_s17 = scalar_lea.hbm %s8690_s21, 16 }
 0x3a1   : > { %p8152_p0 = scmp.ne.s32.totalorder %s8690_s21, %s8151_s17  ;;  %p8157_p6 = scmp.lt.u32.totalorder %s8151_s17, %s8690_s21 }
 0x3a3   : > { %p8153_p1 = pnand %p8152_p0, %p9998_p4 }
 0x3a5   : > { %p8154_p11 = pneg %p8153_p1 }
 0x3a7   : > { %p8159_p12 = pnand %p8157_p6, %p8154_p11 }
 0x3a9   : > { %8162 = shalt.err (!%p8159_p12)
}
 0x3aa   : > { %s8163_s4 = scalar_lea.vmem %s1355_s6, 16  ;;  %s8169_s3 = scalar_lea.vmem %s1355_s6, 32 }
 0x3ab   : > { %p8164_p13 = scmp.ne.s32.totalorder %s1355_s6, %s8163_s4  ;;  %p8170_p7 = scmp.lt.s32.totalorder %s1355_s6, %s1355_s6 }
 0x3ac   : > { %p8171_p8 = scmp.lt.s32.totalorder %s8169_s3, %s8163_s4 }
 0x3ad   : > { %p8165_p2 = pnand %p8164_p13, %p9998_p4 }
 0x3ae   : > { %p8172_p9 = por %p8171_p8, %p8170_p7 }
 0x3af   : > { %p8166_p3 = pneg %p8165_p2 }
 0x3b1   : > { %p8173_p10 = pnand %p8172_p9, %p8166_p3 }
 0x3b3   : > { %8176 = shalt.err (!%p8173_p10)
}
 0x3b4   : > { %6922 = dma.hbm_to_vmem [thread:$0]  (%p9998_p4), %s8690_s21, 16, %s1355_s6, [#allocation57]  }
 0x3b5 PF: > { %s10083_s0 = sld [smem:[#allocation83_spill]]  ;;  %p7047_p1 = scmp.lt.s32.totalorder %s8411_s11, 2 }
 0x3b6   : > { %s1365_s8 = sand.u32 1, %s8407_s10   ;;  %s9999_s2 = sshll.u32 %s8411_s11, 8 }
 0x3b7   : > { %s9200_s16 = sshll.u32 %s1365_s8, 4  ;;  %p9210_p11 = pnand %p7047_p1, %p8741_p5 }
 0x3b8   : > { %s1369_s6 = scalar_lea.vmem [#allocation2], %s9200_s16  ;;  %s9216_s4 = scalar_lea.sflag [#allocation3], %s1365_s8 }
 0x3b9   : > { %s1376_s18 = sshll.u32 %s1369_s6, 4  ;;  %p8179_p12 = pneg %p9210_p11  ;;  %s9214_s18 = int_to_ptr.vmem [resolvable:$true] %s1376_s18 }
 0x3bb   : > { %s10084_s5 = smov %s10083_s0  ;;  %s9205_s14 = scalar_lea.hbm %s10083_s0, %s9999_s2 }
 0x3bc   : > { %s8177_s3 = scalar_lea.hbm %s9205_s14, 256  ;;  %s8182_s0 = scalar_lea.hbm %s10084_s5, 512 }
 0x3bd   : > { %p8178_p6 = scmp.ne.s32.totalorder %s9205_s14, %s8177_s3  ;;  %p8183_p3 = scmp.lt.u32.totalorder %s9205_s14, %s10084_s5 }
 0x3be   : > { %p8184_p5 = scmp.lt.u32.totalorder %s8182_s0, %s8177_s3  ;;  %p8186_p8 = scmp.lt.u32.totalorder %s8177_s3, %s9205_s14 }
 0x3bf   : > { %p8180_p13 = pnand %p8179_p12, %p8178_p6 }
 0x3c0   : > { %p8185_p7 = por %p8184_p5, %p8183_p3 }
 0x3c1   : > { %p8181_p2 = pneg %p8180_p13 }
 0x3c2   : > { %p8187_p9 = por %p8186_p8, %p8185_p7 }
 0x3c4   : > { %p8188_p10 = pnand %p8187_p9, %p8181_p2 }
 0x3c6   : > { %8191 = shalt.err (!%p8188_p10)
}
 0x3c7   : > { %s8192_s28 = scalar_lea.vmem %s9214_s18, 256  ;;  %s8492_s8 = smov [#allocation2]  }
 0x3c8   : > { %p8193_p1 = scmp.ne.s32.totalorder %s9214_s18, %s8192_s28  ;;  %s8197_s6 = sshll.u32 %s8492_s8, 4  ;;  %s8198_s6 = int_to_ptr.vmem [resolvable:$false] %s8197_s6 }
 0x3c9   : > { %s8199_s2 = scalar_lea.vmem %s8198_s6, 512  ;;  %p8200_p6 = scmp.lt.s32.totalorder %s9214_s18, %s8198_s6 }
 0x3ca   : > { %p8195_p0 = pnand %p8193_p1, %p8179_p12  ;;  %p8201_p13 = scmp.lt.s32.totalorder %s8199_s2, %s8192_s28 }
 0x3cc   : > { %p8196_p4 = pneg %p8195_p0  ;;  %p8202_p3 = por %p8201_p13, %p8200_p6 }
 0x3ce   : > { %p8203_p5 = pnand %p8202_p3, %p8196_p4 }
 0x3d0   : > { %8206 = shalt.err (!%p8203_p5)
}
 0x3d1   : > { %s8493_s3 = smov 128   ;;  %s10086_s0 = sld [smem:[#allocation84_spill]] }
 0x3d2   : > { %s8494_s8 = smov 8   ;;  %s1386_s2 = sand.u32 1, %s8411_s11  }
 0x3d3   : > { %7002 = dma.hbm_to_vmem [thread:$0]  (!%p9210_p11), %s9205_s14, 256, %s9214_s18, %s9216_s4, %s8493_s3, %s8493_s3, %s8494_s8  }
 0x3d4   : > { %s10088_s28 = sshll.u32 %s8411_s11, 8  ;;  %s1390_s9 = scalar_lea.vmem [#allocation5], %s9200_s16 }
 0x3d5   : > { %s1397_s12 = sshll.u32 %s1390_s9, 4  ;;  %s9252_s13 = scalar_lea.sflag [#allocation6], %s1386_s2  ;;  %s9250_s12 = int_to_ptr.vmem [resolvable:$true] %s1397_s12 }
 0x3d7   : > { %s10087_s5 = smov %s10086_s0  ;;  %s9247_s6 = scalar_lea.hbm %s10086_s0, %s10088_s28 }
 0x3d8   : > { %s8207_s19 = scalar_lea.hbm %s9247_s6, 256  ;;  %s8212_s14 = scalar_lea.hbm %s10087_s5, 512 }
 0x3d9   : > { %p8208_p4 = scmp.ne.s32.totalorder %s9247_s6, %s8207_s19  ;;  %p8213_p7 = scmp.lt.u32.totalorder %s9247_s6, %s10087_s5 }
 0x3da   : > { %p8214_p8 = scmp.lt.u32.totalorder %s8212_s14, %s8207_s19  ;;  %p8216_p10 = scmp.lt.u32.totalorder %s8207_s19, %s9247_s6 }
 0x3db   : > { %p8210_p0 = pnand %p8208_p4, %p8179_p12 }
 0x3dc   : > { %p8215_p9 = por %p8214_p8, %p8213_p7 }
 0x3dd   : > { %p8211_p2 = pneg %p8210_p0 }
 0x3de   : > { %p8217_p1 = por %p8216_p10, %p8215_p9 }
 0x3e0   : > { %p8218_p6 = pnand %p8217_p1, %p8211_p2 }
 0x3e2   : > { %8221 = shalt.err (!%p8218_p6)
}
 0x3e3   : > { %s8222_s9 = scalar_lea.vmem %s9250_s12, 256  ;;  %s8495_s16 = smov [#allocation5]  }
 0x3e4   : > { %p8223_p13 = scmp.ne.s32.totalorder %s9250_s12, %s8222_s9  ;;  %s8227_s18 = sshll.u32 %s8495_s16, 4  ;;  %s8228_s18 = int_to_ptr.vmem [resolvable:$false] %s8227_s18 }
 0x3e5   : > { %s8229_s4 = scalar_lea.vmem %s8228_s18, 512  ;;  %p8230_p4 = scmp.lt.s32.totalorder %s9250_s12, %s8228_s18 }
 0x3e6   : > { %p8225_p3 = pnand %p8223_p13, %p8179_p12  ;;  %p8231_p0 = scmp.lt.s32.totalorder %s8229_s4, %s8222_s9 }
 0x3e8   : > { %p8226_p5 = pneg %p8225_p3  ;;  %p8232_p7 = por %p8231_p0, %p8230_p4 }
 0x3ea   : > { %p8233_p8 = pnand %p8232_p7, %p8226_p5 }
 0x3ec   : > { %8236 = shalt.err (!%p8233_p8)
}
 0x3ed   : > { %7005 = dma.hbm_to_vmem [thread:$0]  (!%p9210_p11), %s9247_s6, 256, %s9250_s12, %s9252_s13, %s8493_s3, %s8493_s3, %s8494_s8  }
 0x3ee   : > { %p10089_p12 = scmp.ne.s32.totalorder %s10055_s23, 0 }
 0x3ef   : > { %s9280_s19 = sand.u32 (!%p10089_p12), 1, %s8403_s7   ;;  %p10090_p2 = scmp.ne.s32.totalorder (!%p10089_p12), %s10050_s1, 0 }
 0x3f0   : > { %1409 = sbr.rel (%p10089_p12) target bundleno = 8797 (0x225d), region = 164  ;;  %s9283_s0 = sshll.u32 (!%p10089_p12), %s9280_s19, 4 }
 0x3f1   : > { %s1412_s17 = scalar_lea.sflag (!%p10089_p12), [#allocation3], %s9280_s19  ;;  %s9287_s2 = scalar_lea.vmem (!%p10089_p12), [#allocation2], %s9283_s0 }
 0x3f7   : > { %8310 = dma.done.wait (%p10090_p2), %s1412_s17, 256  }
 0x3f8   : > { %8312 = vsyncadd (%p10090_p2), %s1412_s17, 4294967040  ;;  %s1420_s23 = sand.u32 1, %s8723_s15   ;;  %s9295_s12 = scalar_lea.vmem [#allocation5], %s9283_s0 }
 0x3f9   : > { %s1421_s13 = scalar_lea.sflag [#allocation6], %s1420_s23 }
 0x3fa   : > { %8314 = dma.done.wait (%p10090_p2), %s1421_s13, 256  }
 0x3fb   : > { %8316 = vsyncadd (%p10090_p2), %s1421_s13, 4294967040  ;;  %p10091_p11 = scmp.eq.s32.totalorder %s8723_s15, 0 }
 0x3fd   : > { %8318 = dma.done.wait (%p10091_p11), [#allocation6], 256   ;;  %p10092_p9 = pmov %p10091_p11 }
 0x3ff   : > { %8320 = vsyncadd (%p10092_p9), [#allocation6], 4294967040  ;;  %p10093_p10 = pmov %p10092_p9 }
 0x400   : > { %p10094_p1 = pmov %p10092_p9 }
 0x401   : > { %8322 = dma.done.wait (%p10093_p10), [#allocation9], 288  }
 0x402   : > { %8324 = vsyncadd (%p10094_p1), [#allocation9], 4294967008  ;;  %p10095_p6 = pmov %p10094_p1 }
 0x403   : > { %p10096_p13 = pmov %p10094_p1 }
 0x404   : > { %8326 = dma.done.wait (%p10095_p6), [#allocation12], 576  }
 0x405   : > { %8328 = vsyncadd (%p10096_p13), [#allocation12], 4294966720  ;;  %p10097_p3 = pmov %p10094_p1 }
 0x406   : > { %p10098_p5 = pmov %p10094_p1 }
 0x407   : > { %8330 = dma.done.wait (%p10097_p3), [#allocation15], 160  }
 0x408   : > { %8332 = vsyncadd (%p10098_p5), [#allocation15], 4294967136  ;;  %p10099_p4 = pmov %p10094_p1 }
 0x409   : > { %p10100_p0 = pmov %p10094_p1 }
 0x40a   : > { %8334 = dma.done.wait (%p10099_p4), [#allocation18], 128  }
 0x40b   : > { %8336 = vsyncadd (%p10100_p0), [#allocation18], 4294967168  ;;  %p10101_p7 = pmov %p10100_p0 }
 0x40c   : > { %p10102_p8 = pmov %p10100_p0 }
 0x40d   : > { %8338 = dma.done.wait (%p10101_p7), [#allocation21], 272  }
 0x40e   : > { %8340 = vsyncadd (%p10102_p8), [#allocation21], 4294967024  ;;  %p10103_p12 = pmov %p10100_p0 }
 0x40f   : > { %p10104_p2 = pmov %p10100_p0 }
 0x410   : > { %8342 = dma.done.wait (%p10103_p12), [#allocation24], 272  }
 0x411   : > { %8344 = vsyncadd (%p10104_p2), [#allocation24], 4294967024  ;;  %p10105_p11 = pmov %p10100_p0 }
 0x412   : > { %p10106_p9 = pmov %p10100_p0 }
 0x413   : > { %8346 = dma.done.wait (%p10105_p11), [#allocation27], 160  }
 0x414   : > { %8348 = vsyncadd (%p10106_p9), [#allocation27], 4294967136  ;;  %p10107_p10 = pmov %p10100_p0 }
 0x415   : > { %p10108_p1 = pmov %p10100_p0 }
 0x416   : > { %8350 = dma.done.wait (%p10107_p10), [#allocation30], 80  }
 0x417   : > { %8352 = vsyncadd (%p10108_p1), [#allocation30], 4294967216  ;;  %p10109_p6 = pmov %p10100_p0 }
 0x418   : > { %p10110_p13 = pmov %p10100_p0 }
 0x419   : > { %8354 = dma.done.wait (%p10109_p6), [#allocation33], 272  }
 0x41a   : > { %8356 = vsyncadd (%p10110_p13), [#allocation33], 4294967024  ;;  %p10111_p3 = pmov %p10100_p0 }
 0x41b   : > { %p10112_p5 = pmov %p10100_p0 }
 0x41c   : > { %8358 = dma.done.wait (%p10111_p3), [#allocation36], 288  }
 0x41d   : > { %8360 = vsyncadd (%p10112_p5), [#allocation36], 4294967008  ;;  %p10113_p4 = pmov %p10100_p0 }
 0x41f   : > { %8362 = dma.done.wait (%p10113_p4), [#allocation39], 544  }
 0x420   : > { %8364 = vsyncadd (%p10100_p0), [#allocation39], 4294966752  ;;  %p10114_p7 = pmov %p10100_p0 }
 0x421   : > { %p10115_p8 = pmov %p10100_p0 }
 0x422   : > { %8366 = dma.done.wait (%p10114_p7), [#allocation42], 544  }
 0x423   : > { %8368 = vsyncadd (%p10115_p8), [#allocation42], 4294966752  ;;  %p10116_p12 = pmov %p10100_p0 }
 0x424   : > { %p10117_p2 = pmov %p10100_p0 }
 0x425   : > { %8370 = dma.done.wait (%p10116_p12), [#allocation45], 544  }
 0x426   : > { %8372 = vsyncadd (%p10117_p2), [#allocation45], 4294966752  ;;  %p10118_p11 = pmov %p10100_p0 }
 0x427   : > { %p10119_p9 = pmov %p10100_p0 }
 0x428   : > { %8374 = dma.done.wait (%p10118_p11), [#allocation48], 544  }
 0x429   : > { %8376 = vsyncadd (%p10119_p9), [#allocation48], 4294966752  ;;  %p10120_p10 = pmov %p10100_p0 }
 0x42a   : > { %p10121_p1 = pmov %p10100_p0 }
 0x42b   : > { %8378 = dma.done.wait (%p10120_p10), [#allocation51], 64  }
 0x42c   : > { %8380 = vsyncadd (%p10121_p1), [#allocation51], 4294967232  ;;  %p10122_p6 = pmov %p10100_p0 }
 0x42d   : > { %p10123_p13 = pmov %p10100_p0 }
 0x42e   : > { %8382 = dma.done.wait (%p10122_p6), [#allocation54], 288  }
 0x42f   : > { %8384 = vsyncadd (%p10123_p13), [#allocation54], 4294967008  ;;  %p10124_p3 = pmov %p10100_p0 }
 0x430   : > { %p10125_p5 = pmov %p10100_p0 }
 0x431   : > { %8386 = dma.done.wait (%p10124_p3), [#allocation57], 16  }
 0x432   : > { %8388 = vsyncadd (%p10125_p5), [#allocation57], 4294967280  ;;  %v8496_v0 = vmov 0.0|0.0   ;;  %vm8497_vm0 = vmmov 0   ;;  %v8498_v1 = vmov 0.0   ;;  %v1666_v2 = vld [vmem:[%s9287_s2] sm:$0xff] }
 0x433   : > { %6808 = vmatprep.subr.bf16.mxu0 %v8496_v0  ;;  %6467 = vmatprep.mubr.msk.f32.mxu0 %vm8497_vm0, %v8498_v1  ;;  %v1667_v3 = vld [vmem:[%s9287_s2 + $0x8] sm:$0xff]  ;;  %v1668_v4 = vld [vmem:[%s9295_s12] sm:$0xff]  ;;  %vm1677_vm1 = vcmask 130048   ;;  %vm1823_vm2 = vcmask 15360   ;;  %vm1830_vm3 = vcmask 1041408   ;;  %vm2299_vm4 = vcmask 1043456  }
 0x434   : > { %6811 = vmatprep.subr.bf16.mxu1 %v8496_v0  ;;  %6474 = vmatprep.mubr.msk.f32.mxu1 %vm8497_vm0, %v8498_v1  ;;  %v1669_v5 = vld [vmem:[%s9295_s12 + $0x8] sm:$0xff]  ;;  %v9383_v6 = vpack.c.bf16 %v1667_v3, %v1666_v2  ;;  %v1670_v8 = vld [vmem:[#allocation8] sm:$0x3]  ;;  %v2451_v29 = vld [vmem:[#allocation19] sm:$0xf]  ;;  %vm2295_vm6 = vcmask 31744  }
 0x435   : > { %v9385_v7 = vpack.c.bf16 %v1669_v5, %v1668_v4  ;;  %v1671_v9 = vld [vmem:[#allocation10] sm:$0xff]  ;;  %v1672_v17 = vld [vmem:[#allocation10 + $0x8] sm:$0xff]  ;;  %v2073_v27 = vld [vmem:[#allocation16] sm:$0x3]  ;;  %vm3773_vm8 = vcmask 261120   ;;  %s8500_s1 = smov 112  }
 0x436   : > { %6813 = vmatpush3.bf16.msra.mxu1 %v9383_v6  ;;  %v2075_v28 = vld [vmem:[#allocation16 + $0x4] sm:$0x3]  ;;  %v2074_v43 = vld [vmem:[#allocation16 + $0x2] sm:$0x3]  ;;  %v9436_v44 = vld [vmem:[#allocation13] sm:$0xf] }
 0x437   : > { %6810 = vmatpush3.bf16.msra.mxu0 %v9385_v7  ;;  %6814 = vmatprep.subr.bf16.mxu1 %v8496_v0  ;;  %v9444_v45 = vld [vmem:[#allocation14] sm:$0xf]  ;;  %v2450_v46 = vld [vmem:[#allocation17] sm:$0xf]  ;;  %v2612_v53 = vld [vmem:[#allocation22] sm:$0xff]  ;;  %s8501_s3 = smov 96  }
 0x438   : > { %v2613_v54 = vld [vmem:[#allocation22 + $0x8] sm:$0xff]  ;;  %v6226_v57 = vld [vmem:[#allocation20] ss:$0 sm:$0xff]  ;;  %v2772_v62 = vld [vmem:[#allocation26] sm:$0x3]  ;;  %vm4064_vm10 = vcmask 64512  }
 0x439   : > { %6475 = vmatmul.mubr.msk.f32.vlgmr.msra.gmra.mrb[0].mxu1 %vm1677_vm1, %v1670_v8  ;;  %v6827_v55 = vpack.c.bf16 %v2613_v54, %v2612_v53  ;;  %v2774_v63 = vld [vmem:[#allocation26 + $0x4] sm:$0x3]  ;;  %v3650_v53 = vld [vmem:[#allocation37] sm:$0x3]  ;;  %s8502_s8 = smov 64   ;;  %s6325_s28 = sshll.u32 %s8723_s15, 8 }
 0x43a   : > { %6468 = vmatmul.mubr.msk.f32.vlgmr.msra.gmra.mrb[0].mxu0 %vm1677_vm1, %v1670_v8  ;;  %6486 = vmatprep.mubr.msk.f32.mxu1 %vm8497_vm0, %v8498_v1  ;;  %s1653_s6 = scalar_lea.vmem [#allocation58], %s9283_s0  ;;  %s10128_s9 = sld [smem:[#allocation117_spill]] }
 0x43b   : > { %6479 = vmatprep.mubr.msk.f32.mxu0 %vm1823_vm2, %v1671_v9  ;;  %s5620_s14 = sshll.u32 %s1653_s6, 4  ;;  %s9842_s16 = scalar_lea.hbm %s8695_s27, %s6325_s28  ;;  %s9844_s14 = int_to_ptr.vmem [resolvable:$true] %s5620_s14 }
 0x43c   : > { %s9850_s18 = scalar_lea.vmem [#allocation59], %s9283_s0  ;;  %s5602_s17 = scalar_lea.sflag [#allocation4], %s9280_s19 }
 0x43d   : > { %s5636_s4 = sshll.u32 %s9850_s18, 4  ;;  %s8237_s23 = scalar_lea.vmem %s9844_s14, 256  ;;  %s9886_s4 = int_to_ptr.vmem [resolvable:$true] %s5636_s4 }
 0x43e   : > { %p8238_p4 = scmp.ne.s32.totalorder %s9844_s14, %s8237_s23 }
 0x440   : > { %p10129_p0 = scmp.ne.s32.totalorder %s10128_s9, 0 }
 0x442   : > { %p8239_p7 = pnand %p8238_p4, %p10129_p0 }
 0x444   : > { %p8240_p8 = pneg %p8239_p7 }
 0x50c   : > { %v1817_v10 = vpop.f32.mrb[0].mxu1 }
 0x50d   : > { %v1747_v11 = vpop.f32.mrb[0].mxu0  ;;  %v6476_v12 = vpop.f32.mrb[1].mxu1 }
 0x50e   : > { %v1748_v13 = vadd.f32 1e-09, %v1747_v11  ;;  %v6469_v14 = vpop.f32.mrb[1].mxu0 }
 0x510   : > { %7235 = vrcp.f32 %v1748_v13 }
 0x51a   : > { %v7236_v15 = vpop.eup %7235 }
 0x51b   : > { %v9395_v16 = vmul.f32 %v7236_v15, %v1817_v10 }
 0x51d   : > { %6477 = vmatprep.subr.msk.mxu0 %vm1830_vm3, %v9395_v16 }
 0x51e   : > { %6478 = vmatpush3.msk.msra.mxu0 %vm1830_vm3, %v9395_v16 }
 0x51f   : > { %6480 = vmatmul.mubr.msk.f32.vlgmr.msra.gmra.mrb[2].mxu0 %vm1823_vm2, %v1672_v17 }
 0x520   : > { %6491 = vmatprep.mubr.msk.f32.mxu0 %vm1823_vm2, %v1671_v9 }
 0x5f2   : > { %v9403_v18 = vpop.f32.mrb[2].mxu0 }
 0x5f3   : > { %v1910_v19 = vsub.f32 %v1667_v3, %v9403_v18  ;;  %v9406_v20 = vpop.f32.mrb[3].mxu0  ;;  %v2695_v3 = vld [vmem:[#allocation25] sm:$0xff] }
 0x5f4   : > { %v1909_v21 = vsub.f32 %v1666_v2, %v9406_v20  ;;  %v3142_v2 = vld [vmem:[#allocation29] sm:$0xf] }
 0x5f5   : > { %v1912_v22 = vmul.f32 %v1910_v19, %v1669_v5 }
 0x5f6   : > { %v1911_v23 = vmul.f32 %v1909_v21, %v1668_v4  ;;  %v2696_v4 = vld [vmem:[#allocation25 + $0x8] sm:$0xff] }
 0x5f7   : > { %v1914_v24 = vmul.f32 %v1912_v22, %v1912_v22  ;;  %v6830_v5 = vpack.c.bf16 %v2696_v4, %v2695_v3  ;;  %v3303_v22 = vld [vmem:[#allocation32] sm:$0xff]  ;;  %v7218_v3 = vld [vmem:[#allocation40 + $0x8] sm:$0xff]  }
 0x5f8   : > { %v1913_v25 = vmul.f32 %v1911_v23, %v1911_v23  ;;  %v3304_v23 = vld [vmem:[#allocation32 + $0x8] sm:$0xff] }
 0x5fa   : > { %v6815_v26 = vpack.c.bf16 %v1914_v24, %v1913_v25  ;;  %v6842_v24 = vpack.c.bf16 %v3304_v23, %v3303_v22  ;;  %v3141_v25 = vld [vmem:[#allocation28] sm:$0xf]  ;;  %v8499_v22 = vmov 0  }
 0x5fb   : > { %7211 = vset.pattern.permute.xlu0 %v8499_v22  ;;  %7210 = vset.pattern.permute.xlu1 %v8499_v22 }
 0x5fc   : > { %6816 = vmatpush3.bf16.msra.mxu1 %v6815_v26 }
 0x5fd   : > { %6817 = vmatprep.subr.bf16.mxu1 %v8496_v0 }
 0x5ff   : > { %6487 = vmatmul.mubr.msk.f32.vlgmr.msra.gmra.mrb[2].mxu1 %vm1677_vm1, %v1670_v8  ;;  %v6227_v8 = vld [vmem:[#allocation23] ss:$0 sm:$0xff] }
 0x600   : > { %6819 = vmatpush3.bf16.msra.mxu1 %v9383_v6  ;;  %6498 = vmatprep.mubr.msk.f32.mxu1 %vm8497_vm0, %v8498_v1 }
 0x601   : > { %6823 = vmatprep.subr.bf16.mxu1 %v8496_v0 }
 0x603   : > { %6499 = vmatmul.mubr.msk.f32.vlgmr.msra.gmra.mrb[4].mxu1 %vm1677_vm1, %v2073_v27 }
 0x604   : > { %6825 = vmatpush3.bf16.msra.mxu1 %v9383_v6  ;;  %6512 = vmatprep.mubr.msk.f32.mxu1 %vm8497_vm0, %v8498_v1 }
 0x605   : > { %6525 = vmatprep.subr.mxu1 %v8498_v1 }
 0x607   : > { %6513 = vmatmul.mubr.msk.f32.vlgmr.msra.gmra.mrb[6].mxu1 %vm1677_vm1, %v2075_v28 }
 0x608   : > { %6527 = vmatprep.mubr.msk.f32.mxu1 %vm8497_vm0, %v8498_v1  ;;  %6526 = vmatpush3.msk.msra.mxu1 %vm2299_vm4, %v2451_v29 }
 0x609   : > { %6530 = vmatprep.subr.mxu1 %v8498_v1 }
 0x6d2   : > { %v1981_v30 = vpop.f32.mrb[2].mxu1 }
 0x6d3   : > { %v1982_v31 = vadd.f32 1e-09, %v1981_v30  ;;  %v6488_v32 = vpop.f32.mrb[3].mxu1 }
 0x6d5   : > { %v1985_v33 = vmul.f32 %v7236_v15, %v1982_v31  ;;  %v2773_v15 = vld [vmem:[#allocation26 + $0x2] sm:$0x3] }
 0x6d6   : > { %v2145_v34 = vpop.f32.mrb[4].mxu1 }
 0x6d7   : > { %7237 = vrsqrt.f32 %v1985_v33  ;;  %v6500_v35 = vpop.f32.mrb[5].mxu1  ;;  %vm1988_vm5 = vcmp.eq.f32.partialorder %v1985_v33, inf  ;;  %v1991_v40 = vand.u32 2147483648, %v1985_v33  ;;  %vm1990_vm7 = vcmp.eq.f32.partialorder %v1985_v33, 0.0 }
 0x6da   : > { %v2291_v36 = vpop.f32.mrb[6].mxu1 }
 0x6db   : > { %v6514_v37 = vpop.f32.mrb[7].mxu1 }
 0x6dc   : > { %v3386_v37 = vld [vmem:[#allocation35] sm:$0xff] }
 0x6e1   : > { %v7238_v38 = vpop.eup %7237 }
 0x6e2   : > { %v1987_v39 = vmul.f32 %v7238_v38, %v1985_v33  ;;  %v3387_v38 = vld [vmem:[#allocation35 + $0x8] sm:$0xff] }
 0x6e4   : > { %v1989_v41 = vsel %vm1988_vm5, %v1985_v33, %v1987_v39  ;;  %v6241_v33 = vld [vmem:[#allocation31] ss:$0 sm:$0xff]  ;;  %v6845_v39 = vpack.c.bf16 %v3387_v38, %v3386_v37 }
 0x6e5   : > { %v1992_v42 = vsel %vm1990_vm7, %v1991_v40, %v1989_v41  ;;  %v1673_v40 = vld [vmem:[#allocation11] sm:$0xff]  ;;  %v6242_v41 = vld [vmem:[#allocation34] ss:$0 sm:$0xff] }
 0x6e6   : > { %6489 = vmatprep.subr.msk.mxu0 %vm1830_vm3, %v1992_v42  ;;  %6528 = vmatmul.mubr.msk.f32.vlgmr.msra.gmra.mrb[8].mxu1 %vm2295_vm6, %v1992_v42 }
 0x6e7   : > { %6490 = vmatpush3.msk.msra.mxu0 %vm1830_vm3, %v1992_v42  ;;  %6532 = vmatprep.mubr.msk.f32.mxu1 %vm8497_vm0, %v8498_v1 }
 0x6e8   : > { %6492 = vmatmul.mubr.msk.f32.vlgmr.msra.gmra.mrb[4].mxu0 %vm1823_vm2, %v1672_v17  ;;  %6820 = vmatprep.subr.bf16.mxu0 %v8496_v0 }
 0x6e9   : > { %6822 = vmatpush3.bf16.msra.mxu0 %v9383_v6  ;;  %6505 = vmatprep.mubr.msk.f32.mxu0 %vm8497_vm0, %v8498_v1 }
 0x6ea   : > { %6515 = vmatprep.subr.mxu0 %v8498_v1  ;;  %6531 = vmatpush3.msk.msra.mxu1 %vm2299_vm4, %v2450_v46  ;;  %v1674_v46 = vld [vmem:[#allocation11 + $0x8] sm:$0xff] }
 0x6eb   : > { %6829 = vmatprep.subr.bf16.mxu1 %v8496_v0 }
 0x6ec   : > { %6506 = vmatmul.mubr.msk.f32.vlgmr.msra.gmra.mrb[6].mxu0 %vm1677_vm1, %v2074_v43 }
 0x6ed   : > { %6516 = vmatpush3.msk.msra.mxu0 %vm2299_vm4, %v9436_v44  ;;  %6517 = vmatprep.mubr.msk.f32.mxu0 %vm8497_vm0, %v8498_v1 }
 0x6ee   : > { %6520 = vmatprep.subr.mxu0 %v8498_v1 }
 0x6f4   : > { %6518 = vmatmul.mubr.msk.f32.vlgmr.msra.gmra.mrb[6].mxu0 %vm2295_vm6, %v2145_v34 }
 0x6f5   : > { %6521 = vmatpush3.msk.msra.mxu0 %vm2299_vm4, %v9444_v45  ;;  %6522 = vmatprep.mubr.msk.f32.mxu0 %vm8497_vm0, %v8498_v1 }
 0x6f6   : > { %6826 = vmatprep.subr.bf16.mxu0 %v8496_v0 }
 0x6fc   : > { %6523 = vmatmul.mubr.msk.f32.vlgmr.msra.gmra.mrb[6].mxu0 %vm2295_vm6, %v2291_v36 }
 0x6fd   : > { %6539 = vmatprep.mubr.msk.f32.mxu0 %vm8497_vm0, %v8498_v1  ;;  %6828 = vmatpush3.bf16.msra.mxu0 %v6827_v55 }
 0x6fe   : > { %6832 = vmatprep.subr.bf16.mxu0 %v8496_v0 }
 0x7b9   : > { %v2523_v47 = vpop.f32.mrb[8].mxu1 }
 0x7ba   : > { %v6529_v48 = vpop.f32.mrb[9].mxu1 }
 0x7bb   : > { %v9457_v49 = vpop.f32.mrb[4].mxu0  ;;  %v1676_v48 = vld [vmem:[#allocation11 + $0x18] sm:$0xff] }
 0x7bc   : > { %v9459_v50 = vpop.f32.mrb[5].mxu0 }
 0x7cf   : > { %v2445_v51 = vpop.f32.mrb[6].mxu0 }
 0x7d0   : > { %v6524_v52 = vpop.f32.mrb[7].mxu0  ;;  %6533 = vmatmul.mubr.msk.f32.vlgmr.msra.gmra.mrb[10].mxu1 %vm2295_vm6, %v2445_v51  ;;  %v3652_v51 = vld [vmem:[#allocation38] sm:$0x3] }
 0x7d1   : > { %6546 = vmatprep.mubr.msk.f32.mxu1 %vm8497_vm0, %v8498_v1  ;;  %6831 = vmatpush3.bf16.msra.mxu1 %v6830_v5  ;;  %v3657_v52 = vsel %vm1830_vm3, %v3652_v51, 0 }
 0x7d2   : > { %6835 = vmatprep.subr.bf16.mxu1 %v8496_v0 }
 0x8a3   : > { %v2599_v56 = vpop.f32.mrb[10].mxu1 }
 0x8a4   : > { %v2600_v58 = vadd.f32 %v2599_v56, %v2523_v47  ;;  %v6534_v59 = vpop.f32.mrb[11].mxu1  ;;  %v1675_v47 = vld [vmem:[#allocation11 + $0x10] sm:$0xff]  ;;  %v3704_v56 = vsel %vm1830_vm3, %v3650_v53, 0 }
 0x8a6   : > { %v2610_v60 = vadd.f32 %v6226_v57, %v2600_v58 }
 0x8a8   : > { %v2611_v61 = vmax.f32 %v2610_v60, 0.0 }
 0x8aa   : > { %6540 = vmatmul.mubr.msk.f32.vlgmr.msra.gmra.mrb[8].mxu0 %vm1677_vm1, %v2611_v61 }
 0x8ab   : > { %6834 = vmatpush3.bf16.msra.mxu0 %v9383_v6  ;;  %6553 = vmatprep.mubr.msk.f32.mxu0 %vm8497_vm0, %v8498_v1 }
 0x8ac   : > { %6838 = vmatprep.subr.bf16.mxu0 %v8496_v0 }
 0x8ae   : > { %6554 = vmatmul.mubr.msk.f32.vlgmr.msra.gmra.mrb[10].mxu0 %vm1677_vm1, %v2772_v62 }
 0x8af   : > { %6840 = vmatpush3.bf16.msra.mxu0 %v9383_v6  ;;  %6567 = vmatprep.mubr.msk.f32.mxu0 %vm8497_vm0, %v8498_v1 }
 0x8b0   : > { %6580 = vmatprep.subr.mxu0 %v8498_v1 }
 0x8b2   : > { %6568 = vmatmul.mubr.msk.f32.vlgmr.msra.gmra.mrb[12].mxu0 %vm1677_vm1, %v2774_v63 }
 0x8b3   : > { %6581 = vmatpush3.msk.msra.mxu0 %vm2299_vm4, %v3142_v2  ;;  %6582 = vmatprep.mubr.msk.f32.mxu0 %vm8497_vm0, %v8498_v1  ;;  %v7217_v2 = vld [vmem:[#allocation40] sm:$0xff]  }
 0x8b4   : > { %6585 = vmatprep.subr.mxu0 %v8498_v1 }
 0x8b6   : > { %6583 = vmatmul.mubr.msk.f32.vlgmr.msra.gmra.mrb[14].mxu0 %vm2295_vm6, %v9395_v16 }
 0x8b7   : > { %6587 = vmatprep.mubr.msk.f32.mxu0 %vm8497_vm0, %v8498_v1  ;;  %6586 = vmatpush3.msk.msra.mxu0 %vm2299_vm4, %v3141_v25 }
 0x8b8   : > { %6844 = vmatprep.subr.bf16.mxu0 %v8496_v0 }
 0x97d   : > { %v2690_v9 = vpop.f32.mrb[8].mxu0 }
 0x97e   : > { %v2691_v10 = vadd.f32 %v6227_v8, %v2690_v9  ;;  %v6541_v11 = vpop.f32.mrb[9].mxu0 }
 0x980   : > { %v2694_v12 = vmax.f32 %v2691_v10, 0.0 }
 0x981   : > { %v2844_v13 = vpop.f32.mrb[10].mxu0 }
 0x982   : > { %6547 = vmatmul.mubr.msk.f32.vlgmr.msra.gmra.mrb[12].mxu1 %vm1677_vm1, %v2694_v12  ;;  %v6555_v14 = vpop.f32.mrb[11].mxu0  ;;  %v3747_v12 = vld [vmem:[#allocation7] sm:$0xff] }
 0x983   : > { %6837 = vmatpush3.bf16.msra.mxu1 %v9383_v6  ;;  %6560 = vmatprep.mubr.msk.f32.mxu1 %vm8497_vm0, %v8498_v1  ;;  %v3748_v14 = vld [vmem:[#allocation7 + $0x8] sm:$0xff] }
 0x984   : > { %6570 = vmatprep.subr.mxu1 %v8498_v1 }
 0x985   : > { %v2990_v16 = vpop.f32.mrb[12].mxu0 }
 0x986   : > { %6561 = vmatmul.mubr.msk.f32.vlgmr.msra.gmra.mrb[14].mxu1 %vm1677_vm1, %v2773_v15  ;;  %v6569_v17 = vpop.f32.mrb[13].mxu0 }
 0x987   : > { %6571 = vmatpush3.msk.msra.mxu1 %vm2299_vm4, %v9436_v44  ;;  %6572 = vmatprep.mubr.msk.f32.mxu1 %vm8497_vm0, %v8498_v1 }
 0x988   : > { %6575 = vmatprep.subr.mxu1 %v8498_v1 }
 0x989   : > { %v3214_v19 = vpop.f32.mrb[14].mxu0 }
 0x98a   : > { %v6584_v21 = vpop.f32.mrb[15].mxu0 }
 0x98e   : > { %6573 = vmatmul.mubr.msk.f32.vlgmr.msra.gmra.mrb[14].mxu1 %vm2295_vm6, %v2844_v13 }
 0x98f   : > { %6576 = vmatpush3.msk.msra.mxu1 %vm2299_vm4, %v9444_v45  ;;  %6577 = vmatprep.mubr.msk.f32.mxu1 %vm8497_vm0, %v8498_v1 }
 0x990   : > { %6841 = vmatprep.subr.bf16.mxu1 %v8496_v0 }
 0x996   : > { %6578 = vmatmul.mubr.msk.f32.vlgmr.msra.gmra.mrb[14].mxu1 %vm2295_vm6, %v2990_v16 }
 0x997   : > { %6594 = vmatprep.mubr.msk.f32.mxu1 %vm8497_vm0, %v8498_v1  ;;  %6843 = vmatpush3.bf16.msra.mxu1 %v6842_v24 }
 0xa55   : > { %v2766_v26 = vpop.f32.mrb[12].mxu1 }
 0xa56   : > { %v2770_v27 = vmul.f32 1.442695, %v2766_v26  ;;  %v6548_v28 = vpop.f32.mrb[13].mxu1 }
 0xa58   : > { %7239 = vpow2.f32 %v2770_v27 }
 0xa62   : > { %v7240_v29 = vpop.eup %7239 }
 0xa63   : > { %6604 = vmatprep.subr.msk.mxu1 %vm1830_vm3, %v7240_v29 }
 0xa69   : > { %v3136_v30 = vpop.f32.mrb[14].mxu1 }
 0xa6a   : > { %v6579_v31 = vpop.f32.mrb[15].mxu1  ;;  %6588 = vmatmul.mubr.msk.f32.vlgmr.msra.gmra.mrb[16].mxu0 %vm2295_vm6, %v3136_v30 }
 0xa6b   : > { %6601 = vmatprep.mubr.msk.f32.mxu0 %vm8497_vm0, %v8498_v1  ;;  %6846 = vmatpush3.bf16.msra.mxu0 %v6845_v39 }
 0xb3d   : > { %v3290_v32 = vpop.f32.mrb[16].mxu0 }
 0xb3e   : > { %v3291_v34 = vadd.f32 %v3290_v32, %v3214_v19  ;;  %v6589_v35 = vpop.f32.mrb[17].mxu0 }
 0xb40   : > { %v3301_v36 = vadd.f32 %v6241_v33, %v3291_v34 }
 0xb42   : > { %v3302_v0 = vmax.f32 %v3301_v36, 0.0 }
 0xb44   : > { %6595 = vmatmul.mubr.msk.f32.vlgmr.msra.gmra.mrb[16].mxu1 %vm1677_vm1, %v3302_v0 }
 0xb45   : > { %6605 = vmatpush3.msk.msra.mxu1 %vm1830_vm3, %v7240_v29  ;;  %6606 = vmatprep.mubr.msk.f32.mxu1 %vm1823_vm2, %v1673_v40 }
 0xb46   : > { %6620 = vmatprep.subr.bf16.mxu1 %v8498_v1 }
 0xb48   : > { %6607 = vmatmul.mubr.msk.f32.vlgmr.msra.gmra.mrb[18].mxu1 %vm1823_vm2, %v1674_v46 }
 0xb49   : > { %6609 = vmatprep.mubr.msk.f32.mxu1 %vm1823_vm2, %v1675_v47  ;;  %6621 = vmatpush3.bf16.msra.mxu1 %v3657_v52 }
 0xb4a   : > { %6632 = vmatprep.subr.bf16.mxu1 %v8498_v1 }
 0xb4c   : > { %6610 = vmatmul.mubr.msk.f32.gmra.mrb[20].mxu1 %vm1823_vm2, %v1676_v48 }
 0xb4d   : > { %6622 = vmatprep.mubr.msk.bf16.mxu1 %vm8497_vm0, %v8498_v1 }
 0xb50   : > { %6623 = vmatmul.mubr.msk.bf16.vlgmr.msra.gmra.mrb[24].mxu1 %vm2295_vm6, %v9385_v7 }
 0xb51   : > { %6636 = vmatprep.mubr.msk.bf16.mxu1 %vm8497_vm0, %v8498_v1  ;;  %6633 = vmatpush3.bf16.msra.mxu1 %v7217_v2 }
 0xb52   : > { %6634 = vmatprep.subr.bf16.mxu1 %v8498_v1 }
 0xb55   : > { %6635 = vmatpush3.bf16.msra.mxu1 %v7218_v3 }
 0xb56   : > { %6646 = vmatprep.subr.bf16.mxu1 %v8498_v1 }
 0xc17   : > { %v3381_v42 = vpop.f32.mrb[16].mxu1 }
 0xc18   : > { %v3382_v43 = vadd.f32 %v6242_v41, %v3381_v42  ;;  %v6596_v44 = vpop.f32.mrb[17].mxu1  ;;  %v3751_v42 = vlaneseq }
 0xc1a   : > { %v3385_v45 = vmax.f32 %v3382_v43, 0.0  ;;  %v3752_v43 = vshrl.u32 %v3751_v42, 7  ;;  %v3754_v44 = vand.u32 127, %v3751_v42 }
 0xc1b   : > { %v6608_v7 = vpop.f32.mrb[18].mxu1 }
 0xc1c   : > { %6602 = vmatmul.mubr.msk.f32.vlgmr.msra.gmra.mrb[18].mxu0 %vm1677_vm1, %v3385_v45  ;;  %v3542_v57 = vpop.f32.mrb[19].mxu1  ;;  %vm9613_vm9 = vcmp.gt.s32.totalorder %v3754_v44, %v3752_v43 }
 0xc1d   : > { %6614 = vmatprep.mubr.msk.f32.mxu0 %vm1823_vm2, %v1673_v40 }
 0xc1f   : > { %v9542_v58 = vpop.f32.mrb[20].mxu1 }
 0xc20   : > { %v9544_v59 = vpop.f32.mrb[21].mxu1 }
 0xc23   : > { %v3693_v60 = vpop.f32.mrb[24].mxu1 }
 0xc24   : > { %v6624_v61 = vpop.f32.mrb[25].mxu1 }
 0xc25   : > { %v3696_v62 = vpop.f32.mrb[26].mxu1 }
 0xc26   : > { %v6625_v63 = vpop.f32.mrb[27].mxu1 }
 0xcef   : > { %v3457_v54 = vpop.f32.mrb[18].mxu0 }
 0xcf0   : > { %v6603_v55 = vpop.f32.mrb[19].mxu0  ;;  %6612 = vmatprep.subr.msk.mxu0 %vm1830_vm3, %v3457_v54 }
 0xcf1   : > { %6613 = vmatpush3.msk.msra.mxu0 %vm1830_vm3, %v3457_v54 }
 0xcf2   : > { %6615 = vmatmul.mubr.msk.f32.vlgmr.msra.gmra.mrb[20].mxu0 %vm1823_vm2, %v1674_v46  ;;  %6626 = vmatprep.subr.bf16.mxu0 %v8498_v1 }
 0xcf3   : > { %6617 = vmatprep.mubr.msk.f32.mxu0 %vm1823_vm2, %v1675_v47  ;;  %6627 = vmatpush3.bf16.msra.mxu0 %v3704_v56 }
 0xcf4   : > { %6640 = vmatprep.subr.bf16.mxu0 %v8498_v1 }
 0xcf6   : > { %6618 = vmatmul.mubr.msk.f32.gmra.mrb[22].mxu0 %vm1823_vm2, %v1676_v48 }
 0xcf7   : > { %6628 = vmatprep.mubr.msk.bf16.mxu0 %vm8497_vm0, %v8498_v1 }
 0xcfa   : > { %6629 = vmatmul.mubr.msk.bf16.vlgmr.msra.gmra.mrb[24].mxu0 %vm2295_vm6, %v9383_v6 }
 0xcfb   : > { %6642 = vmatprep.mubr.msk.bf16.mxu0 %vm8497_vm0, %v8498_v1 }
 0xdc5   : > { %v9548_v6 = vpop.f32.mrb[20].mxu0 }
 0xdc6   : > { %v9550_v4 = vpop.f32.mrb[21].mxu0 }
 0xdc9   : > { %v9552_v5 = vpop.f32.mrb[22].mxu0 }
 0xdca   : > { %v9554_v8 = vpop.f32.mrb[23].mxu0 }
 0xdcd   : > { %v3740_v9 = vpop.f32.mrb[24].mxu0 }
 0xdce   : > { %v3741_v10 = vadd.f32 %v3740_v9, %v3693_v60  ;;  %v6630_v11 = vpop.f32.mrb[25].mxu0 }
 0xdcf   : > { %v3743_v13 = vpop.f32.mrb[26].mxu0 }
 0xdd0   : > { %v3744_v15 = vadd.f32 %v3743_v13, %v3696_v62  ;;  %v6631_v16 = vpop.f32.mrb[27].mxu0  ;;  %v9556_v17 = vadd.f32 %v3747_v12, %v3741_v10 }
 0xdd2   : > { %v9558_v19 = vadd.f32 %v3748_v14, %v3744_v15 }
 0xdd4   : > { %v3756_v21 = vpack.c.bf16 %v9558_v19, %v9556_v17 }
 0xdd6   : > { %6637 = vmatmul.mubr.msk.bf16.vlgmr.msra.gmra.mrb[28].mxu1 %vm3773_vm8, %v3756_v21 }
 0xdd7   : > { %6648 = vmatprep.mubr.msk.bf16.mxu1 %vm8497_vm0, %v8498_v1 }
 0xea9   : > { %v3811_v23 = vpop.f32.mrb[28].mxu1 }
 0xeaa   : > { %v6638_v24 = vpop.f32.mrb[29].mxu1  ;;  %v9570_v29 = vpack.c.bf16 %v3811_v23, %v3811_v23 }
 0xeab   : > { %v3814_v25 = vpop.f32.mrb[30].mxu1 }
 0xeac   : > { %v9565_v26 = vpack.c.bf16 %v3814_v25, %v3814_v25  ;;  %v6639_v27 = vpop.f32.mrb[31].mxu1  ;;  %v7205_v28 = vpack.i.bf16 %v3814_v25, %v3811_v23 }
 0xeae   : > { %7206 = vrot.lane.b32.xlu0 %v7205_v28, %s8500_s1  ;;  %3880 = vrot.lane.b32.xlu1 %v9565_v26, %s8501_s3 }
 0xeb2   : > { %3831 = vrot.lane.b32.xlu0 %v9570_v29, %s8501_s3 }
 0xf20   : > { %v7207_v30 = vpop.permute.xlu0 %7206  ;;  %v3881_v31 = vpop.permute.xlu1 %3880 }
 0xf21   : > { %v7209_v32 = vunpack.i.h.bf16 %v7207_v30  ;;  %v7208_v33 = vunpack.i.l.bf16 %v7207_v30  ;;  %v3886_v34 = vsel %vm1677_vm1, %v3881_v31, 0 }
 0xf22   : > { %6647 = vmatpush3.bf16.xpose.msra.mxu1 %v3886_v34 }
 0xf23   : > { %v9575_v35 = vpack.c.bf16 %v7209_v32, %v7209_v32  ;;  %v9577_v36 = vpack.c.bf16 %v7208_v33, %v7208_v33  ;;  %6658 = vmatprep.subr.bf16.mxu1 %v8498_v1 }
 0xf24   : > { %v3832_v0 = vpop.permute.xlu0 %3831 }
 0xf25   : > { %v3837_v37 = vsel %vm1677_vm1, %v3832_v0, 0  ;;  %3978 = vrot.lane.b32.xlu0 %v9575_v35, %s8501_s3  ;;  %3929 = vrot.lane.b32.xlu1 %v9577_v36, %s8501_s3 }
 0xf26   : > { %6641 = vmatpush3.bf16.xpose.msra.mxu0 %v3837_v37 }
 0xf27   : > { %6652 = vmatprep.subr.bf16.mxu0 %v8498_v1 }
 0xf29   : > { %4033 = vperm.xlu0 %7211, %v6608_v7   ;;  %4028 = vperm.xlu1 %7210, %v3542_v57  }
 0xf2a   : > { %6649 = vmatmul.mubr.msk.bf16.vlgmr.msra.gmra.mrb[32].mxu1 %vm1677_vm1, %v9565_v26 }
 0xf2b   : > { %6660 = vmatprep.mubr.msk.bf16.mxu1 %vm8497_vm0, %v8498_v1 }
 0xf2d   : > { %6643 = vmatmul.mubr.msk.bf16.vlgmr.msra.gmra.mrb[28].mxu0 %vm1677_vm1, %v9570_v29  ;;  %4038 = vperm.xlu1 %7210, %v9544_v59  }
 0xf2e   : > { %6654 = vmatprep.mubr.msk.bf16.mxu0 %vm8497_vm0, %v8498_v1 }
 0xf31   : > { %4043 = vperm.xlu1 %7210, %v9542_v58  }
 0xf97   : > { %v3979_v38 = vpop.permute.xlu0 %3978  ;;  %v3930_v39 = vpop.permute.xlu1 %3929 }
 0xf98   : > { %v3984_v40 = vsel %vm1677_vm1, %v3979_v38, 0  ;;  %v3935_v41 = vsel %vm1677_vm1, %v3930_v39, 0 }
 0xf99   : > { %6653 = vmatpush3.bf16.xpose.msra.mxu0 %v3935_v41  ;;  %6659 = vmatpush3.bf16.xpose.msra.mxu1 %v3984_v40 }
 0xf9a   : > { %6664 = vmatprep.subr.bf16.mxu0 %v8498_v1  ;;  %6670 = vmatprep.subr.bf16.mxu1 %v8498_v1 }
 0xfa0   : > { %6655 = vmatmul.mubr.msk.bf16.vlgmr.msra.gmra.mrb[32].mxu0 %vm1677_vm1, %v9577_v36  ;;  %6661 = vmatmul.mubr.msk.bf16.vlgmr.msra.gmra.mrb[36].mxu1 %vm1677_vm1, %v9575_v35 }
 0xfa1   : > { %6666 = vmatprep.mubr.msk.bf16.mxu0 %vm8497_vm0, %v8498_v1  ;;  %6672 = vmatprep.mubr.msk.bf16.mxu1 %vm8497_vm0, %v8498_v1 }
 0xfa8   : > { %v9608_v45 = vpop.permute.xlu0 %4033  ;;  %v9611_v51 = vpop.permute.xlu1 %4028 }
 0xfac   : > { %v9628_v10 = vpop.permute.xlu1 %4038 }
 0xfb0   : > { %v9630_v11 = vpop.permute.xlu1 %4043 }
 0xffd   : > { %v3922_v46 = vpop.f32.mrb[32].mxu1 }
 0xffe   : > { %v4047_v47 = vmul.f32 %v9608_v45, %v3922_v46  ;;  %v6650_v48 = vpop.f32.mrb[33].mxu1 }
 0xfff   : > { %v3925_v52 = vpop.f32.mrb[34].mxu1 }
0x1000   : > { %v4051_v54 = vadd.f32 %v9548_v6, %v4047_v47  ;;  %v6651_v55 = vpop.f32.mrb[35].mxu1  ;;  %v3873_v56 = vpop.f32.mrb[28].mxu0 }
0x1001   : > { %v4046_v7 = vmul.f32 %v9611_v51, %v3873_v56  ;;  %v6644_v57 = vpop.f32.mrb[29].mxu0 }
0x1002   : > { %v3876_v58 = vpop.f32.mrb[30].mxu0  ;;  %v4057_v59 = vsel %vm9613_vm9, -1e+09, %v4051_v54 }
0x1003   : > { %v4050_v60 = vadd.f32 %v4046_v7, %v9550_v4  ;;  %v6645_v61 = vpop.f32.mrb[31].mxu0  ;;  %v4061_v62 = vmul.f32 0.25, %v4057_v59 }
0x1005   : > { %v4068_v63 = vsel %vm4064_vm10, %v4061_v62, -inf  ;;  %v4056_v2 = vsel %vm9613_vm9, -1e+09, %v4050_v60 }
0x1006   : > { %4069 = vmax.xlane.f32.xlu1 %v4068_v63  ;;  %v4060_v3 = vmul.f32 0.25, %v4056_v2 }
0x1008   : > { %v4065_v9 = vsel %vm4064_vm10, %v4060_v3, -inf }
0x1009   : > { %4066 = vmax.xlane.f32.xlu0 %v4065_v9 }
0x1017   : > { %4113 = vrot.lane.b32.xlu1 %v9570_v29, %s8502_s8 }
0x1073   : > { %v3971_v12 = vpop.f32.mrb[32].mxu0  ;;  %v4020_v13 = vpop.f32.mrb[36].mxu1 }
0x1074   : > { %v4048_v14 = vmul.f32 %v9628_v10, %v3971_v12  ;;  %v4049_v15 = vmul.f32 %v9630_v11, %v4020_v13  ;;  %v6656_v16 = vpop.f32.mrb[33].mxu0  ;;  %v6662_v21 = vpop.f32.mrb[37].mxu1 }
0x1075   : > { %v3974_v22 = vpop.f32.mrb[34].mxu0  ;;  %v4023_v23 = vpop.f32.mrb[38].mxu1 }
0x1076   : > { %v4052_v24 = vadd.f32 %v4048_v14, %v9554_v8  ;;  %v4053_v25 = vadd.f32 %v9552_v5, %v4049_v15  ;;  %v6657_v27 = vpop.f32.mrb[35].mxu0  ;;  %v6663_v28 = vpop.f32.mrb[39].mxu1 }
0x1078   : > { %v4058_v29 = vsel %vm9613_vm9, -1e+09, %v4052_v24  ;;  %v4059_v30 = vsel %vm9613_vm9, -1e+09, %v4053_v25 }
0x1079   : > { %v4062_v31 = vmul.f32 0.25, %v4058_v29  ;;  %v4063_v33 = vmul.f32 0.25, %v4059_v30 }
0x107b   : > { %v4071_v32 = vsel %vm4064_vm10, %v4062_v31, -inf  ;;  %v4074_v34 = vsel %vm4064_vm10, %v4063_v33, -inf }
0x107c   : > { %4072 = vmax.xlane.f32.xlu0 %v4071_v32  ;;  %v7220_v32 = vld [vmem:[#allocation41 + $0x8] sm:$0xff]  }
0x1080   : > { %4075 = vmax.xlane.f32.xlu0 %v4074_v34 }
0x1093   : > { %v4070_v0 = vpop.xlane.xlu1 %4069 }
0x1094   : > { %v4078_v37 = vsub.f32 %v4061_v62, %v4070_v0 }
0x1096   : > { %v4083_v38 = vmul.f32 1.442695, %v4078_v37  ;;  %v4067_v39 = vpop.xlane.xlu0 %4066 }
0x1097   : > { %v4077_v40 = vsub.f32 %v4060_v3, %v4067_v39  ;;  %v4114_v41 = vpop.permute.xlu1 %4113 }
0x1098   : > { %7241 = vpow2.f32 %v4083_v38  ;;  %v4119_v42 = vsel %vm2299_vm4, %v4114_v41, 0 }
0x1099   : > { %v4081_v43 = vmul.f32 1.442695, %v4077_v40  ;;  %6665 = vmatpush3.bf16.msra.mxu0 %v4119_v42 }
0x109a   : > { %6676 = vmatprep.subr.bf16.mxu0 %v8498_v1 }
0x109b   : > { %7243 = vpow2.f32 %v4081_v43 }
0x10a2   : > { %v7242_v44 = vpop.eup %7241 }
0x10a3   : > { %v4092_v46 = vsel %vm4064_vm10, %v7242_v44, 0.0 }
0x10a4   : > { %4093 = vadd.xlane.f32.xlu0 %v4092_v46 }
0x10a5   : > { %v7244_v47 = vpop.eup %7243 }
0x10a6   : > { %v4089_v48 = vsel %vm4064_vm10, %v7244_v47, 0.0 }
0x10a7   : > { %4090 = vadd.xlane.f32.xlu1 %v4089_v48 }
0x1109   : > { %v4073_v52 = vpop.xlane.xlu0 %4072 }
0x110a   : > { %v4079_v54 = vsub.f32 %v4062_v31, %v4073_v52  ;;  %v7219_v31 = vld [vmem:[#allocation41] sm:$0xff]  }
0x110c   : > { %v4085_v55 = vmul.f32 1.442695, %v4079_v54 }
0x110d   : > { %v4076_v56 = vpop.xlane.xlu0 %4075 }
0x110e   : > { %7245 = vpow2.f32 %v4085_v55  ;;  %v4080_v7 = vsub.f32 %v4063_v33, %v4076_v56 }
0x1110   : > { %v4087_v57 = vmul.f32 1.442695, %v4080_v7 }
0x1112   : > { %7247 = vpow2.f32 %v4087_v57 }
0x1118   : > { %v7246_v58 = vpop.eup %7245 }
0x1119   : > { %v4095_v59 = vsel %vm4064_vm10, %v7246_v58, 0.0 }
0x111a   : > { %4096 = vadd.xlane.f32.xlu1 %v4095_v59 }
0x111c   : > { %v7248_v60 = vpop.eup %7247 }
0x111d   : > { %v4098_v61 = vsel %vm4064_vm10, %v7248_v60, 0.0 }
0x111e   : > { %4099 = vadd.xlane.f32.xlu0 %v4098_v61 }
0x112b   : > { %4209 = vrot.lane.b32.xlu1 %v9577_v36, %s8502_s8 }
0x112f   : > { %4257 = vrot.lane.b32.xlu1 %v9575_v35, %s8502_s8 }
0x1131   : > { %v4094_v9 = vpop.xlane.xlu0 %4093 }
0x1134   : > { %v4091_v62 = vpop.xlane.xlu1 %4090  ;;  %4161 = vrot.lane.b32.xlu0 %v9565_v26, %s8502_s8 }
0x1135   : > { %7249 = vrcp.f32 %v4091_v62 }
0x1136   : > { %7251 = vrcp.f32 %v4094_v9 }
0x113f   : > { %v7250_v63 = vpop.eup %7249 }
0x1140   : > { %v4102_v2 = vmul.f32 %v7250_v63, %v7244_v47  ;;  %v7252_v36 = vpop.eup %7251 }
0x1141   : > { %v4104_v26 = vmul.f32 %v7252_v36, %v7242_v44 }
0x1142   : > { %v4109_v3 = vpack.c.bf16 %v4102_v2, %v4102_v2 }
0x1143   : > { %v4110_v23 = vpack.c.bf16 %v4104_v26, %v4104_v26 }
0x1144   : > { %6667 = vmatmul.mubr.msk.bf16.vlgmr.msra.gmra.mrb[36].mxu0 %vm4064_vm10, %v4109_v3 }
0x1145   : > { %6678 = vmatprep.mubr.msk.bf16.mxu0 %vm8497_vm0, %v8498_v1 }
0x11a7   : > { %v4097_v12 = vpop.xlane.xlu1 %4096 }
0x11a8   : > { %7253 = vrcp.f32 %v4097_v12 }
0x11ab   : > { %v4210_v13 = vpop.permute.xlu1 %4209  ;;  %v4100_v35 = vpop.xlane.xlu0 %4099 }
0x11ac   : > { %v4215_v14 = vsel %vm2299_vm4, %v4210_v13, 0  ;;  %7255 = vrcp.f32 %v4100_v35 }
0x11ad   : > { %6677 = vmatpush3.bf16.msra.mxu0 %v4215_v14 }
0x11ae   : > { %6688 = vmatprep.subr.bf16.mxu0 %v8498_v1 }
0x11af   : > { %v4162_v15 = vpop.permute.xlu0 %4161  ;;  %v4258_v21 = vpop.permute.xlu1 %4257 }
0x11b0   : > { %v4167_v16 = vsel %vm2299_vm4, %v4162_v15, 0  ;;  %v4263_v25 = vsel %vm2299_vm4, %v4258_v21, 0 }
0x11b1   : > { %6671 = vmatpush3.bf16.msra.mxu1 %v4167_v16 }
0x11b2   : > { %v7254_v22 = vpop.eup %7253  ;;  %6682 = vmatprep.subr.bf16.mxu1 %v8498_v1 }
0x11b3   : > { %v4106_v24 = vmul.f32 %v7254_v22, %v7246_v58 }
0x11b4   : > { %6673 = vmatmul.mubr.msk.bf16.vlgmr.msra.gmra.mrb[40].mxu1 %vm4064_vm10, %v4110_v23 }
0x11b5   : > { %6683 = vmatpush3.bf16.msra.mxu1 %v4263_v25  ;;  %v4111_v27 = vpack.c.bf16 %v4106_v24, %v4106_v24  ;;  %6684 = vmatprep.mubr.msk.bf16.mxu1 %vm8497_vm0, %v8498_v1  ;;  %v7221_v25 = vld [vmem:[#allocation46] sm:$0xff]  }
0x11b6   : > { %v7256_v28 = vpop.eup %7255  ;;  %6694 = vmatprep.subr.bf16.mxu1 %v8498_v1 }
0x11b7   : > { %v4108_v29 = vmul.f32 %v7256_v28, %v7248_v60  ;;  %6679 = vmatmul.mubr.msk.bf16.vlgmr.msra.gmra.mrb[40].mxu0 %vm4064_vm10, %v4111_v27 }
0x11b8   : > { %6690 = vmatprep.mubr.msk.bf16.mxu0 %vm8497_vm0, %v8498_v1  ;;  %6689 = vmatpush3.bf16.msra.mxu0 %v7219_v31 }
0x11b9   : > { %v4112_v30 = vpack.c.bf16 %v4108_v29, %v4108_v29  ;;  %6700 = vmatprep.subr.bf16.mxu0 %v8498_v1 }
0x11bc   : > { %6685 = vmatmul.mubr.msk.bf16.vlgmr.msra.gmra.mrb[44].mxu1 %vm4064_vm10, %v4112_v30 }
0x11bd   : > { %6696 = vmatprep.mubr.msk.bf16.mxu1 %vm8497_vm0, %v8498_v1  ;;  %6695 = vmatpush3.bf16.msra.mxu1 %v7220_v32 }
0x11be   : > { %6708 = vmatprep.subr.bf16.mxu1 %v8498_v1 }
0x1217   : > { %v4155_v33 = vpop.f32.mrb[36].mxu0 }
0x1218   : > { %v6668_v34 = vpop.f32.mrb[37].mxu0 }
0x1219   : > { %v4158_v0 = vpop.f32.mrb[38].mxu0 }
0x121a   : > { %v6669_v37 = vpop.f32.mrb[39].mxu0  ;;  %v6272_v0 = vld [vmem:[#allocation43] ss:$0 sm:$0xff] }
0x1287   : > { %v4203_v38 = vpop.f32.mrb[40].mxu1 }
0x1288   : > { %v4305_v39 = vpack.c.bf16 %v4203_v38, %v4155_v33  ;;  %v6674_v40 = vpop.f32.mrb[41].mxu1 }
0x1289   : > { %v4206_v41 = vpop.f32.mrb[42].mxu1  ;;  %v6273_v40 = vld [vmem:[#allocation44] ss:$0 sm:$0xff] }
0x128a   : > { %v6675_v42 = vpop.f32.mrb[43].mxu1  ;;  %v4251_v43 = vpop.f32.mrb[40].mxu0  ;;  %6691 = vmatmul.mubr.msk.bf16.vlgmr.msra.gmra.mrb[44].mxu0 %vm1677_vm1, %v4305_v39 }
0x128b   : > { %v6680_v44 = vpop.f32.mrb[41].mxu0  ;;  %6704 = vmatprep.mubr.msk.bf16.mxu0 %vm8497_vm0, %v8498_v1  ;;  %6701 = vmatpush3.bf16.msra.mxu0 %v7221_v25 }
0x128c   : > { %v4254_v46 = vpop.f32.mrb[42].mxu0  ;;  %6702 = vmatprep.subr.bf16.mxu0 %v8498_v1 }
0x128d   : > { %v6681_v47 = vpop.f32.mrb[43].mxu0  ;;  %v7223_v46 = vld [vmem:[#allocation49] sm:$0xff]  }
0x128e   : > { %v7224_v47 = vld [vmem:[#allocation49 + $0x8] sm:$0xff]  }
0x128f   : > { %v4299_v48 = vpop.f32.mrb[44].mxu1 }
0x1290   : > { %v4306_v52 = vpack.c.bf16 %v4299_v48, %v4251_v43  ;;  %v6686_v54 = vpop.f32.mrb[45].mxu1  ;;  %v6274_v48 = vld [vmem:[#allocation47] ss:$0 sm:$0xff] }
0x1291   : > { %v4302_v55 = vpop.f32.mrb[46].mxu1 }
0x1292   : > { %v6687_v56 = vpop.f32.mrb[47].mxu1  ;;  %6697 = vmatmul.mubr.msk.bf16.vlgmr.msra.gmra.mrb[48].mxu1 %vm1677_vm1, %v4306_v52 }
0x1293   : > { %6712 = vmatprep.mubr.msk.bf16.mxu1 %vm8497_vm0, %v8498_v1  ;;  %6709 = vmatpush3.bf16.msra.mxu1 %v7223_v46 }
0x1294   : > { %6710 = vmatprep.subr.bf16.mxu1 %v8498_v1 }
0x1297   : > { %6711 = vmatpush3.bf16.msra.mxu1 %v7224_v47 }
0x1298   : > { %6724 = vmatprep.subr.bf16.mxu1 %v8498_v1 }
0x135d   : > { %v4354_v7 = vpop.f32.mrb[44].mxu0 }
0x135e   : > { %v6692_v57 = vpop.f32.mrb[45].mxu0 }
0x135f   : > { %v4357_v58 = vpop.f32.mrb[46].mxu0 }
0x1360   : > { %v6693_v59 = vpop.f32.mrb[47].mxu0 }
0x1365   : > { %v4404_v60 = vpop.f32.mrb[48].mxu1 }
0x1366   : > { %v4411_v61 = vadd.f32 %v4404_v60, %v4354_v7  ;;  %v6698_v62 = vpop.f32.mrb[49].mxu1 }
0x1367   : > { %v4407_v63 = vpop.f32.mrb[50].mxu1 }
0x1368   : > { %v4412_v2 = vadd.f32 %v4407_v63, %v4357_v58  ;;  %v6699_v3 = vpop.f32.mrb[51].mxu1  ;;  %v4413_v9 = vadd.f32 %v4411_v61, %v9556_v17  ;;  %v6278_v61 = vld [vmem:[#allocation50] ss:$0 sm:$0xff] }
0x136a   : > { %v4417_v12 = vsel %vm3773_vm8, %v4413_v9, 0.0  ;;  %v4414_v36 = vadd.f32 %v4412_v2, %v9558_v19  ;;  %v7222_v19 = vld [vmem:[#allocation46 + $0x8] sm:$0xff]  }
0x136b   : > { %4418 = vadd.xlane.f32.xlu0 %v4417_v12  ;;  %6703 = vmatpush3.bf16.msra.mxu0 %v7222_v19 }
0x136c   : > { %v4420_v13 = vsel %vm3773_vm8, %v4414_v36, 0.0  ;;  %6716 = vmatprep.subr.bf16.mxu0 %v8498_v1 }
0x136d   : > { %4421 = vadd.xlane.f32.xlu1 %v4420_v13 }
0x13f8   : > { %v4419_v35 = vpop.xlane.xlu0 %4418 }
0x13f9   : > { %v4424_v14 = vmul.f32 0.03125, %v4419_v35 }
0x13fa   : > { %v4422_v26 = vpop.xlane.xlu1 %4421 }
0x13fb   : > { %v4426_v15 = vsub.f32 %v4413_v9, %v4424_v14  ;;  %v4425_v16 = vmul.f32 0.03125, %v4422_v26 }
0x13fd   : > { %v4427_v21 = vsub.f32 %v4414_v36, %v4425_v16  ;;  %v4428_v22 = vmul.f32 %v4426_v15, %v4426_v15 }
0x13ff   : > { %v4430_v23 = vsel %vm3773_vm8, %v4428_v22, 0.0  ;;  %v4429_v24 = vmul.f32 %v4427_v21, %v4427_v21 }
0x1400   : > { %4431 = vadd.xlane.f32.xlu0 %v4430_v23 }
0x1401   : > { %v4433_v17 = vsel %vm3773_vm8, %v4429_v24, 0.0 }
0x1404   : > { %4434 = vadd.xlane.f32.xlu0 %v4433_v17 }
0x148d   : > { %v4432_v27 = vpop.xlane.xlu0 %4431 }
0x148e   : > { %v4436_v28 = vmul.f32 0.03125, %v4432_v27  ;;  %v7225_v27 = vld [vmem:[#allocation40 + $0x10] sm:$0xff]  }
0x1490   : > { %v4438_v29 = vadd.f32 1e-05, %v4436_v28  ;;  %v7226_v28 = vld [vmem:[#allocation40 + $0x18] sm:$0xff]  }
0x1491   : > { %v4435_v30 = vpop.xlane.xlu0 %4434 }
0x1492   : > { %7257 = vrsqrt.f32 %v4438_v29  ;;  %v4437_v31 = vmul.f32 0.03125, %v4435_v30 }
0x1494   : > { %v4439_v32 = vadd.f32 1e-05, %v4437_v31 }
0x1496   : > { %7259 = vrsqrt.f32 %v4439_v32 }
0x149c   : > { %v7258_v33 = vpop.eup %7257 }
0x149d   : > { %v4442_v34 = vmul.f32 %v7258_v33, %v4426_v15 }
0x149f   : > { %v4450_v38 = vmul.f32 %v6272_v0, %v4442_v34 }
0x14a0   : > { %v7260_v37 = vpop.eup %7259 }
0x14a1   : > { %v4443_v39 = vmul.f32 %v7260_v37, %v4427_v21  ;;  %v4458_v42 = vadd.f32 %v6273_v40, %v4450_v38  ;;  %v6282_v37 = vld [vmem:[#allocation52] ss:$0 sm:$0xff] }
0x14a3   : > { %v4451_v41 = vmul.f32 %v6272_v0, %v4443_v39 }
0x14a5   : > { %v4459_v43 = vadd.f32 %v6273_v40, %v4451_v41 }
0x14a7   : > { %v4460_v44 = vpack.c.bf16 %v4459_v43, %v4458_v42 }
0x14a9   : > { %6705 = vmatmul.mubr.msk.bf16.vlgmr.msra.gmra.mrb[48].mxu0 %vm3773_vm8, %v4460_v44 }
0x14aa   : > { %6720 = vmatprep.mubr.msk.bf16.mxu0 %vm8497_vm0, %v8498_v1  ;;  %6717 = vmatpush3.bf16.msra.mxu0 %v7225_v27 }
0x14ab   : > { %6718 = vmatprep.subr.bf16.mxu0 %v8498_v1 }
0x14ae   : > { %6719 = vmatpush3.bf16.msra.mxu0 %v7226_v28 }
0x14af   : > { %6730 = vmatprep.subr.bf16.mxu0 %v8498_v1 }
0x157c   : > { %v4521_v52 = vpop.f32.mrb[48].mxu0 }
0x157d   : > { %v4522_v54 = vadd.f32 %v6274_v48, %v4521_v52  ;;  %v6706_v55 = vpop.f32.mrb[49].mxu0 }
0x157e   : > { %v4524_v56 = vpop.f32.mrb[50].mxu0 }
0x157f   : > { %v4525_v7 = vadd.f32 %v6274_v48, %v4524_v56  ;;  %v6707_v57 = vpop.f32.mrb[51].mxu0  ;;  %v4528_v58 = vmax.f32 %v4522_v54, 0.0 }
0x1581   : > { %v4529_v59 = vmax.f32 %v4525_v7, 0.0 }
0x1583   : > { %v4530_v60 = vpack.c.bf16 %v4529_v59, %v4528_v58 }
0x1585   : > { %6713 = vmatmul.mubr.msk.bf16.vlgmr.msra.gmra.mrb[52].mxu1 %vm3773_vm8, %v4530_v60 }
0x1586   : > { %6726 = vmatprep.mubr.msk.bf16.mxu1 %vm8497_vm0, %v8498_v1 }
0x1658   : > { %v4591_v62 = vpop.f32.mrb[52].mxu1 }
0x1659   : > { %v4592_v63 = vadd.f32 %v6278_v61, %v4591_v62  ;;  %v6714_v2 = vpop.f32.mrb[53].mxu1 }
0x165a   : > { %v4594_v3 = vpop.f32.mrb[54].mxu1 }
0x165b   : > { %v4595_v9 = vadd.f32 %v6278_v61, %v4594_v3  ;;  %v6715_v12 = vpop.f32.mrb[55].mxu1  ;;  %v4598_v36 = vadd.f32 %v4592_v63, %v4458_v42  ;;  %v6283_v42 = vld [vmem:[#allocation53] ss:$0 sm:$0xff] }
0x165d   : > { %v4602_v13 = vsel %vm3773_vm8, %v4598_v36, 0.0  ;;  %v4599_v35 = vadd.f32 %v4595_v9, %v4459_v43 }
0x165e   : > { %4603 = vadd.xlane.f32.xlu1 %v4602_v13 }
0x165f   : > { %v4605_v14 = vsel %vm3773_vm8, %v4599_v35, 0.0 }
0x1660   : > { %4606 = vadd.xlane.f32.xlu0 %v4605_v14 }
0x16eb   : > { %v4604_v26 = vpop.xlane.xlu1 %4603 }
0x16ec   : > { %v4608_v15 = vmul.f32 0.03125, %v4604_v26 }
0x16ed   : > { %v4607_v16 = vpop.xlane.xlu0 %4606 }
0x16ee   : > { %v4610_v21 = vsub.f32 %v4598_v36, %v4608_v15  ;;  %v4609_v22 = vmul.f32 0.03125, %v4607_v16 }
0x16f0   : > { %v4611_v23 = vsub.f32 %v4599_v35, %v4609_v22  ;;  %v4612_v24 = vmul.f32 %v4610_v21, %v4610_v21 }
0x16f2   : > { %v4614_v17 = vsel %vm3773_vm8, %v4612_v24, 0.0  ;;  %v4613_v25 = vmul.f32 %v4611_v23, %v4611_v23 }
0x16f3   : > { %4615 = vadd.xlane.f32.xlu1 %v4614_v17 }
0x16f4   : > { %v4617_v19 = vsel %vm3773_vm8, %v4613_v25, 0.0 }
0x16f5   : > { %4618 = vadd.xlane.f32.xlu0 %v4617_v19 }
0x1780   : > { %v4616_v29 = vpop.xlane.xlu1 %4615 }
0x1781   : > { %v4620_v30 = vmul.f32 0.03125, %v4616_v29 }
0x1782   : > { %v4619_v31 = vpop.xlane.xlu0 %4618 }
0x1783   : > { %v4622_v32 = vadd.f32 1e-05, %v4620_v30  ;;  %v4621_v33 = vmul.f32 0.03125, %v4619_v31 }
0x1785   : > { %7261 = vrsqrt.f32 %v4622_v32  ;;  %v4623_v34 = vadd.f32 1e-05, %v4621_v33 }
0x1787   : > { %7263 = vrsqrt.f32 %v4623_v34 }
0x178f   : > { %v7262_v0 = vpop.eup %7261 }
0x1790   : > { %v4626_v38 = vmul.f32 %v7262_v0, %v4610_v21 }
0x1791   : > { %v7264_v39 = vpop.eup %7263 }
0x1792   : > { %v4634_v40 = vmul.f32 %v6282_v37, %v4626_v38  ;;  %v4627_v41 = vmul.f32 %v7264_v39, %v4611_v23 }
0x1794   : > { %v4635_v43 = vmul.f32 %v6282_v37, %v4627_v41  ;;  %v9702_v44 = vadd.f32 %v6283_v42, %v4634_v40 }
0x1796   : > { %v9704_v46 = vadd.f32 %v6283_v42, %v4635_v43 }
0x1798   : > { %v4644_v47 = vpack.c.bf16 %v9704_v46, %v9702_v44 }
0x179a   : > { %6721 = vmatmul.mubr.msk.bf16.vlgmr.msra.gmra.mrb[52].mxu0 %vm3773_vm8, %v4644_v47 }
0x179b   : > { %6732 = vmatprep.mubr.msk.bf16.mxu0 %vm8497_vm0, %v8498_v1 }
0x186d   : > { %v4699_v48 = vpop.f32.mrb[52].mxu0 }
0x186e   : > { %v9711_v52 = vpack.c.bf16 %v4699_v48, %v4699_v48  ;;  %v6722_v54 = vpop.f32.mrb[53].mxu0 }
0x186f   : > { %v4702_v55 = vpop.f32.mrb[54].mxu0 }
0x1870   : > { %v7212_v56 = vpack.i.bf16 %v4702_v55, %v4699_v48  ;;  %4719 = vrot.lane.b32.xlu0 %v9711_v52, %s8501_s3  ;;  %v6723_v7 = vpop.f32.mrb[55].mxu0  ;;  %v9716_v57 = vpack.c.bf16 %v4702_v55, %v4702_v55 }
0x1872   : > { %7213 = vrot.lane.b32.xlu1 %v7212_v56, %s8500_s1 }
0x1876   : > { %4768 = vrot.lane.b32.xlu1 %v9716_v57, %s8501_s3 }
0x18e2   : > { %v4720_v58 = vpop.permute.xlu0 %4719 }
0x18e3   : > { %v4725_v59 = vsel %vm1677_vm1, %v4720_v58, 0 }
0x18e4   : > { %6725 = vmatpush3.bf16.xpose.msra.mxu1 %v4725_v59  ;;  %v7214_v60 = vpop.permute.xlu1 %7213 }
0x18e5   : > { %v7216_v61 = vunpack.i.h.bf16 %v7214_v60  ;;  %v7215_v62 = vunpack.i.l.bf16 %v7214_v60  ;;  %6736 = vmatprep.subr.bf16.mxu1 %v8498_v1 }
0x18e7   : > { %v9722_v63 = vpack.c.bf16 %v7216_v61, %v7216_v61  ;;  %v9724_v2 = vpack.c.bf16 %v7215_v62, %v7215_v62 }
0x18e8   : > { %v4769_v3 = vpop.permute.xlu1 %4768 }
0x18e9   : > { %v4774_v9 = vsel %vm1677_vm1, %v4769_v3, 0  ;;  %4866 = vrot.lane.b32.xlu0 %v9722_v63, %s8501_s3  ;;  %4817 = vrot.lane.b32.xlu1 %v9724_v2, %s8501_s3 }
0x18ea   : > { %6731 = vmatpush3.bf16.xpose.msra.mxu0 %v4774_v9 }
0x18eb   : > { %6727 = vmatmul.mubr.msk.bf16.vlgmr.msra.gmra.mrb[56].mxu1 %vm1677_vm1, %v9711_v52  ;;  %6742 = vmatprep.subr.bf16.mxu0 %v8498_v1 }
0x18ec   : > { %6738 = vmatprep.mubr.msk.bf16.mxu1 %vm8497_vm0, %v8498_v1 }
0x18f1   : > { %6733 = vmatmul.mubr.msk.bf16.vlgmr.msra.gmra.mrb[56].mxu0 %vm1677_vm1, %v9716_v57 }
0x18f2   : > { %6744 = vmatprep.mubr.msk.bf16.mxu0 %vm8497_vm0, %v8498_v1 }
0x195b   : > { %v4867_v12 = vpop.permute.xlu0 %4866  ;;  %v4818_v36 = vpop.permute.xlu1 %4817 }
0x195c   : > { %v4872_v13 = vsel %vm1677_vm1, %v4867_v12, 0  ;;  %v4823_v35 = vsel %vm1677_vm1, %v4818_v36, 0 }
0x195d   : > { %6737 = vmatpush3.bf16.xpose.msra.mxu1 %v4823_v35  ;;  %6743 = vmatpush3.bf16.xpose.msra.mxu0 %v4872_v13 }
0x195e   : > { %6748 = vmatprep.subr.bf16.mxu1 %v8498_v1  ;;  %6754 = vmatprep.subr.bf16.mxu0 %v8498_v1 }
0x1964   : > { %6739 = vmatmul.mubr.msk.bf16.vlgmr.msra.gmra.mrb[60].mxu1 %vm1677_vm1, %v9724_v2  ;;  %6745 = vmatmul.mubr.msk.bf16.vlgmr.msra.gmra.mrb[60].mxu0 %vm1677_vm1, %v9722_v63 }
0x1965   : > { %6750 = vmatprep.mubr.msk.bf16.mxu1 %vm8497_vm0, %v8498_v1  ;;  %6756 = vmatprep.mubr.msk.bf16.mxu0 %vm8497_vm0, %v8498_v1 }
0x19be   : > { %v4761_v14 = vpop.f32.mrb[56].mxu1 }
0x19bf   : > { %v4914_v26 = vmul.f32 %v4761_v14, %v9611_v51  ;;  %v6728_v15 = vpop.f32.mrb[57].mxu1 }
0x19c0   : > { %v4764_v16 = vpop.f32.mrb[58].mxu1 }
0x19c1   : > { %v4918_v21 = vadd.f32 %v4914_v26, %v9550_v4  ;;  %v6729_v22 = vpop.f32.mrb[59].mxu1 }
0x19c3   : > { %v4922_v23 = vsel %vm9613_vm9, -1e+09, %v4918_v21 }
0x19c4   : > { %v4810_v24 = vpop.f32.mrb[56].mxu0  ;;  %v4926_v17 = vmul.f32 0.25, %v4922_v23 }
0x19c5   : > { %v4915_v25 = vmul.f32 %v4810_v24, %v9608_v45  ;;  %v6734_v19 = vpop.f32.mrb[57].mxu0 }
0x19c6   : > { %v4813_v27 = vpop.f32.mrb[58].mxu0  ;;  %v4930_v28 = vsel %vm4064_vm10, %v4926_v17, -inf }
0x19c7   : > { %v4919_v29 = vadd.f32 %v9548_v6, %v4915_v25  ;;  %v6735_v30 = vpop.f32.mrb[59].mxu0  ;;  %4931 = vmax.xlane.f32.xlu1 %v4930_v28 }
0x19c9   : > { %v4923_v51 = vsel %vm9613_vm9, -1e+09, %v4919_v29 }
0x19ca   : > { %v4927_v4 = vmul.f32 0.25, %v4923_v51 }
0x19cc   : > { %v4933_v31 = vsel %vm4064_vm10, %v4927_v4, -inf }
0x19cd   : > { %4934 = vmax.xlane.f32.xlu0 %v4933_v31 }
0x1a37   : > { %v4859_v32 = vpop.f32.mrb[60].mxu1  ;;  %v4908_v33 = vpop.f32.mrb[60].mxu0 }
0x1a38   : > { %v4916_v34 = vmul.f32 %v4859_v32, %v9628_v10  ;;  %v4917_v45 = vmul.f32 %v4908_v33, %v9630_v11  ;;  %v6740_v0 = vpop.f32.mrb[61].mxu1  ;;  %v6746_v37 = vpop.f32.mrb[61].mxu0 }
0x1a39   : > { %v4862_v38 = vpop.f32.mrb[62].mxu1  ;;  %v4911_v39 = vpop.f32.mrb[62].mxu0  ;;  %v7227_v0 = vld [vmem:[#allocation41 + $0x10] sm:$0xff]  }
0x1a3a   : > { %v4920_v6 = vadd.f32 %v4916_v34, %v9554_v8  ;;  %v4921_v40 = vadd.f32 %v9552_v5, %v4917_v45  ;;  %v6741_v41 = vpop.f32.mrb[63].mxu1  ;;  %v6747_v42 = vpop.f32.mrb[63].mxu0  ;;  %v7228_v38 = vld [vmem:[#allocation41 + $0x18] sm:$0xff]  }
0x1a3c   : > { %v4925_v43 = vsel %vm9613_vm9, -1e+09, %v4921_v40  ;;  %v4924_v47 = vsel %vm9613_vm9, -1e+09, %v4920_v6 }
0x1a3d   : > { %v4929_v48 = vmul.f32 0.25, %v4925_v43  ;;  %v4928_v10 = vmul.f32 0.25, %v4924_v47 }
0x1a3f   : > { %v4939_v11 = vsel %vm4064_vm10, %v4929_v48, -inf  ;;  %v4936_v54 = vsel %vm4064_vm10, %v4928_v10, -inf }
0x1a40   : > { %4940 = vmax.xlane.f32.xlu1 %v4939_v11  ;;  %4937 = vmax.xlane.f32.xlu0 %v4936_v54 }
0x1a51   : > { %5026 = vrot.lane.b32.xlu1 %v9716_v57, %s8502_s8 }
0x1a54   : > { %v4932_v5 = vpop.xlane.xlu1 %4931 }
0x1a55   : > { %v4942_v55 = vsub.f32 %v4926_v17, %v4932_v5 }
0x1a56   : > { %4978 = vrot.lane.b32.xlu0 %v9711_v52, %s8502_s8 }
0x1a57   : > { %v4946_v53 = vmul.f32 1.442695, %v4942_v55 }
0x1a59   : > { %7265 = vpow2.f32 %v4946_v53 }
0x1a5a   : > { %v4935_v8 = vpop.xlane.xlu0 %4934 }
0x1a5b   : > { %v4943_v56 = vsub.f32 %v4927_v4, %v4935_v8 }
0x1a5d   : > { %v4948_v7 = vmul.f32 1.442695, %v4943_v56 }
0x1a5f   : > { %7267 = vpow2.f32 %v4948_v7 }
0x1a63   : > { %v7266_v58 = vpop.eup %7265 }
0x1a64   : > { %v4954_v61 = vsel %vm4064_vm10, %v7266_v58, 0.0 }
0x1a69   : > { %v7268_v59 = vpop.eup %7267 }
0x1a6a   : > { %v4957_v60 = vsel %vm4064_vm10, %v7268_v59, 0.0 }
0x1a75   : > { %4958 = vadd.xlane.f32.xlu1 %v4957_v60  ;;  %4955 = vadd.xlane.f32.xlu0 %v4954_v61 }
0x1acd   : > { %v4941_v57 = vpop.xlane.xlu1 %4940  ;;  %v4938_v62 = vpop.xlane.xlu0 %4937 }
0x1ace   : > { %v4945_v3 = vsub.f32 %v4929_v48, %v4941_v57  ;;  %v4944_v52 = vsub.f32 %v4928_v10, %v4938_v62 }
0x1ad0   : > { %v4952_v9 = vmul.f32 1.442695, %v4945_v3  ;;  %v4950_v12 = vmul.f32 1.442695, %v4944_v52 }
0x1ad1   : > { %v5027_v36 = vpop.permute.xlu1 %5026  ;;  %v4979_v13 = vpop.permute.xlu0 %4978 }
0x1ad2   : > { %7269 = vpow2.f32 %v4952_v9  ;;  %v5032_v35 = vsel %vm2299_vm4, %v5027_v36, 0  ;;  %v4984_v14 = vsel %vm2299_vm4, %v4979_v13, 0 }
0x1ad3   : > { %7271 = vpow2.f32 %v4950_v12  ;;  %6749 = vmatpush3.bf16.msra.mxu1 %v4984_v14  ;;  %6755 = vmatpush3.bf16.msra.mxu0 %v5032_v35 }
0x1ad4   : > { %6760 = vmatprep.subr.bf16.mxu1 %v8498_v1  ;;  %6766 = vmatprep.subr.bf16.mxu0 %v8498_v1 }
0x1adc   : > { %v7270_v26 = vpop.eup %7269 }
0x1add   : > { %v7272_v15 = vpop.eup %7271  ;;  %v4963_v16 = vsel %vm4064_vm10, %v7270_v26, 0.0 }
0x1ade   : > { %4964 = vadd.xlane.f32.xlu1 %v4963_v16  ;;  %v4960_v21 = vsel %vm4064_vm10, %v7272_v15, 0.0 }
0x1adf   : > { %4961 = vadd.xlane.f32.xlu0 %v4960_v21 }
0x1aef   : > { %5074 = vrot.lane.b32.xlu1 %v9724_v2, %s8502_s8 }
0x1af5   : > { %5122 = vrot.lane.b32.xlu0 %v9722_v63, %s8502_s8 }
0x1b02   : > { %v4959_v22 = vpop.xlane.xlu1 %4958  ;;  %v4956_v23 = vpop.xlane.xlu0 %4955 }
0x1b03   : > { %7273 = vrcp.f32 %v4959_v22 }
0x1b04   : > { %7275 = vrcp.f32 %v4956_v23 }
0x1b0d   : > { %v7274_v24 = vpop.eup %7273 }
0x1b0e   : > { %v7276_v17 = vpop.eup %7275  ;;  %v4969_v25 = vmul.f32 %v7274_v24, %v7268_v59 }
0x1b0f   : > { %v4967_v19 = vmul.f32 %v7276_v17, %v7266_v58 }
0x1b10   : > { %v4975_v27 = vpack.c.bf16 %v4969_v25, %v4969_v25 }
0x1b11   : > { %v4974_v28 = vpack.c.bf16 %v4967_v19, %v4967_v19 }
0x1b12   : > { %6757 = vmatmul.mubr.msk.bf16.vlgmr.msra.gmra.mrb[64].mxu0 %vm4064_vm10, %v4975_v27  ;;  %v7229_v27 = vld [vmem:[#allocation46 + $0x10] sm:$0xff]  }
0x1b13   : > { %6751 = vmatmul.mubr.msk.bf16.vlgmr.msra.gmra.mrb[64].mxu1 %vm4064_vm10, %v4974_v28  ;;  %6768 = vmatprep.mubr.msk.bf16.mxu0 %vm8497_vm0, %v8498_v1 }
0x1b14   : > { %6762 = vmatprep.mubr.msk.bf16.mxu1 %vm8497_vm0, %v8498_v1 }
0x1b6b   : > { %v4965_v63 = vpop.xlane.xlu1 %4964 }
0x1b6c   : > { %7277 = vrcp.f32 %v4965_v63  ;;  %v4962_v2 = vpop.xlane.xlu0 %4961 }
0x1b6d   : > { %7279 = vrcp.f32 %v4962_v2 }
0x1b6f   : > { %v5075_v29 = vpop.permute.xlu1 %5074 }
0x1b70   : > { %v5080_v30 = vsel %vm2299_vm4, %v5075_v29, 0  ;;  %v5123_v51 = vpop.permute.xlu0 %5122 }
0x1b71   : > { %v5128_v4 = vsel %vm2299_vm4, %v5123_v51, 0  ;;  %6761 = vmatpush3.bf16.msra.mxu1 %v5080_v30 }
0x1b72   : > { %6767 = vmatpush3.bf16.msra.mxu0 %v5128_v4  ;;  %6772 = vmatprep.subr.bf16.mxu1 %v8498_v1 }
0x1b73   : > { %6778 = vmatprep.subr.bf16.mxu0 %v8498_v1 }
0x1b76   : > { %v7278_v31 = vpop.eup %7277 }
0x1b77   : > { %v7280_v32 = vpop.eup %7279  ;;  %v4973_v33 = vmul.f32 %v7278_v31, %v7270_v26  ;;  %v6299_v31 = vld [vmem:[#allocation43 + $0x1] ss:$0 sm:$0xff] }
0x1b78   : > { %v4971_v34 = vmul.f32 %v7280_v32, %v7272_v15 }
0x1b79   : > { %v4977_v45 = vpack.c.bf16 %v4973_v33, %v4973_v33 }
0x1b7a   : > { %v4976_v37 = vpack.c.bf16 %v4971_v34, %v4971_v34 }
0x1b7b   : > { %6769 = vmatmul.mubr.msk.bf16.vlgmr.msra.gmra.mrb[68].mxu0 %vm4064_vm10, %v4977_v45 }
0x1b7c   : > { %6763 = vmatmul.mubr.msk.bf16.vlgmr.msra.gmra.mrb[68].mxu1 %vm4064_vm10, %v4976_v37  ;;  %6780 = vmatprep.mubr.msk.bf16.mxu0 %vm8497_vm0, %v8498_v1 }
0x1b7d   : > { %6773 = vmatpush3.bf16.msra.mxu1 %v7227_v0  ;;  %6774 = vmatprep.mubr.msk.bf16.mxu1 %vm8497_vm0, %v8498_v1  ;;  %v6300_v0 = vld [vmem:[#allocation44 + $0x1] ss:$0 sm:$0xff] }
0x1b7e   : > { %6784 = vmatprep.subr.bf16.mxu1 %v8498_v1  ;;  %6779 = vmatpush3.bf16.msra.mxu0 %v7228_v38 }
0x1b7f   : > { %6792 = vmatprep.subr.bf16.mxu0 %v8498_v1 }
0x1be5   : > { %v5068_v39 = vpop.f32.mrb[64].mxu0 }
0x1be6   : > { %v5020_v6 = vpop.f32.mrb[64].mxu1  ;;  %v6758_v40 = vpop.f32.mrb[65].mxu0 }
0x1be7   : > { %v5170_v41 = vpack.c.bf16 %v5068_v39, %v5020_v6  ;;  %v6752_v42 = vpop.f32.mrb[65].mxu1  ;;  %v5071_v43 = vpop.f32.mrb[66].mxu0  ;;  %v7231_v40 = vld [vmem:[#allocation49 + $0x10] sm:$0xff]  }
0x1be8   : > { %v5023_v47 = vpop.f32.mrb[66].mxu1  ;;  %v6759_v48 = vpop.f32.mrb[67].mxu0  ;;  %v6301_v42 = vld [vmem:[#allocation47 + $0x1] ss:$0 sm:$0xff] }
0x1be9   : > { %v6753_v10 = vpop.f32.mrb[67].mxu1  ;;  %6775 = vmatmul.mubr.msk.bf16.vlgmr.msra.gmra.mrb[72].mxu1 %vm1677_vm1, %v5170_v41  ;;  %v7232_v41 = vld [vmem:[#allocation49 + $0x18] sm:$0xff]  }
0x1bea   : > { %6788 = vmatprep.mubr.msk.bf16.mxu1 %vm8497_vm0, %v8498_v1  ;;  %6785 = vmatpush3.bf16.msra.mxu1 %v7229_v27 }
0x1beb   : > { %6786 = vmatprep.subr.bf16.mxu1 %v8498_v1 }
0x1c4e   : > { %v5164_v11 = vpop.f32.mrb[68].mxu0 }
0x1c4f   : > { %v5116_v54 = vpop.f32.mrb[68].mxu1  ;;  %v6770_v5 = vpop.f32.mrb[69].mxu0 }
0x1c50   : > { %v5171_v8 = vpack.c.bf16 %v5164_v11, %v5116_v54  ;;  %v6764_v55 = vpop.f32.mrb[69].mxu1  ;;  %v5167_v56 = vpop.f32.mrb[70].mxu0 }
0x1c51   : > { %v5119_v53 = vpop.f32.mrb[70].mxu1  ;;  %v6771_v7 = vpop.f32.mrb[71].mxu0  ;;  %v6305_v56 = vld [vmem:[#allocation50 + $0x1] ss:$0 sm:$0xff] }
0x1c52   : > { %v6765_v58 = vpop.f32.mrb[71].mxu1  ;;  %6781 = vmatmul.mubr.msk.bf16.vlgmr.msra.gmra.mrb[72].mxu0 %vm1677_vm1, %v5171_v8 }
0x1c53   : > { %6796 = vmatprep.mubr.msk.bf16.mxu0 %vm8497_vm0, %v8498_v1  ;;  %6793 = vmatpush3.bf16.msra.mxu0 %v7231_v40 }
0x1c54   : > { %6794 = vmatprep.subr.bf16.mxu0 %v8498_v1 }
0x1c57   : > { %6795 = vmatpush3.bf16.msra.mxu0 %v7232_v41 }
0x1cbc   : > { %v5220_v59 = vpop.f32.mrb[72].mxu1 }
0x1cbd   : > { %v6776_v60 = vpop.f32.mrb[73].mxu1 }
0x1cbe   : > { %v5223_v61 = vpop.f32.mrb[74].mxu1 }
0x1cbf   : > { %v6777_v57 = vpop.f32.mrb[75].mxu1 }
0x1d25   : > { %v5270_v62 = vpop.f32.mrb[72].mxu0 }
0x1d26   : > { %v5277_v3 = vadd.f32 %v5270_v62, %v5220_v59  ;;  %v6782_v52 = vpop.f32.mrb[73].mxu0 }
0x1d27   : > { %v5273_v9 = vpop.f32.mrb[74].mxu0 }
0x1d28   : > { %v5278_v12 = vadd.f32 %v5273_v9, %v5223_v61  ;;  %v6783_v36 = vpop.f32.mrb[75].mxu0  ;;  %v5279_v13 = vadd.f32 %v5277_v3, %v9702_v44 }
0x1d2a   : > { %v5285_v35 = vsel %vm3773_vm8, %v5279_v13, 0.0  ;;  %v5280_v14 = vadd.f32 %v5278_v12, %v9704_v46  ;;  %v7230_v46 = vld [vmem:[#allocation46 + $0x18] sm:$0xff]  }
0x1d2b   : > { %5286 = vadd.xlane.f32.xlu1 %v5285_v35  ;;  %6787 = vmatpush3.bf16.msra.mxu1 %v7230_v46 }
0x1d2c   : > { %v5288_v26 = vsel %vm3773_vm8, %v5280_v14, 0.0  ;;  %6800 = vmatprep.subr.bf16.mxu1 %v8498_v1 }
0x1d2d   : > { %5289 = vadd.xlane.f32.xlu0 %v5288_v26 }
0x1db8   : > { %v5287_v15 = vpop.xlane.xlu1 %5286 }
0x1db9   : > { %v5291_v16 = vmul.f32 0.03125, %v5287_v15 }
0x1dba   : > { %v5290_v21 = vpop.xlane.xlu0 %5289 }
0x1dbb   : > { %v5293_v22 = vsub.f32 %v5279_v13, %v5291_v16  ;;  %v5292_v23 = vmul.f32 0.03125, %v5290_v21 }
0x1dbd   : > { %v5294_v24 = vsub.f32 %v5280_v14, %v5292_v23  ;;  %v5295_v17 = vmul.f32 %v5293_v22, %v5293_v22  ;;  %v7234_v23 = vld [vmem:[#allocation55 + $0x8] sm:$0xff]  }
0x1dbf   : > { %v5297_v25 = vsel %vm3773_vm8, %v5295_v17, 0.0  ;;  %v5296_v19 = vmul.f32 %v5294_v24, %v5294_v24 }
0x1dc0   : > { %5298 = vadd.xlane.f32.xlu0 %v5297_v25 }
0x1dc1   : > { %v5300_v44 = vsel %vm3773_vm8, %v5296_v19, 0.0 }
0x1dc2   : > { %5301 = vadd.xlane.f32.xlu1 %v5300_v44 }
0x1e4d   : > { %v5299_v28 = vpop.xlane.xlu0 %5298 }
0x1e4e   : > { %v5303_v63 = vmul.f32 0.03125, %v5299_v28  ;;  %v6309_v28 = vld [vmem:[#allocation52 + $0x1] ss:$0 sm:$0xff] }
0x1e4f   : > { %v5302_v2 = vpop.xlane.xlu1 %5301 }
0x1e50   : > { %v5305_v29 = vadd.f32 1e-05, %v5303_v63  ;;  %v5304_v30 = vmul.f32 0.03125, %v5302_v2 }
0x1e52   : > { %7281 = vrsqrt.f32 %v5305_v29  ;;  %v5306_v51 = vadd.f32 1e-05, %v5304_v30 }
0x1e54   : > { %7283 = vrsqrt.f32 %v5306_v51  ;;  %v6310_v51 = vld [vmem:[#allocation53 + $0x1] ss:$0 sm:$0xff] }
0x1e5c   : > { %v7282_v4 = vpop.eup %7281 }
0x1e5d   : > { %v5309_v32 = vmul.f32 %v7282_v4, %v5293_v22  ;;  %v7233_v22 = vld [vmem:[#allocation55] sm:$0xff]  }
0x1e5e   : > { %v7284_v33 = vpop.eup %7283 }
0x1e5f   : > { %v5317_v34 = vmul.f32 %v6299_v31, %v5309_v32  ;;  %v5310_v45 = vmul.f32 %v7284_v33, %v5294_v24  ;;  %v6311_v33 = vld [vmem:[#allocation56] ss:$0 sm:$0xff] }
0x1e61   : > { %v5318_v37 = vmul.f32 %v6299_v31, %v5310_v45  ;;  %v5325_v38 = vadd.f32 %v6300_v0, %v5317_v34 }
0x1e63   : > { %v5326_v39 = vadd.f32 %v6300_v0, %v5318_v37 }
0x1e65   : > { %v5327_v6 = vpack.c.bf16 %v5326_v39, %v5325_v38 }
0x1e67   : > { %6789 = vmatmul.mubr.msk.bf16.vlgmr.msra.gmra.mrb[76].mxu1 %vm3773_vm8, %v5327_v6 }
0x1e68   : > { %6804 = vmatprep.mubr.msk.bf16.mxu1 %vm8497_vm0, %v8498_v1  ;;  %6801 = vmatpush3.bf16.msra.mxu1 %v7233_v22 }
0x1e69   : > { %6802 = vmatprep.subr.bf16.mxu1 %v8498_v1 }
0x1e6c   : > { %6803 = vmatpush3.bf16.msra.mxu1 %v7234_v23 }
0x1f3a   : > { %v5390_v43 = vpop.f32.mrb[76].mxu1 }
0x1f3b   : > { %v5391_v47 = vadd.f32 %v6301_v42, %v5390_v43  ;;  %v6790_v48 = vpop.f32.mrb[77].mxu1 }
0x1f3c   : > { %v5393_v10 = vpop.f32.mrb[78].mxu1 }
0x1f3d   : > { %v5394_v11 = vadd.f32 %v6301_v42, %v5393_v10  ;;  %v6791_v54 = vpop.f32.mrb[79].mxu1  ;;  %v5397_v5 = vmax.f32 %v5391_v47, 0.0  ;;  %v7290_v42 = vld [vmem:[%s9287_s2] sm:$0xff]  ;;  %v7291_v10 = vld [vmem:[%s9295_s12 + $0x8] sm:$0xff] }
0x1f3f   : > { %v5398_v8 = vmax.f32 %v5394_v11, 0.0  ;;  %v5594_v11 = vsub.f32 1.0, %v7291_v10 }
0x1f41   : > { %v5399_v55 = vpack.c.bf16 %v5398_v8, %v5397_v5 }
0x1f43   : > { %6797 = vmatmul.mubr.msk.bf16.vlgmr.msra.gmra.mrb[76].mxu0 %vm3773_vm8, %v5399_v55 }
0x2016   : > { %v5462_v53 = vpop.f32.mrb[76].mxu0 }
0x2017   : > { %v5463_v7 = vadd.f32 %v6305_v56, %v5462_v53  ;;  %v6798_v58 = vpop.f32.mrb[77].mxu0 }
0x2018   : > { %v5465_v59 = vpop.f32.mrb[78].mxu0 }
0x2019   : > { %v5466_v60 = vadd.f32 %v6305_v56, %v5465_v59  ;;  %v6799_v61 = vpop.f32.mrb[79].mxu0  ;;  %v5469_v57 = vadd.f32 %v5463_v7, %v5325_v38 }
0x201b   : > { %v5475_v62 = vsel %vm3773_vm8, %v5469_v57, 0.0  ;;  %v5470_v3 = vadd.f32 %v5466_v60, %v5326_v39  ;;  %v7289_v39 = vld [vmem:[%s9295_s12] sm:$0xff] }
0x201c   : > { %5476 = vadd.xlane.f32.xlu0 %v5475_v62  ;;  %v5593_v6 = vsub.f32 1.0, %v7289_v39  ;;  %v5591_v43 = vmul.f32 %v7290_v42, %v7289_v39 }
0x201d   : > { %v5478_v52 = vsel %vm3773_vm8, %v5470_v3, 0.0 }
0x201e   : > { %5479 = vadd.xlane.f32.xlu1 %v5478_v52 }
0x20a9   : > { %v5477_v9 = vpop.xlane.xlu0 %5476 }
0x20aa   : > { %v5481_v12 = vmul.f32 0.03125, %v5477_v9 }
0x20ab   : > { %v5480_v36 = vpop.xlane.xlu1 %5479 }
0x20ac   : > { %v5483_v13 = vsub.f32 %v5469_v57, %v5481_v12  ;;  %v5482_v35 = vmul.f32 0.03125, %v5480_v36 }
0x20ae   : > { %v5484_v14 = vsub.f32 %v5470_v3, %v5482_v35  ;;  %v5485_v26 = vmul.f32 %v5483_v13, %v5483_v13 }
0x20b0   : > { %v5487_v15 = vsel %vm3773_vm8, %v5485_v26, 0.0  ;;  %v5486_v16 = vmul.f32 %v5484_v14, %v5484_v14 }
0x20b1   : > { %5488 = vadd.xlane.f32.xlu0 %v5487_v15 }
0x20b2   : > { %v5490_v21 = vsel %vm3773_vm8, %v5486_v16, 0.0 }
0x20b3   : > { %5491 = vadd.xlane.f32.xlu1 %v5490_v21 }
0x213e   : > { %v5489_v24 = vpop.xlane.xlu0 %5488 }
0x213f   : > { %v5493_v17 = vmul.f32 0.03125, %v5489_v24 }
0x2140   : > { %v5492_v25 = vpop.xlane.xlu1 %5491 }
0x2141   : > { %v5495_v19 = vadd.f32 1e-05, %v5493_v17  ;;  %v5494_v44 = vmul.f32 0.03125, %v5492_v25 }
0x2143   : > { %7285 = vrsqrt.f32 %v5495_v19  ;;  %v5496_v27 = vadd.f32 1e-05, %v5494_v44 }
0x2145   : > { %7287 = vrsqrt.f32 %v5496_v27 }
0x214d   : > { %v7286_v46 = vpop.eup %7285 }
0x214e   : > { %v5499_v63 = vmul.f32 %v7286_v46, %v5483_v13 }
0x214f   : > { %v7288_v2 = vpop.eup %7287 }
0x2150   : > { %v5507_v29 = vmul.f32 %v6309_v28, %v5499_v63  ;;  %v5500_v30 = vmul.f32 %v7288_v2, %v5484_v14 }
0x2152   : > { %v5508_v1 = vmul.f32 %v6309_v28, %v5500_v30  ;;  %v5515_v4 = vadd.f32 %v6310_v51, %v5507_v29 }
0x2154   : > { %v5516_v31 = vadd.f32 %v6310_v51, %v5508_v1 }
0x2156   : > { %v5517_v32 = vpack.c.bf16 %v5516_v31, %v5515_v4 }
0x2158   : > { %6805 = vmatmul.mubr.msk.bf16.vlgmr.msra.gmra.mrb[80].mxu1 %vm3773_vm8, %v5517_v32 }
0x222b   : > { %v5578_v34 = vpop.f32.mrb[80].mxu1 }
0x222c   : > { %v5579_v45 = vadd.f32 %v6311_v33, %v5578_v34  ;;  %v6806_v0 = vpop.f32.mrb[81].mxu1 }
0x222d   : > { %v5581_v37 = vpop.f32.mrb[82].mxu1 }
0x222e   : > { %v5585_v38 = vmul.f32 %v5579_v45, %v9459_v50  ;;  %v5582_v40 = vadd.f32 %v6311_v33, %v5581_v37  ;;  %v6807_v41 = vpop.f32.mrb[83].mxu1  ;;  %v7292_v50 = vld [vmem:[%s9287_s2 + $0x8] sm:$0xff]  ;;  %s8503_s2 = smov [#allocation58]  }
0x222f   : > { %v5592_v54 = vmul.f32 %v7292_v50, %v7291_v10  ;;  %s8241_s13 = sshll.u32 %s8503_s2, 4  ;;  %s8242_s13 = int_to_ptr.vmem [resolvable:$false] %s8241_s13 }
0x2230   : > { %v5587_v47 = vadd.f32 %v5585_v38, %v9406_v20  ;;  %v5586_v48 = vmul.f32 %v9457_v49, %v5582_v40  ;;  %s8243_s12 = scalar_lea.vmem %s8242_s13, 512  ;;  %p8244_p12 = scmp.lt.s32.totalorder %s9844_s14, %s8242_s13 }
0x2231   : > { %p8245_p2 = scmp.lt.s32.totalorder %s8243_s12, %s8237_s23 }
0x2232   : > { %5589 = vst.msk [vmem:[%s1653_s6] sm:$0xff] %vm2295_vm6, %v5587_v47  ;;  %v5595_v5 = vmul.f32 %v5593_v6, %v5587_v47  ;;  %v5588_v20 = vadd.f32 %v9403_v18, %v5586_v48 }
0x2233   : > { %p8246_p11 = por %p8245_p2, %p8244_p12 }
0x2234   : > { %v5597_v49 = vadd.f32 %v5595_v5, %v5591_v43  ;;  %5590 = vst.msk [vmem:[%s1653_s6 + $0x8] sm:$0xff] %vm2295_vm6, %v5588_v20  ;;  %v5596_v8 = vmul.f32 %v5594_v11, %v5588_v20 }
0x2235   : > { %p8247_p9 = pnand %p8246_p11, %p8240_p8 }
0x2237   : > { %8250 = shalt.err (!%p8247_p9)
}
0x2238   : > { %s8251_s0 = scalar_lea.hbm %s9842_s16, 256  ;;  %s8255_s1 = scalar_lea.hbm %s8695_s27, 512 }
0x2239   : > { %p8252_p10 = scmp.ne.s32.totalorder %s9842_s16, %s8251_s0  ;;  %p8256_p13 = scmp.lt.u32.totalorder %s9842_s16, %s8695_s27 }
0x223a   : > { %p8257_p3 = scmp.lt.u32.totalorder %s8255_s1, %s8251_s0  ;;  %p8259_p4 = scmp.lt.u32.totalorder %s8251_s0, %s9842_s16 }
0x223b   : > { %p8253_p1 = pnand %p8252_p10, %p10129_p0 }
0x223c   : > { %p8258_p5 = por %p8257_p3, %p8256_p13 }
0x223d   : > { %p8254_p6 = pneg %p8253_p1 }
0x223e   : > { %p8260_p7 = por %p8259_p4, %p8258_p5 }
0x2240   : > { %p8261_p8 = pnand %p8260_p7, %p8254_p6 }
0x2242   : > { %8264 = shalt.err (!%p8261_p8)
}
0x2243   : > { %s8504_s3 = smov 128   ;;  %s10130_s8 = sld [smem:[#allocation113_spill]]  ;;  %v5598_v18 = vadd.f32 %v5596_v8, %v5592_v54  ;;  %5599 = vst.msk [vmem:[%s9850_s18] sm:$0xff] %vm2295_vm6, %v5597_v49 }
0x2244   : > { %s8505_s6 = smov 8   ;;  %s5607_s2 = scalar_lea.sflag [#allocation60], %s9280_s19 }
0x2245   : > { %6995 = dma.vmem_to_hbm [thread:$0]  (%p10129_p0), %s9844_s14, 256, %s9842_s16, %s5602_s17, %s8504_s3, %s8504_s3, %s8505_s6  }
0x2246   : > { %5600 = vst.msk [vmem:[%s9850_s18 + $0x8] sm:$0xff] %vm2295_vm6, %v5598_v18  ;;  %s8265_s13 = scalar_lea.vmem %s9886_s4, 256  ;;  %s8506_s14 = smov [#allocation59]  }
0x2247   : > { %p8266_p12 = scmp.ne.s32.totalorder %s9886_s4, %s8265_s13  ;;  %s8269_s16 = sshll.u32 %s8506_s14, 4  ;;  %s8270_s16 = int_to_ptr.vmem [resolvable:$false] %s8269_s16 }
0x2248   : > { %s8271_s15 = scalar_lea.vmem %s8270_s16, 512  ;;  %p8272_p9 = scmp.lt.s32.totalorder %s9886_s4, %s8270_s16 }
0x2249   : > { %s9882_s23 = scalar_lea.hbm %s10130_s8, %s6325_s28  ;;  %p8267_p2 = pnand %p8266_p12, %p10129_p0 }
0x224a   : > { %p8273_p10 = scmp.lt.s32.totalorder %s8271_s15, %s8265_s13 }
0x224b   : > { %p8268_p11 = pneg %p8267_p2 }
0x224c   : > { %p8274_p1 = por %p8273_p10, %p8272_p9 }
0x224e   : > { %p8275_p6 = pnand %p8274_p1, %p8268_p11 }
0x2250   : > { %8278 = shalt.err (!%p8275_p6)
}
0x2251   : > { %s8279_s28 = scalar_lea.hbm %s9882_s23, 256  ;;  %s8283_s18 = scalar_lea.hbm %s10130_s8, 512 }
0x2252   : > { %p8280_p13 = scmp.ne.s32.totalorder %s9882_s23, %s8279_s28  ;;  %p8284_p4 = scmp.lt.u32.totalorder %s9882_s23, %s10130_s8 }
0x2253   : > { %p8285_p7 = scmp.lt.u32.totalorder %s8283_s18, %s8279_s28  ;;  %p8287_p12 = scmp.lt.u32.totalorder %s8279_s28, %s9882_s23 }
0x2254   : > { %p8281_p3 = pnand %p8280_p13, %p10129_p0 }
0x2255   : > { %p8286_p8 = por %p8285_p7, %p8284_p4 }
0x2256   : > { %p8282_p5 = pneg %p8281_p3 }
0x2257   : > { %p8288_p2 = por %p8287_p12, %p8286_p8 }
0x2259   : > { %p8289_p11 = pnand %p8288_p2, %p8282_p5 }
0x225b   : > { %8292 = shalt.err (!%p8289_p11)
}
0x225c   : > { %6996 = dma.vmem_to_hbm [thread:$0]  (%p10129_p0), %s9886_s4, 256, %s9882_s23, %s5607_s2, %s8504_s3, %s8504_s3, %s8505_s6  }
0x225d PF: > { %s10131_s17 = sld [smem:[#allocation114_spill]]  ;;  %s10132_s12 = sld [smem:[#allocation118_spill]] }
0x225e   : > { %p10134_p10 = scmp.ge.s32.totalorder %s8411_s11, 2 }
0x2263   : > { %s5651_s0 = sand.u32 1, %s10131_s17   ;;  %p10133_p9 = scmp.ne.s32.totalorder %s10132_s12, 0 }
0x2264   : > { %s5652_s1 = scalar_lea.sflag [#allocation4], %s5651_s0 }
0x2265   : > { %p7007_p1 = pnand %p10134_p10, %p10133_p9 }
0x2267   : > { %8390 = dma.done.wait (!%p7007_p1), %s5652_s1, 256  }
0x2268   : > { %8392 = vsyncadd (!%p7007_p1), %s5652_s1, 4294967040  ;;  %s5661_s9 = scalar_lea.sflag [#allocation60], %s5651_s0 }
0x2269   : > { %8394 = dma.done.wait (!%p7007_p1), %s5661_s9, 256  }
0x226a   : > { %8396 = vsyncadd (!%p7007_p1), %s5661_s9, 4294967040  ;;  %s10135_s11 = sld [smem:[#allocation115_spill]]  ;;  %s10136_s19 = sld [smem:[#allocation116_spill]] }
0x226b   : > { %s10137_s0 = smov %s8403_s7  ;;  %s10138_s7 = smov %s8407_s10 }
0x2270   : > { %p112_p0 = scmp.ge.s32.totalorder %s10135_s11, 4   ;;  %s10139_s10 = smov %s10136_s19 }
0x2272   :  { %114 = sbr.rel (!%p112_p0) target bundleno = 101 (0x65), region = 422 }
0x2279   :  { %5666 = vsyncpa [#allocation3], 1 }
0x227a   :  { %5668 = vsyncpa [#allocation3 + $0x1], 1 }
0x227b   :  { %5669 = vsyncpa [#allocation6], 1 }
0x227c   :  { %5671 = vsyncpa [#allocation6 + $0x1], 1 }
0x227d   :  { %5672 = vsyncpa [#allocation9], 1 }
0x227e   :  { %5673 = vsyncpa [#allocation12], 1 }
0x227f   :  { %5674 = vsyncpa [#allocation15], 1 }
0x2280   :  { %5675 = vsyncpa [#allocation18], 1 }
0x2281   :  { %5676 = vsyncpa [#allocation21], 1 }
0x2282   :  { %5677 = vsyncpa [#allocation24], 1 }
0x2283   :  { %5678 = vsyncpa [#allocation27], 1 }
0x2284   :  { %5679 = vsyncpa [#allocation30], 1 }
0x2285   :  { %5680 = vsyncpa [#allocation33], 1 }
0x2286   :  { %5681 = vsyncpa [#allocation36], 1 }
0x2287   :  { %5682 = vsyncpa [#allocation39], 1 }
0x2288   :  { %5683 = vsyncpa [#allocation42], 1 }
0x2289   :  { %5684 = vsyncpa [#allocation45], 1 }
0x228a   :  { %5685 = vsyncpa [#allocation48], 1 }
0x228b   :  { %5686 = vsyncpa [#allocation51], 1 }
0x228c   :  { %5687 = vsyncpa [#allocation54], 1 }
0x228d   :  { %5688 = vsyncpa [#allocation57], 1 }
0x228e   :  { %5689 = vsyncpa [#allocation4], 1 }
0x228f   :  { %5691 = vsyncpa [#allocation4 + $0x1], 1 }
0x2290   :  { %5692 = vsyncpa [#allocation60], 1 }
0x2291   :  { %5694 = vsyncpa [#allocation60 + $0x1], 1 }

</bundles_post_ra>
